<compile_context>
chip_gen: v7x
topology: tpu7x:2x2x1
jax: 0.10.0
libtpu: 0.0.40
codegen_flags: <defaults>
</compile_context>

<pallas_src>
import jax
import jax.numpy as jnp
import numpy as np
from jax.experimental import pallas as pl
from jax.experimental.pallas import tpu as pltpu

KERNEL_SIZE = 3
GROUPS = 4
FACTOR = 4
BN_EPS = 1e-5
LANE = 128
# EUP-approximate reciprocal for the softmax denominator (~1e-3 rel err, free slot).
# Set False for an exact divide (strict parity with the PyTorch module).
APPROX_SOFTMAX_RECIP = True


def _make_cot_kernel(H, W, ksz, approx_recip=APPROX_SOFTMAX_RECIP):
    pad = ksz // 2
    Wp = W + 2 * pad
    HWp = H * Wp                     # rows computed per image (incl. right-pad columns)
    kk = ksz * ksz
    c_off = pad * Wp + pad           # centre tap offset == the original pixel
    bf16 = jnp.bfloat16
    f32 = jnp.float32

    def kernel(x_ref, wk_ref, wv_ref, wa1k_ref, wa1x_ref, wa2_ref,
               bk_ref, bv_ref, ba1_ref, ba2_ref, out_ref):
        B, _, C = out_ref.shape
        rows = B * HWp

        x_bf = x_ref[...]                                   # (B, n_rows_in, C) bf16

        # In-kernel im2col: every 3x3 tap is a contiguous row-slice of the flattened
        # padded image (row r = h*Wp + w, tap (dy,dx) lives at r + dy*Wp + dx).
        def tap(off):
            return x_bf[:, off:off + HWp, :].reshape(rows, C)

        x_c = tap(c_off)                                    # centre tap == input pixels

        # key_embed: grouped 3x3 conv (+ folded BN) + ReLU as kk accumulating bf16
        # MXU dots with a shared f32 accumulator (no tap concat, no f32 upcast).
        acc = jnp.zeros((rows, C), f32)
        for p in range(kk):
            off = (p // ksz) * Wp + (p % ksz)
            t = x_c if off == c_off else tap(off)
            acc = acc + jnp.dot(t, wk_ref[p], preferred_element_type=f32)
        k1 = jnp.maximum(acc + bk_ref[...], 0.0)

        # value_embed: 1x1 conv + folded BN.
        v = jnp.dot(x_c, wv_ref[...], preferred_element_type=f32) + bv_ref[...]

        # attention_embed(cat([k1, x])): wa1 split into its k1/x halves, so no (rows, 2C)
        # lane-concat copy; mdim is zero-padded to a lane multiple in init_params.
        h1 = (jnp.dot(k1.astype(bf16), wa1k_ref[...], preferred_element_type=f32)
              + jnp.dot(x_c, wa1x_ref[...], preferred_element_type=f32)
              + ba1_ref[...])
        h1 = jnp.maximum(h1, 0.0)
        # Mean over the kernel_size**2 taps is pre-folded into wa2 / ba2.
        att = jnp.dot(h1.astype(bf16), wa2_ref[...],
                      preferred_element_type=f32) + ba2_ref[...]

        # Per-image softmax over the H*W spatial positions (per channel).  Rows with
        # w >= W are pad columns kept only so the tap slices stay contiguous; an
        # in-kernel iota mask excludes them from both the max and the sum, and the
        # wrapper drops them from the output.
        att_b = att.reshape(B, HWp, C)
        col = jax.lax.broadcasted_iota(jnp.int32, (1, HWp, 1), 1) % Wp
        valid = col < W
        mx = jnp.max(jnp.where(valid, att_b, -1e30), axis=1, keepdims=True)
        e = jnp.where(valid, jnp.exp(att_b - mx), 0.0)
        s = jnp.sum(e, axis=1, keepdims=True)
        inv_s = pl.reciprocal(s, approx=True) if approx_recip else 1.0 / s
        k2 = e * inv_s * v.reshape(B, HWp, C)

        out_ref[...] = (k1.reshape(B, HWp, C) + k2).astype(out_ref.dtype)

    return kernel


def _vmem_limit_bytes():
    # Generation-dependent: ~5/8 of physical VMEM (v7x 64 MiB -> 40 MiB,
    # v5e/v6e 128 MiB -> 80 MiB), capped at 100 MiB; safe fallback if unknown.
    try:
        cap = int(pltpu.get_tpu_info().vmem_capacity_bytes)
    except Exception:
        cap = 64 * 1024 * 1024
    return int(min(cap * 5 // 8, 100 * 1024 * 1024))


def cot_attention_forward(x_nchw, params, b_tile=None):
    bs, C, H, W = x_nchw.shape
    kk, Cw, Cw2 = params["wk"].shape
    assert Cw == C and Cw2 == C
    ksz = int(round(kk ** 0.5))
    pad = ksz // 2
    Hp, Wp = H + 2 * pad, W + 2 * pad
    HWp = H * Wp
    n_rows_in = (Hp + 1) * Wp          # one extra padded row keeps all tap slices in bounds
    mdim_p = params["wa1_k"].shape[1]

    # NCHW -> NHWC (C on lanes), zero-pad, flatten rows to Hp*Wp (+Wp spare), bf16 in HBM.
    x = jnp.transpose(x_nchw, (0, 2, 3, 1))
    xp = jnp.pad(x, ((0, 0), (pad, pad + 1), (pad, pad), (0, 0)))
    xp = xp.reshape(bs, n_rows_in, C).astype(jnp.bfloat16)

    # Batch fusion: fill the MXU M dimension (~512 rows/step); only keep >= 2 grid
    # steps on 2-TensorCore parts (v7x) so both cores get work.
    two_tc = "v7" in jax.devices()[0].device_kind.lower()
    if b_tile is None:
        b_tile = 1
        min_steps = 2 if two_tc else 1
        while (b_tile * 2 <= bs and bs % (b_tile * 2) == 0
               and b_tile * HWp < 512 and bs // (b_tile * 2) >= min_steps):
            b_tile *= 2
    assert bs % b_tile == 0

    def _wspec(shape):
        # Grid-invariant weights/biases: constant index map, single-buffered.
        return pl.BlockSpec(shape, lambda b, _n=len(shape): (0,) * _n,
                            pipeline_mode=pl.Buffered(1))

    kernel = _make_cot_kernel(H, W, ksz)
    out_flat = pl.pallas_call(
        kernel,
        out_shape=jax.ShapeDtypeStruct((bs, HWp, C), jnp.bfloat16),
        grid_spec=pltpu.PrefetchScalarGridSpec(
            num_scalar_prefetch=0,
            grid=(bs // b_tile,),
            in_specs=[
                pl.BlockSpec((b_tile, n_rows_in, C), lambda b: (b, 0, 0)),
                _wspec((kk, C, C)),        # wk  (per-tap block-diagonal grouped conv)
                _wspec((C, C)),            # wv
                _wspec((C, mdim_p)),       # wa1_k
                _wspec((C, mdim_p)),       # wa1_x
                _wspec((mdim_p, C)),       # wa2
                _wspec((1, C)),            # bk
                _wspec((1, C)),            # bv
                _wspec((1, mdim_p)),       # ba1
                _wspec((1, C)),            # ba2
            ],
            out_specs=pl.BlockSpec((b_tile, HWp, C), lambda b: (b, 0, 0)),
        ),
        compiler_params=pltpu.CompilerParams(
            dimension_semantics=("parallel",),
            vmem_limit_bytes=_vmem_limit_bytes()),
    )(xp, params["wk"], params["wv"], params["wa1_k"], params["wa1_x"], params["wa2"],
      params["bk"], params["bv"], params["ba1"], params["ba2"])

    # Drop the pad columns carried in the row dimension, back to NCHW f32 like the module.
    out = out_flat.reshape(bs, H, Wp, C)[:, :, :W, :].astype(jnp.float32)
    return out.transpose(0, 3, 1, 2)


def init_params(key, dim, kernel_size=KERNEL_SIZE, groups=GROUPS, factor=FACTOR):
    """Deterministic synthetic parameters (PyTorch OIHW layout) + kernel-layout folds."""
    kk = kernel_size * kernel_size
    cg = dim // groups
    m = 2 * dim // factor
    m_pad = -(-m // LANE) * LANE          # pad mdim to a lane multiple (lane-dense h1)
    keys = jax.random.split(key, 9)

    raw = {
        "w_key": 0.1 * jax.random.normal(keys[0], (dim, cg, kernel_size, kernel_size), jnp.float32),
        "w_val": 0.1 * jax.random.normal(keys[1], (dim, dim, 1, 1), jnp.float32),
        "w_a1": 0.1 * jax.random.normal(keys[2], (m, 2 * dim, 1, 1), jnp.float32),
        "w_a2": 0.1 * jax.random.normal(keys[3], (kk * dim, m, 1, 1), jnp.float32),
        "b_a2": 0.1 * jax.random.normal(keys[4], (kk * dim,), jnp.float32),
    }

    def bn_fold(k, n):
        k1_, k2_, k3_, k4_ = jax.random.split(k, 4)
        gamma = 1.0 + 0.1 * jax.random.normal(k1_, (n,), jnp.float32)
        beta = 0.1 * jax.random.normal(k2_, (n,), jnp.float32)
        mean = 0.1 * jax.random.normal(k3_, (n,), jnp.float32)
        var = 0.5 + jax.random.uniform(k4_, (n,), jnp.float32)
        scale = gamma / jnp.sqrt(var + BN_EPS)
        bias = beta - mean * scale
        return scale, bias

    sk, bk = bn_fold(keys[5], dim)
    sv, bv = bn_fold(keys[6], dim)
    sa1, ba1 = bn_fold(keys[7], m)
    raw.update(sk=sk, bk=bk, sv=sv, bv=bv, sa1=sa1, ba1=ba1)

    # Grouped 3x3 conv as kk block-diagonal (C_in, C_out) matrices with the BN scale
    # folded in; the kernel issues one accumulating MXU dot per tap.
    wk = np.zeros((kk, dim, dim), np.float32)
    w_key_np = np.asarray(raw["w_key"])
    for g in range(groups):
        lo, hi = g * cg, (g + 1) * cg
        for p in range(kk):
            dy, dx = p // kernel_size, p % kernel_size
            wk[p, lo:hi, lo:hi] = w_key_np[lo:hi, :, dy, dx].T    # (ci_local, co_local)
    wk = jnp.asarray(wk) * sk[None, None, :]                       # (kk, C, C)

    wv = raw["w_val"][:, :, 0, 0].T * sv[None, :]                  # (C, C)

    # attention_embed first 1x1 (+BN): split into k1- and x-halves, pad mdim -> m_pad.
    wa1_full = raw["w_a1"][:, :, 0, 0].T * sa1[None, :]            # (2C, M)
    wa1_full = jnp.pad(wa1_full, ((0, 0), (0, m_pad - m)))
    wa1_k, wa1_x = wa1_full[:dim], wa1_full[dim:]                  # each (C, M_pad)
    ba1_p = jnp.pad(ba1, (0, m_pad - m))

    # Second 1x1: the mean over the kernel_size**2 taps is folded exactly; pad rows.
    wa2 = raw["w_a2"][:, :, 0, 0].reshape(dim, kk, m).mean(axis=1).T   # (M, C)
    wa2 = jnp.pad(wa2, ((0, m_pad - m), (0, 0)))                       # (M_pad, C)
    ba2 = raw["b_a2"].reshape(dim, kk).mean(axis=1)                    # (C,)

    bf16 = jnp.bfloat16
    kernel_params = {
        "wk": wk.astype(bf16), "wv": wv.astype(bf16),
        "wa1_k": wa1_k.astype(bf16), "wa1_x": wa1_x.astype(bf16),
        "wa2": wa2.astype(bf16),
        "bk": bk.reshape(1, dim), "bv": bv.reshape(1, dim),
        "ba1": ba1_p.reshape(1, m_pad), "ba2": ba2.reshape(1, dim),
    }
    return raw, kernel_params


def reference_forward(x, raw, dim, kernel_size=KERNEL_SIZE, groups=GROUPS):
    """Pure-JAX reference mirroring the PyTorch forward (NCHW, eval-mode BN, all f32)."""
    bs, c, h, w = x.shape
    kk = kernel_size * kernel_size
    k1 = jax.lax.conv_general_dilated(
        x, raw["w_key"], window_strides=(1, 1), padding="SAME",
        dimension_numbers=("NCHW", "OIHW", "NCHW"),
        feature_group_count=groups)
    k1 = jnp.maximum(k1 * raw["sk"][None, :, None, None] + raw["bk"][None, :, None, None], 0.0)

    v = jnp.einsum("bihw,oi->bohw", x, raw["w_val"][:, :, 0, 0])
    v = v * raw["sv"][None, :, None, None] + raw["bv"][None, :, None, None]

    y = jnp.concatenate([k1, x], axis=1)
    h1 = jnp.einsum("bihw,oi->bohw", y, raw["w_a1"][:, :, 0, 0])
    h1 = jnp.maximum(h1 * raw["sa1"][None, :, None, None] + raw["ba1"][None, :, None, None], 0.0)
    att = jnp.einsum("bihw,oi->bohw", h1, raw["w_a2"][:, :, 0, 0]) + raw["b_a2"][None, :, None, None]

    att = att.reshape(bs, c, kk, h, w).mean(axis=2).reshape(bs, c, h * w)
    v = v.reshape(bs, c, h * w)
    k2 = jax.nn.softmax(att, axis=-1) * v
    return k1 + k2.reshape(bs, c, h, w)


if __name__ == "__main__":
    # C = 128 keeps every matmul and every store lane-dense (128-lane vregs).
    dim, H, W, bs = 128, 8, 8, 2
    key = jax.random.PRNGKey(0)
    kx, kp = jax.random.split(key)
    x = jax.random.normal(kx, (bs, dim, H, W), jnp.float32)   # NCHW input, like PyTorch
    raw, params = init_params(kp, dim)

    out = jax.block_until_ready(cot_attention_forward(x, params))
    ref = jax.block_until_ready(reference_forward(x, raw, dim))

    assert out.shape == (bs, dim, H, W)
    err = float(jnp.max(jnp.abs(out - ref)))
    scale = float(jnp.max(jnp.abs(ref)))
    # bf16 inputs / weights / output and bf16 MXU dots (f32 accumulation) vs the f32
    # reference -> allow a few percent relative error.
    assert np.isfinite(err) and err < 4e-2 * scale + 2e-2, f"max abs error {err} (scale {scale})"
    print("KERNEL_OK")
</pallas_src>

<mosaic_0001>
module attributes {stable_mosaic.version = 11 : i64} {
  func.func @kernel(%arg0: i32, %arg1: memref<2x110x128xbf16, #tpu.memory_space<vmem>>, %arg2: memref<9x128x128xbf16, #tpu.memory_space<vmem>>, %arg3: memref<128x128xbf16, #tpu.memory_space<vmem>>, %arg4: memref<128x128xbf16, #tpu.memory_space<vmem>>, %arg5: memref<128x128xbf16, #tpu.memory_space<vmem>>, %arg6: memref<128x128xbf16, #tpu.memory_space<vmem>>, %arg7: memref<1x128xf32, #tpu.memory_space<vmem>>, %arg8: memref<1x128xf32, #tpu.memory_space<vmem>>, %arg9: memref<1x128xf32, #tpu.memory_space<vmem>>, %arg10: memref<1x128xf32, #tpu.memory_space<vmem>>, %arg11: memref<2x80x128xbf16, #tpu.memory_space<vmem>>) attributes {dimension_semantics = [#tpu.dimension_semantics<parallel>], iteration_bounds = array<i64: 1>, scalar_prefetch = 0 : i64, scratch_operands = 0 : i64, tpu.core_type = #tpu.core_type<tc>, window_params = [{transform_indices = @transform_0, window_bounds = array<i64: 2, 110, 128>}, {pipeline_mode = #tpu.pipeline_mode<synchronous>, transform_indices = @transform_1, window_bounds = array<i64: 9, 128, 128>}, {pipeline_mode = #tpu.pipeline_mode<synchronous>, transform_indices = @transform_2, window_bounds = array<i64: 128, 128>}, {pipeline_mode = #tpu.pipeline_mode<synchronous>, transform_indices = @transform_3, window_bounds = array<i64: 128, 128>}, {pipeline_mode = #tpu.pipeline_mode<synchronous>, transform_indices = @transform_4, window_bounds = array<i64: 128, 128>}, {pipeline_mode = #tpu.pipeline_mode<synchronous>, transform_indices = @transform_5, window_bounds = array<i64: 128, 128>}, {pipeline_mode = #tpu.pipeline_mode<synchronous>, transform_indices = @transform_6, window_bounds = array<i64: 1, 128>}, {pipeline_mode = #tpu.pipeline_mode<synchronous>, transform_indices = @transform_7, window_bounds = array<i64: 1, 128>}, {pipeline_mode = #tpu.pipeline_mode<synchronous>, transform_indices = @transform_8, window_bounds = array<i64: 1, 128>}, {pipeline_mode = #tpu.pipeline_mode<synchronous>, transform_indices = @transform_9, window_bounds = array<i64: 1, 128>}, {transform_indices = @transform_10, window_bounds = array<i64: 2, 80, 128>}]} {
    %c0 = arith.constant 0 : index
    %c0_0 = arith.constant 0 : index
    %c0_1 = arith.constant 0 : index
    %0 = vector.load %arg1[%c0, %c0_0, %c0_1] : memref<2x110x128xbf16, #tpu.memory_space<vmem>>, vector<2x110x128xbf16>
    %1 = vector.extract_strided_slice %0 {offsets = [0, 11, 0], sizes = [2, 80, 128], strides = [1, 1, 1]} : vector<2x110x128xbf16> to vector<2x80x128xbf16>
    %2 = vector.shape_cast %1 : vector<2x80x128xbf16> to vector<160x128xbf16>
    %cst = arith.constant 0.000000e+00 : f32
    %3 = vector.broadcast %cst : f32 to vector<160x128xf32>
    %4 = vector.extract_strided_slice %0 {offsets = [0, 0, 0], sizes = [2, 80, 128], strides = [1, 1, 1]} : vector<2x110x128xbf16> to vector<2x80x128xbf16>
    %5 = vector.shape_cast %4 : vector<2x80x128xbf16> to vector<160x128xbf16>
    %c0_2 = arith.constant 0 : index
    %c0_3 = arith.constant 0 : index
    %c0_4 = arith.constant 0 : index
    %6 = vector.load %arg2[%c0_2, %c0_3, %c0_4] : memref<9x128x128xbf16, #tpu.memory_space<vmem>>, vector<1x128x128xbf16>
    %7 = vector.shape_cast %6 : vector<1x128x128xbf16> to vector<128x128xbf16>
    %cst_5 = arith.constant dense<0.000000e+00> : vector<160x128xf32>
    %8 = tpu.matmul %5, %7, %cst_5 {dimension_numbers = #tpu.dot_dimension_numbers<[1], [0], [0], [1], [0, 0, 1, 1], [], []>} : vector<160x128xbf16>, vector<128x128xbf16>, vector<160x128xf32> -> vector<160x128xf32>
    %9 = arith.addf %3, %8 : vector<160x128xf32>
    %10 = vector.extract_strided_slice %0 {offsets = [0, 1, 0], sizes = [2, 80, 128], strides = [1, 1, 1]} : vector<2x110x128xbf16> to vector<2x80x128xbf16>
    %11 = vector.shape_cast %10 : vector<2x80x128xbf16> to vector<160x128xbf16>
    %c1 = arith.constant 1 : index
    %c0_6 = arith.constant 0 : index
    %c0_7 = arith.constant 0 : index
    %12 = vector.load %arg2[%c1, %c0_6, %c0_7] : memref<9x128x128xbf16, #tpu.memory_space<vmem>>, vector<1x128x128xbf16>
    %13 = vector.shape_cast %12 : vector<1x128x128xbf16> to vector<128x128xbf16>
    %cst_8 = arith.constant dense<0.000000e+00> : vector<160x128xf32>
    %14 = tpu.matmul %11, %13, %cst_8 {dimension_numbers = #tpu.dot_dimension_numbers<[1], [0], [0], [1], [0, 0, 1, 1], [], []>} : vector<160x128xbf16>, vector<128x128xbf16>, vector<160x128xf32> -> vector<160x128xf32>
    %15 = arith.addf %9, %14 : vector<160x128xf32>
    %16 = vector.extract_strided_slice %0 {offsets = [0, 2, 0], sizes = [2, 80, 128], strides = [1, 1, 1]} : vector<2x110x128xbf16> to vector<2x80x128xbf16>
    %17 = vector.shape_cast %16 : vector<2x80x128xbf16> to vector<160x128xbf16>
    %c2 = arith.constant 2 : index
    %c0_9 = arith.constant 0 : index
    %c0_10 = arith.constant 0 : index
    %18 = vector.load %arg2[%c2, %c0_9, %c0_10] : memref<9x128x128xbf16, #tpu.memory_space<vmem>>, vector<1x128x128xbf16>
    %19 = vector.shape_cast %18 : vector<1x128x128xbf16> to vector<128x128xbf16>
    %cst_11 = arith.constant dense<0.000000e+00> : vector<160x128xf32>
    %20 = tpu.matmul %17, %19, %cst_11 {dimension_numbers = #tpu.dot_dimension_numbers<[1], [0], [0], [1], [0, 0, 1, 1], [], []>} : vector<160x128xbf16>, vector<128x128xbf16>, vector<160x128xf32> -> vector<160x128xf32>
    %21 = arith.addf %15, %20 : vector<160x128xf32>
    %22 = vector.extract_strided_slice %0 {offsets = [0, 10, 0], sizes = [2, 80, 128], strides = [1, 1, 1]} : vector<2x110x128xbf16> to vector<2x80x128xbf16>
    %23 = vector.shape_cast %22 : vector<2x80x128xbf16> to vector<160x128xbf16>
    %c3 = arith.constant 3 : index
    %c0_12 = arith.constant 0 : index
    %c0_13 = arith.constant 0 : index
    %24 = vector.load %arg2[%c3, %c0_12, %c0_13] : memref<9x128x128xbf16, #tpu.memory_space<vmem>>, vector<1x128x128xbf16>
    %25 = vector.shape_cast %24 : vector<1x128x128xbf16> to vector<128x128xbf16>
    %cst_14 = arith.constant dense<0.000000e+00> : vector<160x128xf32>
    %26 = tpu.matmul %23, %25, %cst_14 {dimension_numbers = #tpu.dot_dimension_numbers<[1], [0], [0], [1], [0, 0, 1, 1], [], []>} : vector<160x128xbf16>, vector<128x128xbf16>, vector<160x128xf32> -> vector<160x128xf32>
    %27 = arith.addf %21, %26 : vector<160x128xf32>
    %c4 = arith.constant 4 : index
    %c0_15 = arith.constant 0 : index
    %c0_16 = arith.constant 0 : index
    %28 = vector.load %arg2[%c4, %c0_15, %c0_16] : memref<9x128x128xbf16, #tpu.memory_space<vmem>>, vector<1x128x128xbf16>
    %29 = vector.shape_cast %28 : vector<1x128x128xbf16> to vector<128x128xbf16>
    %cst_17 = arith.constant dense<0.000000e+00> : vector<160x128xf32>
    %30 = tpu.matmul %2, %29, %cst_17 {dimension_numbers = #tpu.dot_dimension_numbers<[1], [0], [0], [1], [0, 0, 1, 1], [], []>} : vector<160x128xbf16>, vector<128x128xbf16>, vector<160x128xf32> -> vector<160x128xf32>
    %31 = arith.addf %27, %30 : vector<160x128xf32>
    %32 = vector.extract_strided_slice %0 {offsets = [0, 12, 0], sizes = [2, 80, 128], strides = [1, 1, 1]} : vector<2x110x128xbf16> to vector<2x80x128xbf16>
    %33 = vector.shape_cast %32 : vector<2x80x128xbf16> to vector<160x128xbf16>
    %c5 = arith.constant 5 : index
    %c0_18 = arith.constant 0 : index
    %c0_19 = arith.constant 0 : index
    %34 = vector.load %arg2[%c5, %c0_18, %c0_19] : memref<9x128x128xbf16, #tpu.memory_space<vmem>>, vector<1x128x128xbf16>
    %35 = vector.shape_cast %34 : vector<1x128x128xbf16> to vector<128x128xbf16>
    %cst_20 = arith.constant dense<0.000000e+00> : vector<160x128xf32>
    %36 = tpu.matmul %33, %35, %cst_20 {dimension_numbers = #tpu.dot_dimension_numbers<[1], [0], [0], [1], [0, 0, 1, 1], [], []>} : vector<160x128xbf16>, vector<128x128xbf16>, vector<160x128xf32> -> vector<160x128xf32>
    %37 = arith.addf %31, %36 : vector<160x128xf32>
    %38 = vector.extract_strided_slice %0 {offsets = [0, 20, 0], sizes = [2, 80, 128], strides = [1, 1, 1]} : vector<2x110x128xbf16> to vector<2x80x128xbf16>
    %39 = vector.shape_cast %38 : vector<2x80x128xbf16> to vector<160x128xbf16>
    %c6 = arith.constant 6 : index
    %c0_21 = arith.constant 0 : index
    %c0_22 = arith.constant 0 : index
    %40 = vector.load %arg2[%c6, %c0_21, %c0_22] : memref<9x128x128xbf16, #tpu.memory_space<vmem>>, vector<1x128x128xbf16>
    %41 = vector.shape_cast %40 : vector<1x128x128xbf16> to vector<128x128xbf16>
    %cst_23 = arith.constant dense<0.000000e+00> : vector<160x128xf32>
    %42 = tpu.matmul %39, %41, %cst_23 {dimension_numbers = #tpu.dot_dimension_numbers<[1], [0], [0], [1], [0, 0, 1, 1], [], []>} : vector<160x128xbf16>, vector<128x128xbf16>, vector<160x128xf32> -> vector<160x128xf32>
    %43 = arith.addf %37, %42 : vector<160x128xf32>
    %44 = vector.extract_strided_slice %0 {offsets = [0, 21, 0], sizes = [2, 80, 128], strides = [1, 1, 1]} : vector<2x110x128xbf16> to vector<2x80x128xbf16>
    %45 = vector.shape_cast %44 : vector<2x80x128xbf16> to vector<160x128xbf16>
    %c7 = arith.constant 7 : index
    %c0_24 = arith.constant 0 : index
    %c0_25 = arith.constant 0 : index
    %46 = vector.load %arg2[%c7, %c0_24, %c0_25] : memref<9x128x128xbf16, #tpu.memory_space<vmem>>, vector<1x128x128xbf16>
    %47 = vector.shape_cast %46 : vector<1x128x128xbf16> to vector<128x128xbf16>
    %cst_26 = arith.constant dense<0.000000e+00> : vector<160x128xf32>
    %48 = tpu.matmul %45, %47, %cst_26 {dimension_numbers = #tpu.dot_dimension_numbers<[1], [0], [0], [1], [0, 0, 1, 1], [], []>} : vector<160x128xbf16>, vector<128x128xbf16>, vector<160x128xf32> -> vector<160x128xf32>
    %49 = arith.addf %43, %48 : vector<160x128xf32>
    %50 = vector.extract_strided_slice %0 {offsets = [0, 22, 0], sizes = [2, 80, 128], strides = [1, 1, 1]} : vector<2x110x128xbf16> to vector<2x80x128xbf16>
    %51 = vector.shape_cast %50 : vector<2x80x128xbf16> to vector<160x128xbf16>
    %c8 = arith.constant 8 : index
    %c0_27 = arith.constant 0 : index
    %c0_28 = arith.constant 0 : index
    %52 = vector.load %arg2[%c8, %c0_27, %c0_28] : memref<9x128x128xbf16, #tpu.memory_space<vmem>>, vector<1x128x128xbf16>
    %53 = vector.shape_cast %52 : vector<1x128x128xbf16> to vector<128x128xbf16>
    %cst_29 = arith.constant dense<0.000000e+00> : vector<160x128xf32>
    %54 = tpu.matmul %51, %53, %cst_29 {dimension_numbers = #tpu.dot_dimension_numbers<[1], [0], [0], [1], [0, 0, 1, 1], [], []>} : vector<160x128xbf16>, vector<128x128xbf16>, vector<160x128xf32> -> vector<160x128xf32>
    %55 = arith.addf %49, %54 : vector<160x128xf32>
    %c0_30 = arith.constant 0 : index
    %c0_31 = arith.constant 0 : index
    %56 = vector.load %arg7[%c0_30, %c0_31] : memref<1x128xf32, #tpu.memory_space<vmem>>, vector<1x128xf32>
    %57 = vector.broadcast %56 : vector<1x128xf32> to vector<160x128xf32>
    %58 = arith.addf %55, %57 : vector<160x128xf32>
    %cst_32 = arith.constant 0.000000e+00 : f32
    %59 = vector.broadcast %cst_32 : f32 to vector<160x128xf32>
    %60 = arith.maximumf %58, %59 : vector<160x128xf32>
    %c0_33 = arith.constant 0 : index
    %c0_34 = arith.constant 0 : index
    %61 = vector.load %arg3[%c0_33, %c0_34] : memref<128x128xbf16, #tpu.memory_space<vmem>>, vector<128x128xbf16>
    %cst_35 = arith.constant dense<0.000000e+00> : vector<160x128xf32>
    %62 = tpu.matmul %2, %61, %cst_35 {dimension_numbers = #tpu.dot_dimension_numbers<[1], [0], [0], [1], [0, 0, 1, 1], [], []>} : vector<160x128xbf16>, vector<128x128xbf16>, vector<160x128xf32> -> vector<160x128xf32>
    %c0_36 = arith.constant 0 : index
    %c0_37 = arith.constant 0 : index
    %63 = vector.load %arg8[%c0_36, %c0_37] : memref<1x128xf32, #tpu.memory_space<vmem>>, vector<1x128xf32>
    %64 = vector.broadcast %63 : vector<1x128xf32> to vector<160x128xf32>
    %65 = arith.addf %62, %64 : vector<160x128xf32>
    %66 = arith.truncf %60 : vector<160x128xf32> to vector<160x128xbf16>
    %c0_38 = arith.constant 0 : index
    %c0_39 = arith.constant 0 : index
    %67 = vector.load %arg4[%c0_38, %c0_39] : memref<128x128xbf16, #tpu.memory_space<vmem>>, vector<128x128xbf16>
    %cst_40 = arith.constant dense<0.000000e+00> : vector<160x128xf32>
    %68 = tpu.matmul %66, %67, %cst_40 {dimension_numbers = #tpu.dot_dimension_numbers<[1], [0], [0], [1], [0, 0, 1, 1], [], []>} : vector<160x128xbf16>, vector<128x128xbf16>, vector<160x128xf32> -> vector<160x128xf32>
    %c0_41 = arith.constant 0 : index
    %c0_42 = arith.constant 0 : index
    %69 = vector.load %arg5[%c0_41, %c0_42] : memref<128x128xbf16, #tpu.memory_space<vmem>>, vector<128x128xbf16>
    %cst_43 = arith.constant dense<0.000000e+00> : vector<160x128xf32>
    %70 = tpu.matmul %2, %69, %cst_43 {dimension_numbers = #tpu.dot_dimension_numbers<[1], [0], [0], [1], [0, 0, 1, 1], [], []>} : vector<160x128xbf16>, vector<128x128xbf16>, vector<160x128xf32> -> vector<160x128xf32>
    %71 = arith.addf %68, %70 : vector<160x128xf32>
    %c0_44 = arith.constant 0 : index
    %c0_45 = arith.constant 0 : index
    %72 = vector.load %arg9[%c0_44, %c0_45] : memref<1x128xf32, #tpu.memory_space<vmem>>, vector<1x128xf32>
    %73 = vector.broadcast %72 : vector<1x128xf32> to vector<160x128xf32>
    %74 = arith.addf %71, %73 : vector<160x128xf32>
    %cst_46 = arith.constant 0.000000e+00 : f32
    %75 = vector.broadcast %cst_46 : f32 to vector<160x128xf32>
    %76 = arith.maximumf %74, %75 : vector<160x128xf32>
    %77 = arith.truncf %76 : vector<160x128xf32> to vector<160x128xbf16>
    %c0_47 = arith.constant 0 : index
    %c0_48 = arith.constant 0 : index
    %78 = vector.load %arg6[%c0_47, %c0_48] : memref<128x128xbf16, #tpu.memory_space<vmem>>, vector<128x128xbf16>
    %cst_49 = arith.constant dense<0.000000e+00> : vector<160x128xf32>
    %79 = tpu.matmul %77, %78, %cst_49 {dimension_numbers = #tpu.dot_dimension_numbers<[1], [0], [0], [1], [0, 0, 1, 1], [], []>} : vector<160x128xbf16>, vector<128x128xbf16>, vector<160x128xf32> -> vector<160x128xf32>
    %c0_50 = arith.constant 0 : index
    %c0_51 = arith.constant 0 : index
    %80 = vector.load %arg10[%c0_50, %c0_51] : memref<1x128xf32, #tpu.memory_space<vmem>>, vector<1x128xf32>
    %81 = vector.broadcast %80 : vector<1x128xf32> to vector<160x128xf32>
    %82 = arith.addf %79, %81 : vector<160x128xf32>
    %83 = vector.shape_cast %82 : vector<160x128xf32> to vector<2x80x128xf32>
    %84 = tpu.iota {dimensions = array<i32: 1>} : vector<1x80x1xi32>
    %c10_i32 = arith.constant 10 : i32
    %c0_i32 = arith.constant 0 : i32
    %85 = arith.cmpi eq, %c10_i32, %c0_i32 : i32
    %c1_i32 = arith.constant 1 : i32
    %86 = arith.select %85, %c1_i32, %c10_i32 : i32
    %87 = vector.broadcast %86 : i32 to vector<1x80x1xi32>
    %88 = arith.remsi %84, %87 : vector<1x80x1xi32>
    %c0_i32_52 = arith.constant 0 : i32
    %89 = vector.broadcast %c0_i32_52 : i32 to vector<1x80x1xi32>
    %90 = arith.cmpi ne, %88, %89 : vector<1x80x1xi32>
    %c0_i32_53 = arith.constant 0 : i32
    %91 = vector.broadcast %c0_i32_53 : i32 to vector<1x80x1xi32>
    %92 = arith.cmpi slt, %88, %91 : vector<1x80x1xi32>
    %c0_i32_54 = arith.constant 0 : i32
    %93 = arith.cmpi slt, %86, %c0_i32_54 : i32
    %94 = vector.broadcast %93 : i1 to vector<1x80x1xi1>
    %95 = vector.broadcast %94 : vector<1x80x1xi1> to vector<1x80x1xi1>
    %96 = arith.xori %92, %95 : vector<1x80x1xi1>
    %97 = arith.andi %96, %90 : vector<1x80x1xi1>
    %98 = vector.broadcast %86 : i32 to vector<1x80x1xi32>
    %99 = arith.addi %88, %98 : vector<1x80x1xi32>
    %100 = arith.select %97, %99, %88 : vector<1x80x1xi1>, vector<1x80x1xi32>
    %c8_i32 = arith.constant 8 : i32
    %101 = vector.broadcast %c8_i32 : i32 to vector<1x80x1xi32>
    %102 = arith.cmpi slt, %100, %101 : vector<1x80x1xi32>
    %cst_55 = arith.constant -1.000000e+30 : f32
    %103 = vector.shape_cast %102 : vector<1x80x1xi1> to vector<1x80x1xi1>
    %104 = vector.broadcast %103 : vector<1x80x1xi1> to vector<2x80x128xi1>
    %105 = vector.broadcast %cst_55 : f32 to vector<2x80x128xf32>
    %106 = arith.select %104, %83, %105 : vector<2x80x128xi1>, vector<2x80x128xf32>
    %cst_56 = arith.constant dense<0xFF800000> : vector<2x128xf32>
    %107 = vector.multi_reduction <maximumf>, %106, %cst_56 [1] : vector<2x80x128xf32> to vector<2x128xf32>
    %108 = vector.shape_cast %107 : vector<2x128xf32> to vector<2x1x128xf32>
    %109 = vector.broadcast %108 : vector<2x1x128xf32> to vector<2x80x128xf32>
    %110 = arith.subf %83, %109 : vector<2x80x128xf32>
    %111 = math.exp %110 : vector<2x80x128xf32>
    %cst_57 = arith.constant 0.000000e+00 : f32
    %112 = vector.shape_cast %102 : vector<1x80x1xi1> to vector<1x80x1xi1>
    %113 = vector.broadcast %112 : vector<1x80x1xi1> to vector<2x80x128xi1>
    %114 = vector.broadcast %cst_57 : f32 to vector<2x80x128xf32>
    %115 = arith.select %113, %111, %114 : vector<2x80x128xi1>, vector<2x80x128xf32>
    %cst_58 = arith.constant dense<0.000000e+00> : vector<2x128xf32>
    %116 = vector.multi_reduction <add>, %115, %cst_58 [1] : vector<2x80x128xf32> to vector<2x128xf32>
    %117 = vector.shape_cast %116 : vector<2x128xf32> to vector<2x1x128xf32>
    %118 = tpu.reciprocal %117 {approx = true} : vector<2x1x128xf32> -> vector<2x1x128xf32>
    %119 = vector.broadcast %118 : vector<2x1x128xf32> to vector<2x80x128xf32>
    %120 = arith.mulf %115, %119 : vector<2x80x128xf32>
    %121 = vector.shape_cast %65 : vector<160x128xf32> to vector<2x80x128xf32>
    %122 = arith.mulf %120, %121 : vector<2x80x128xf32>
    %123 = vector.shape_cast %60 : vector<160x128xf32> to vector<2x80x128xf32>
    %124 = arith.addf %123, %122 : vector<2x80x128xf32>
    %125 = arith.truncf %124 : vector<2x80x128xf32> to vector<2x80x128xbf16>
    %c0_59 = arith.constant 0 : index
    %c0_60 = arith.constant 0 : index
    %c0_61 = arith.constant 0 : index
    %126 = vector.load %arg11[%c0_59, %c0_60, %c0_61] : memref<2x80x128xbf16, #tpu.memory_space<vmem>>, vector<2x80x128xbf16>
    tpu.vector_store %arg11[%c0_59, %c0_60, %c0_61], %125 {strides = array<i32>} : memref<2x80x128xbf16, #tpu.memory_space<vmem>>, vector<2x80x128xbf16>,
    return
  }
  func.func @transform_0(%arg0: i32) -> (i32, i32, i32) {
    %c0_i32 = arith.constant 0 : i32
    %c0_i32_0 = arith.constant 0 : i32
    %c0_i32_1 = arith.constant 0 : i32
    return %arg0, %c0_i32, %c0_i32_0 : i32, i32, i32
  }
  func.func @transform_1(%arg0: i32) -> (i32, i32, i32) {
    %c0_i32 = arith.constant 0 : i32
    %c0_i32_0 = arith.constant 0 : i32
    %c0_i32_1 = arith.constant 0 : i32
    %c0_i32_2 = arith.constant 0 : i32
    return %c0_i32, %c0_i32_0, %c0_i32_1 : i32, i32, i32
  }
  func.func @transform_2(%arg0: i32) -> (i32, i32) {
    %c0_i32 = arith.constant 0 : i32
    %c0_i32_0 = arith.constant 0 : i32
    %c0_i32_1 = arith.constant 0 : i32
    return %c0_i32, %c0_i32_0 : i32, i32
  }
  func.func @transform_3(%arg0: i32) -> (i32, i32) {
    %c0_i32 = arith.constant 0 : i32
    %c0_i32_0 = arith.constant 0 : i32
    %c0_i32_1 = arith.constant 0 : i32
    return %c0_i32, %c0_i32_0 : i32, i32
  }
  func.func @transform_4(%arg0: i32) -> (i32, i32) {
    %c0_i32 = arith.constant 0 : i32
    %c0_i32_0 = arith.constant 0 : i32
    %c0_i32_1 = arith.constant 0 : i32
    return %c0_i32, %c0_i32_0 : i32, i32
  }
  func.func @transform_5(%arg0: i32) -> (i32, i32) {
    %c0_i32 = arith.constant 0 : i32
    %c0_i32_0 = arith.constant 0 : i32
    %c0_i32_1 = arith.constant 0 : i32
    return %c0_i32, %c0_i32_0 : i32, i32
  }
  func.func @transform_6(%arg0: i32) -> (i32, i32) {
    %c0_i32 = arith.constant 0 : i32
    %c0_i32_0 = arith.constant 0 : i32
    %c0_i32_1 = arith.constant 0 : i32
    return %c0_i32, %c0_i32_0 : i32, i32
  }
  func.func @transform_7(%arg0: i32) -> (i32, i32) {
    %c0_i32 = arith.constant 0 : i32
    %c0_i32_0 = arith.constant 0 : i32
    %c0_i32_1 = arith.constant 0 : i32
    return %c0_i32, %c0_i32_0 : i32, i32
  }
  func.func @transform_8(%arg0: i32) -> (i32, i32) {
    %c0_i32 = arith.constant 0 : i32
    %c0_i32_0 = arith.constant 0 : i32
    %c0_i32_1 = arith.constant 0 : i32
    return %c0_i32, %c0_i32_0 : i32, i32
  }
  func.func @transform_9(%arg0: i32) -> (i32, i32) {
    %c0_i32 = arith.constant 0 : i32
    %c0_i32_0 = arith.constant 0 : i32
    %c0_i32_1 = arith.constant 0 : i32
    return %c0_i32, %c0_i32_0 : i32, i32
  }
  func.func @transform_10(%arg0: i32) -> (i32, i32, i32) {
    %c0_i32 = arith.constant 0 : i32
    %c0_i32_0 = arith.constant 0 : i32
    %c0_i32_1 = arith.constant 0 : i32
    return %arg0, %c0_i32, %c0_i32_0 : i32, i32, i32
  }
}

</mosaic_0001>

<bundles_post_ra>
// kernel: tpu_custom_call.1
= control target key start
LH: loop header
LB: loop body
LE: loop exit
PB: predicated region body
PF: predicated region fallthrough
CT: control target
= control target key end

     0   :  { %15 = vsyncpa [#allocation3], 0  ;;  %s7816_s0 = inlined_call_operand.vmem [shape: bf16[2,110,128], index: 0, kind: input, shape index: {}]   ;;  %s7817_s1 = inlined_call_operand.hbm [shape: bf16[9,128,128], index: 1, kind: input, shape index: {}]   ;;  %s7818_s2 = inlined_call_operand.vmem [shape: bf16[128,128], index: 2, kind: input, shape index: {}]   ;;  %s7819_s3 = inlined_call_operand.vmem [shape: bf16[128,128], index: 3, kind: input, shape index: {}]   ;;  %s7820_s4 = inlined_call_operand.vmem [shape: bf16[128,128], index: 4, kind: input, shape index: {}]   ;;  %s7821_s5 = inlined_call_operand.hbm [shape: bf16[128,128], index: 5, kind: input, shape index: {}]   ;;  %s7822_s6 = inlined_call_operand.vmem [shape: f32[1,128], index: 6, kind: input, shape index: {}]   ;;  %s7823_s7 = inlined_call_operand.vmem [shape: f32[1,128], index: 7, kind: input, shape index: {}]   ;;  %s7824_s8 = inlined_call_operand.vmem [shape: f32[1,128], index: 8, kind: input, shape index: {}]   ;;  %s7825_s9 = inlined_call_operand.vmem [shape: f32[1,128], index: 9, kind: input, shape index: {}]   ;;  %s7826_s10 = inlined_call_operand.hbm [shape: bf16[2,80,128], index: 10, kind: output, shape index: {}]  }
   0x1   :  { %16 = vsyncpa [#allocation6], 0 }
   0x2   :  { %17 = vsyncpa [#allocation4], 0  ;;  %s5708_s13 = smov [#allocation2]   ;;  %s5636_s17 = scalar_lea.hbm %s7817_s1, 9216 }
   0x3   :  { %s25_s14 = sshll.u32 %s5708_s13, 4  ;;  %p5637_p0 = scmp.ne.s32.totalorder %s7817_s1, %s5636_s17  ;;  %s26_s14 = int_to_ptr.vmem [resolvable:$true] %s25_s14 }
   0x4   :  { %p5640_p1 = scmp.lt.u32.totalorder %s5636_s17, %s7817_s1 }
   0x6   :  { %p5642_p2 = pnand %p5640_p1, %p5637_p0 }
   0x8   :  { %5645 = shalt.err (!%p5642_p2)
}
   0x9   :  { %s5646_s22 = scalar_lea.vmem %s26_s14, 9216  ;;  %p5651_p4 = scmp.lt.s32.totalorder %s26_s14, %s26_s14 }
   0xa   :  { %p5647_p3 = scmp.ne.s32.totalorder %s26_s14, %s5646_s22  ;;  %p5652_p5 = scmp.lt.s32.totalorder %s5646_s22, %s5646_s22 }
   0xc   :  { %p5653_p6 = por %p5652_p5, %p5651_p4 }
   0xe   :  { %p5654_p7 = pnand %p5653_p6, %p5647_p3 }
  0x10   :  { %5657 = shalt.err (!%p5654_p7)
}
  0x11   :  { %s5709_s23 = smov 64   ;;  %s5710_s24 = smov 4  }
  0x12   :  { %31 = dma.hbm_to_vmem [thread:$0]  %s7817_s1, 9216, %s26_s14, [#allocation3], %s5709_s23, %s5709_s23, %s5710_s24  }
  0x13   :  { %s5711_s27 = smov [#allocation5]   ;;  %s5658_s11 = scalar_lea.hbm %s7821_s5, 1024 }
  0x14   :  { %s43_s28 = sshll.u32 %s5711_s27, 4  ;;  %p5659_p8 = scmp.ne.s32.totalorder %s7821_s5, %s5658_s11  ;;  %s44_s28 = int_to_ptr.vmem [resolvable:$true] %s43_s28 }
  0x15   :  { %p5662_p9 = scmp.lt.u32.totalorder %s5658_s11, %s7821_s5 }
  0x17   :  { %p5664_p10 = pnand %p5662_p9, %p5659_p8 }
  0x19   :  { %5667 = shalt.err (!%p5664_p10)
}
  0x1a   :  { %s5668_s17 = scalar_lea.vmem %s44_s28, 1024  ;;  %p5673_p12 = scmp.lt.s32.totalorder %s44_s28, %s44_s28 }
  0x1b   :  { %p5669_p11 = scmp.ne.s32.totalorder %s44_s28, %s5668_s17  ;;  %p5674_p13 = scmp.lt.s32.totalorder %s5668_s17, %s5668_s17 }
  0x1d   :  { %p5675_p0 = por %p5674_p13, %p5673_p12 }
  0x1f   :  { %p5676_p1 = pnand %p5675_p0, %p5669_p11 }
  0x21   :  { %5679 = shalt.err (!%p5676_p1)
}
  0x22   :  { %49 = dma.hbm_to_vmem [thread:$0]  %s7821_s5, 1024, %s44_s28, [#allocation6], %s5709_s23, %s5709_s23, %s5710_s24  }
  0x23   :  { %5702 = dma.done.wait [#allocation3], 9216  }
  0x24   :  { %5703 = vsyncadd [#allocation3], 4294958080 }
  0x25   :  { %5704 = dma.done.wait [#allocation6], 1024  }
  0x26   :  { %5705 = vsyncadd [#allocation6], 4294966272  ;;  %v5445_v0 = vld [vmem:[#allocation2 + $0x80] sm:$0xff]   ;;  %v5446_v1 = vld [vmem:[#allocation2 + $0x88] sm:$0xff]   ;;  %vm882_vm0 = vcmask 1042432   ;;  %vm883_vm1 = vcmask 1046532  }
  0x27   :  { %4828 = vmatprep.subr.bf16.mxu0 %v5445_v0  ;;  %v5447_v2 = vld [vmem:[#allocation2 + $0x90] sm:$0xff]   ;;  %vm5798_vm2 = vmor %vm882_vm0, %vm883_vm1  ;;  %v5448_v4 = vld [vmem:[#allocation2 + $0x98] sm:$0xff]   ;;  %vm91_vm3 = vsmask.f32 2304  ;;  %vm92_vm4 = vsmask.f32 6416 }
  0x28   :  { %4829 = vmatpush3.bf16.msra.mxu0 %v5445_v0  ;;  %v5805_v5 = vld [vmem:[%s7816_s0] sm:$0xf]  ;;  %v5810_v6 = vld [vmem:[%s7816_s0 + $0x4] sm:$0xf]  ;;  %v5815_v7 = vld [vmem:[%s7816_s0 + $0x8] sm:$0xf] }
  0x29   :  { %4830 = vmatprep.subr.bf16.mxu0 %v5446_v1  ;;  %v4255_v8 = vrot.slane %v5805_v5, 9  ;;  %v887_v9 = vrot.slane %v5810_v6, 5  ;;  %v890_v10 = vrot.slane %v5815_v7, 5  ;;  %v5449_v13 = vld [vmem:[#allocation2 + $0xa0] sm:$0xff]   ;;  %v5830_v16 = vld [vmem:[%s7816_s0 + $0xc] sm:$0xf]  ;;  %vm6178_vm5 = vmor %vm91_vm3, %vm92_vm4 }
  0x2a   :  { %v5450_v17 = vld [vmem:[#allocation2 + $0xa8] sm:$0xff]   ;;  %v5835_v18 = vld [vmem:[%s7816_s0 + $0x10] sm:$0xf]  ;;  %v5840_v19 = vld [vmem:[%s7816_s0 + $0x14] sm:$0xf]  ;;  %v893_v20 = vrot.slane %v5830_v16, 5 }
  0x2b   :  { %v888_v11 = vsel %vm5798_vm2, %v4255_v8, %v887_v9  ;;  %v889_v12 = vrot.slane %v887_v9, 4  ;;  %v5451_v21 = vld [vmem:[#allocation2 + $0xb0] sm:$0xff]   ;;  %v896_v22 = vrot.slane %v5835_v18, 5  ;;  %v899_v23 = vrot.slane %v5840_v19, 5  ;;  %v5848_v24 = vld [vmem:[%s7816_s0 + $0x18] sm:$0xf] }
  0x2c   :  { %4831 = vmatpush3.bf16.msra.mxu0 %v5446_v1  ;;  %v5452_v25 = vld [vmem:[#allocation2 + $0xb8] sm:$0xff]   ;;  %v892_v26 = vrot.slane %v890_v10, 4  ;;  %v895_v27 = vrot.slane %v893_v20, 4  ;;  %v5853_v29 = vld [vmem:[%s7816_s0 + $0x1c] sm:$0xf]  ;;  %v902_v32 = vrot.slane %v5848_v24, 5 }
  0x2d   :  { %4832 = vmatprep.subr.bf16.mxu0 %v5447_v2  ;;  %v5824_v14 = vsel %vm5798_vm2, %v889_v12, %v890_v10  ;;  %v898_v28 = vrot.slane %v896_v22, 4  ;;  %v5858_v30 = vld [vmem:[%s7816_s0 + $0x20] sm:$0xf]  ;;  %v901_v31 = vrot.slane %v899_v23, 4  ;;  %v5864_v33 = vld [vmem:[%s7816_s0 + $0x24] sm:$0xf] }
  0x2e   :  { %v4257_v15 = vcombine.low %v888_v11, %v5824_v14  ;;  %v905_v34 = vrot.slane %v5853_v29, 5  ;;  %v5869_v35 = vsel %vm5798_vm2, %v892_v26, %v893_v20  ;;  %v5873_v36 = vsel %vm5798_vm2, %v895_v27, %v896_v22  ;;  %v5453_v38 = vld [vmem:[#allocation2 + $0xc0] sm:$0xff]   ;;  %v5888_v42 = vld [vmem:[%s7816_s0 + $0x28] sm:$0xf]  ;;  %v5454_v45 = vld [vmem:[#allocation2 + $0xc8] sm:$0xff]  }
  0x2f   :  { %v911_v37 = vrot.slane %v5864_v33, 5  ;;  %v5878_v39 = vsel %vm5798_vm2, %v898_v28, %v899_v23  ;;  %v5882_v40 = vsel %vm5798_vm2, %v901_v31, %v902_v32  ;;  %v908_v41 = vrot.slane %v5858_v30, 5  ;;  %7935 = vst [vmem:[#allocation11_spill] sm:$0xff] %v5888_v42  ;;  %v5898_v51 = vld [vmem:[%s7816_s0 + $0x3c] sm:$0xf]  ;;  %v5455_v61 = vld [vmem:[#allocation2 + $0xd0] sm:$0xff]  }
  0x30   :  { %4833 = vmatpush3.bf16.msra.mxu0 %v5447_v2  ;;  %4844 = vmatprep.mubr.bf16.mxu0 %v4257_v15  ;;  %v904_v43 = vrot.slane %v902_v32, 4  ;;  %v4258_v44 = vcombine.low %v5869_v35, %v5873_v36  ;;  %v907_v46 = vrot.slane %v905_v34, 4  ;;  %v4259_v48 = vcombine.low %v5878_v39, %v5882_v40  ;;  %v5903_v52 = vld [vmem:[%s7816_s0 + $0x44] sm:$0xf]  ;;  %v5908_v53 = vld [vmem:[%s7816_s0 + $0x58] sm:$0xf] }
  0x31   :  { %4834 = vmatprep.subr.bf16.mxu0 %v5448_v4  ;;  %v910_v47 = vrot.slane %v908_v41, 4  ;;  %v913_v49 = vrot.slane %v911_v37, 4  ;;  %v914_v50 = vrot.slane %v5888_v42, 5  ;;  %v5913_v54 = vld [vmem:[%s7816_s0 + $0x5c] sm:$0xf]  ;;  %v7829_v57 = vrot.slane %v5908_v53, 5 }
  0x32   :  { %7936 = vst [vmem:[#allocation12_spill] sm:$0xff] %v5913_v54  ;;  %v5917_v55 = vsel %vm5798_vm2, %v904_v43, %v905_v34  ;;  %v5922_v56 = vld [vmem:[%s7816_s0 + $0x40] sm:$0xf]  ;;  %v942_v58 = vrot.slane %v5913_v54, 5  ;;  %v5933_v60 = vsel %vm5798_vm2, %v907_v46, %v908_v41  ;;  %v5948_v0 = vld [vmem:[%s7816_s0 + $0x38] sm:$0xf] }
  0x33   :  { %v5929_v59 = vld [vmem:[%s7816_s0 + $0x60] sm:$0xf]  ;;  %v5937_v62 = vsel %vm5798_vm2, %v910_v47, %v911_v37  ;;  %v5943_v63 = vsel %vm5798_vm2, %v913_v49, %v914_v50  ;;  %7938 = vst [vmem:[#allocation14_spill] sm:$0xff] %v5948_v0  ;;  %v918_v1 = vrot.slane %v5898_v51, 5  ;;  %v924_v2 = vrot.slane %v5903_v52, 5  ;;  %v5474_v37 = vld [vmem:[#allocation2 + $0x40] sm:$0xff]  }
  0x34   :  { %4835 = vmatpush3.bf16.msra.mxu0 %v5448_v4  ;;  %7937 = vst [vmem:[#allocation13_spill] sm:$0xff] %v5929_v59  ;;  %v941_v4 = vrot.slane %v7829_v57, 4  ;;  %v944_v8 = vrot.slane %v942_v58, 4  ;;  %v945_v9 = vrot.slane %v5929_v59, 5  ;;  %v921_v10 = vrot.slane %v5922_v56, 5  ;;  %4756 = vmatprep.subr.bf16.mxu1 %v5474_v37 }
  0x35   :  { %4836 = vmatprep.subr.bf16.mxu0 %v5449_v13  ;;  %v5959_v11 = vld [vmem:[%s7816_s0 + $0x48] sm:$0xf]  ;;  %v4260_v12 = vcombine.low %v5917_v55, %v5933_v60  ;;  %v4261_v20 = vcombine.low %v5937_v62, %v5943_v63  ;;  %v920_v22 = vrot.slane %v918_v1, 4  ;;  %v926_v27 = vrot.slane %v924_v2, 4  ;;  %4757 = vmatpush3.bf16.msra.mxu1 %v5474_v37 }
  0x36   :  { %v5970_v15 = vsel %vm5798_vm2, %v941_v4, %v942_v58  ;;  %v923_v26 = vrot.slane %v921_v10, 4  ;;  %v927_v28 = vrot.slane %v5959_v11, 5  ;;  %v5476_v58 = vld [vmem:[#allocation2 + $0x48] sm:$0xff]   ;;  %v7828_v4 = vshll.u32 %v5810_v6, 16  ;;  %v5460_v37 = vld [vmem:[#allocation2 + $0xf8] sm:$0xff]  }
  0x37   :  { %v5988_v32 = vsel %vm5798_vm2, %v920_v22, %v921_v10  ;;  %4758 = vmatprep.subr.bf16.mxu1 %v5476_v58  ;;  %v5459_v22 = vld [vmem:[#allocation2 + $0xf0] sm:$0xff]   ;;  %v6062_v23 = vshll.u32 %v5830_v16, 16  ;;  %vm326_vm6 = vsmask.f32 3328  ;;  %vm327_vm7 = vsmask.f32 7440 }
  0x38   :  { %4837 = vmatpush3.bf16.msra.mxu0 %v5449_v13  ;;  %v5966_v13 = vld [vmem:[%s7816_s0 + $0x4c] sm:$0xf]  ;;  %v5993_v41 = vsel %vm5798_vm2, %v923_v26, %v924_v2  ;;  %v5997_v43 = vsel %vm5798_vm2, %v926_v27, %v927_v28  ;;  %v929_v47 = vrot.slane %v927_v28, 4  ;;  %v7827_v2 = vshrl.u32 %v5810_v6, 16  ;;  %v6032_v26 = vld [vmem:[%s7816_s0 + $0x64] sm:$0xf]  ;;  %vm6293_vm8 = vmor %vm326_vm6, %vm327_vm7 }
  0x39   :  { %4838 = vmatprep.subr.bf16.mxu0 %v5450_v17  ;;  %v930_v34 = vrot.slane %v5966_v13, 5  ;;  %v4263_v46 = vcombine.low %v5993_v41, %v5997_v43  ;;  %4759 = vmatpush3.bf16.msra.mxu1 %v5476_v58  ;;  %7940 = vst [vmem:[#allocation16_spill] sm:$0xff] %v6032_v26  ;;  %v4275_v27 = vcombine.low %v5824_v14, %v5869_v35  ;;  %v6037_v28 = vshrl.u32 %v5815_v7, 16 }
  0x3a   :  { %v1187_v14 = vrot.slane %v914_v50, 4  ;;  %7944 = vst [vmem:[#allocation20_spill] sm:$0xff] %v6062_v23  ;;  %v4276_v50 = vcombine.low %v5873_v36, %v5878_v39  ;;  %v6072_v58 = vshrl.u32 %v5835_v18, 16  ;;  %v6079_v36 = vshll.u32 %v5835_v18, 16 }
  0x3b   :  { %v6017_v10 = vsel %vm5798_vm2, %v929_v47, %v930_v34  ;;  %7941 = vst [vmem:[#allocation17_spill] sm:$0xff] %v6037_v28  ;;  %v6082_v39 = vshrl.u32 %v5840_v19, 16  ;;  %vm1651_vm9 = vcmask 1041408   ;;  %vm1652_vm10 = vcmask 1045508  }
  0x3c   :  { %4839 = vmatpush3.bf16.msra.mxu0 %v5450_v17  ;;  %v5976_v17 = vsel %vm5798_vm2, %v944_v8, %v945_v9  ;;  %v5477_v8 = vld [vmem:[#allocation2 + $0x50] sm:$0xff]   ;;  %7945 = vst [vmem:[#allocation21_spill] sm:$0xff] %v6072_v58  ;;  %7946 = vst [vmem:[#allocation22_spill] sm:$0xff] %v6079_v36  ;;  %vm2182_vm12 = vsmask.f32 1280  ;;  %vm2539_vm15 = vcmask 1040384  }
  0x3d   :  { %4840 = vmatprep.subr.bf16.mxu0 %v5451_v21  ;;  %4760 = vmatprep.subr.bf16.mxu1 %v5477_v8  ;;  %7947 = vst [vmem:[#allocation23_spill] sm:$0xff] %v6082_v39  ;;  %vm6514_vm11 = vmor %vm1651_vm9, %vm1652_vm10  ;;  %vm2183_vm13 = vsmask.f32 5392  ;;  %vm2540_vm0 = vcmask 1044484  }
  0x3e   :  { %4761 = vmatpush3.bf16.msra.mxu1 %v5477_v8  ;;  %v106_v8 = vrot.slane %v6037_v28, 5  ;;  %vm6847_vm14 = vmor %vm2182_vm12, %vm2183_vm13 }
  0x3f   :  { %vm6971_vm1 = vmor %vm2539_vm15, %vm2540_vm0 }
  0x40   :  { %4841 = vmatpush3.bf16.msra.mxu0 %v5451_v21  ;;  %v4256_v21 = vrot.slane %v5948_v0, 9  ;;  %v6115_v0 = vshrl.u32 %v5864_v33, 16 }
  0x41   :  { %4842 = vmatprep.subr.bf16.mxu0 %v5452_v25 }
  0x42   :  { %v919_v31 = vsel %vm5798_vm2, %v4256_v21, %v918_v1  ;;  %v6011_v1 = vld [vmem:[%s7816_s0 + $0x54] sm:$0xf]  ;;  %v5479_v21 = vld [vmem:[#allocation2 + $0x58] sm:$0xff]   ;;  %7955 = vst [vmem:[#allocation31_spill] sm:$0xff] %v6115_v0 }
  0x43   :  { %4762 = vmatprep.subr.bf16.mxu1 %v5479_v21 }
  0x44   :  { %4843 = vmatpush3.bf16.msra.mxu0 %v5452_v25  ;;  %v5456_v25 = vld [vmem:[#allocation2 + $0xd8] sm:$0xff]   ;;  %4763 = vmatpush3.bf16.msra.mxu1 %v5479_v21  ;;  %v6089_v21 = vshrl.u32 %v5848_v24, 16 }
  0x45   :  { %4864 = vmatprep.subr.bf16.mxu0 %v5453_v38 }
  0x46   :  { %7949 = vst [vmem:[#allocation25_spill] sm:$0xff] %v6089_v21 }
  0x47   :  { %4845 = vmatmul.mubr.bf16.vlgmr.msra.gmra.mrb[0].mxu0 %v4258_v44  ;;  %v6002_v44 = vld [vmem:[%s7816_s0 + $0x50] sm:$0xf] }
  0x48   :  { %4865 = vmatpush3.bf16.msra.mxu0 %v5453_v38  ;;  %4848 = vmatprep.mubr.bf16.mxu0 %v4259_v48  ;;  %v5457_v38 = vld [vmem:[#allocation2 + $0xe0] sm:$0xff]   ;;  %v932_v48 = vrot.slane %v930_v34, 4  ;;  %v933_v49 = vrot.slane %v6002_v44, 5 }
  0x49   :  { %4866 = vmatprep.subr.bf16.mxu0 %v5454_v45 }
  0x4a   :  { %v935_v35 = vrot.slane %v933_v49, 4 }
  0x4c   :  { %4867 = vmatpush3.bf16.msra.mxu0 %v5454_v45  ;;  %v4262_v45 = vcombine.low %v919_v31, %v5988_v32  ;;  %v6040_v31 = vshll.u32 %v5815_v7, 16 }
  0x4d   :  { %4868 = vmatprep.subr.bf16.mxu0 %v5455_v61 }
  0x4e   :  { %7942 = vst [vmem:[#allocation18_spill] sm:$0xff] %v6040_v31 }
  0x4f   :  { %4849 = vmatmul.mubr.bf16.gmra.mrb[4].mxu0 %v4260_v12  ;;  %v6021_v12 = vsel %vm5798_vm2, %v932_v48, %v933_v49  ;;  %v6058_v48 = vrot.slane %v945_v9, 4  ;;  %v109_v49 = vrot.slane %v6040_v31, 6 }
  0x50   :  { %4869 = vmatpush3.bf16.msra.mxu0 %v5455_v61  ;;  %4852 = vmatprep.mubr.bf16.mxu0 %v4261_v20  ;;  %v5458_v61 = vld [vmem:[#allocation2 + $0xe8] sm:$0xff]   ;;  %v6026_v20 = vld [vmem:[%s7816_s0 + $0x2c] sm:$0xf]  ;;  %v4264_v34 = vcombine.low %v6017_v10, %v6021_v12 }
  0x51   :  { %4870 = vmatprep.subr.bf16.mxu0 %v5456_v25  ;;  %7939 = vst [vmem:[#allocation15_spill] sm:$0xff] %v6026_v20  ;;  %v1188_v7 = vrot.slane %v6026_v20, 5 }
  0x54   :  { %4871 = vmatpush3.bf16.msra.mxu0 %v5456_v25  ;;  %v936_v25 = vrot.slane %v6011_v1, 5 }
  0x55   :  { %4872 = vmatprep.subr.bf16.mxu0 %v5457_v38 }
  0x56   :  { %v6054_v47 = vrot.slane %v936_v25, 4  ;;  %v6099_v18 = vsel %vm5798_vm2, %v935_v35, %v936_v25  ;;  %v6118_v25 = vshll.u32 %v5864_v33, 16  ;;  %v129_v35 = vrot.slane %v6079_v36, 6 }
  0x57   :  { %4853 = vmatmul.mubr.bf16.gmra.mrb[8].mxu0 %v4262_v45  ;;  %v100_v45 = vrot.slane %v7828_v4, 6  ;;  %v4277_v4 = vcombine.low %v5882_v40, %v5917_v55  ;;  %v6085_v40 = vshll.u32 %v5840_v19, 16  ;;  %v5483_v55 = vld [vmem:[#allocation2 + $0x68] sm:$0xff]   ;;  %v6101_v19 = vor.u32 %v109_v49, %v106_v8 }
  0x58   :  { %4873 = vmatpush3.bf16.msra.mxu0 %v5457_v38  ;;  %4856 = vmatprep.mubr.bf16.mxu0 %v4263_v46  ;;  %v97_v38 = vrot.slane %v7827_v2, 5  ;;  %v6049_v46 = vshrl.u32 %v5830_v16, 16  ;;  %v5461_v2 = vld [vmem:[#allocation2 + $0x100] sm:$0xff]   ;;  %v6076_v16 = vsel %vm5798_vm2, %v1187_v14, %v1188_v7  ;;  %v5462_v14 = vld [vmem:[#allocation2 + $0x108] sm:$0xff]   ;;  %7956 = vst [vmem:[#allocation32_spill] sm:$0xff] %v6118_v25  ;;  %v136_v8 = vrot.slane %v6082_v39, 5 }
  0x59   :  { %4874 = vmatprep.subr.bf16.mxu0 %v5458_v61  ;;  %7948 = vst [vmem:[#allocation24_spill] sm:$0xff] %v6085_v40  ;;  %v139_v49 = vrot.slane %v6085_v40, 6  ;;  %v179_v33 = vrot.slane %v6118_v25, 6 }
  0x5a   :  { %7943 = vst [vmem:[#allocation19_spill] sm:$0xff] %v6049_v46  ;;  %v101_v9 = vor.u32 %v100_v45, %v97_v38  ;;  %v116_v57 = vrot.slane %v6049_v46, 5  ;;  %v6104_v38 = vshll.u32 %v5853_v29, 16  ;;  %v6107_v45 = vshrl.u32 %v5858_v30, 16 }
  0x5c   :  { %4875 = vmatpush3.bf16.msra.mxu0 %v5458_v61  ;;  %v5481_v61 = vld [vmem:[#allocation2 + $0x60] sm:$0xff]   ;;  %7952 = vst [vmem:[#allocation28_spill] sm:$0xff] %v6104_v38  ;;  %7953 = vst [vmem:[#allocation29_spill] sm:$0xff] %v6107_v45  ;;  %v6109_v7 = vrot.slane %v101_v9, 4  ;;  %v146_v9 = vrot.slane %v6089_v21, 5  ;;  %v159_v39 = vrot.slane %v6104_v38, 6 }
  0x5d   :  { %4876 = vmatprep.subr.bf16.mxu0 %v5459_v22  ;;  %4764 = vmatprep.subr.bf16.mxu1 %v5481_v61  ;;  %v166_v40 = vrot.slane %v6107_v45, 5 }
  0x5e   :  { %4765 = vmatpush3.bf16.msra.mxu1 %v5481_v61  ;;  %v5485_v61 = vld [vmem:[#allocation2 + $0x70] sm:$0xff]   ;;  %v111_v3 = vsel %vm6178_vm5, %v6109_v7, %v6101_v19 }
  0x5f   :  { %4857 = vmatmul.mubr.bf16.gmra.mrb[12].mxu0 %v4264_v34  ;;  %v119_v34 = vrot.slane %v6062_v23, 6  ;;  %4766 = vmatprep.subr.bf16.mxu1 %v5483_v55 }
  0x60   :  { %4877 = vmatpush3.bf16.msra.mxu0 %v5459_v22  ;;  %4880 = vmatprep.mubr.bf16.mxu0 %v4275_v27  ;;  %v6092_v22 = vshll.u32 %v5848_v24, 16  ;;  %v6095_v27 = vshrl.u32 %v5853_v29, 16  ;;  %v6112_v24 = vshll.u32 %v5858_v30, 16  ;;  %v126_v29 = vrot.slane %v6072_v58, 5  ;;  %v5463_v58 = vld [vmem:[#allocation2 + $0x110] sm:$0xff]  }
  0x61   :  { %4878 = vmatprep.subr.bf16.mxu0 %v5460_v37  ;;  %v6124_v30 = vor.u32 %v119_v34, %v116_v57  ;;  %v176_v34 = vrot.slane %v6115_v0, 5  ;;  %v4279_v0 = vcombine.low %v5943_v63, %v6076_v16  ;;  %v7862_v63 = vshll.u32 %v5898_v51, 16 }
  0x62   :  { %7950 = vst [vmem:[#allocation26_spill] sm:$0xff] %v6092_v22  ;;  %7951 = vst [vmem:[#allocation27_spill] sm:$0xff] %v6095_v27  ;;  %v149_v59 = vrot.slane %v6092_v22, 6  ;;  %v156_v54 = vrot.slane %v6095_v27, 5  ;;  %v169_v57 = vrot.slane %v6112_v24, 6  ;;  %4767 = vmatpush3.bf16.msra.mxu1 %v5483_v55  ;;  %v4278_v27 = vcombine.low %v5933_v60, %v5937_v62 }
  0x63   :  { %7954 = vst [vmem:[#allocation30_spill] sm:$0xff] %v6112_v24  ;;  %v5486_v24 = vld [vmem:[#allocation2 + $0x78] sm:$0xff]   ;;  %4768 = vmatprep.subr.bf16.mxu1 %v5485_v61  ;;  %v112_v62 = vrot.slane %v6101_v19, 4  ;;  %v130_v38 = vor.u32 %v129_v35, %v126_v29  ;;  %v122_v45 = vrot.slane %v6124_v30, 4  ;;  %v7859_v22 = vshrl.u32 %v5898_v51, 16 }
  0x64   :  { %4879 = vmatpush3.bf16.msra.mxu0 %v5460_v37  ;;  %v6129_v37 = vshll.u32 %v5888_v42, 16  ;;  %v160_v21 = vor.u32 %v159_v39, %v156_v54  ;;  %v170_v25 = vor.u32 %v169_v57, %v166_v40  ;;  %v7958_v16 = vrot.slane %v5908_v53, 5  ;;  %v5464_v39 = vld [vmem:[#allocation2 + $0x118] sm:$0xff]  }
  0x65   :  { %4900 = vmatprep.subr.bf16.mxu0 %v5461_v2  ;;  %v6168_v54 = vshll.u32 %v5922_v56, 16  ;;  %v180_v40 = vor.u32 %v179_v33, %v176_v34 }
  0x66   :  { %v189_v60 = vrot.slane %v6129_v37, 6  ;;  %4769 = vmatpush3.bf16.msra.mxu1 %v5485_v61  ;;  %v172_v33 = vrot.slane %v170_v25, 4 }
  0x67   :  { %4881 = vmatmul.mubr.bf16.vlgmr.msra.gmra.mrb[0].mxu0 %v4276_v50  ;;  %v150_v50 = vor.u32 %v149_v59, %v146_v9  ;;  %v6165_v59 = vshrl.u32 %v5922_v56, 16  ;;  %4770 = vmatprep.subr.bf16.mxu1 %v5486_v24  ;;  %v7960_v9 = vshll.u32 %v6026_v20, 16  ;;  %v182_v34 = vrot.slane %v180_v40, 4 }
  0x68   :  { %4901 = vmatpush3.bf16.msra.mxu0 %v5461_v2  ;;  %4884 = vmatprep.mubr.bf16.mxu0 %v4277_v4  ;;  %v7957_v4 = vshrl.u32 %v5888_v42, 16  ;;  %v140_v2 = vor.u32 %v139_v49, %v136_v8  ;;  %v132_v8 = vrot.slane %v130_v38, 4 }
  0x69   :  { %4902 = vmatprep.subr.bf16.mxu0 %v5462_v14  ;;  %v199_v61 = vrot.slane %v7960_v9, 6  ;;  %v152_v57 = vrot.slane %v150_v50, 4  ;;  %v214_v42 = vrot.slane %v6165_v59, 5 }
  0x6a   :  { %v186_v55 = vrot.slane %v7957_v4, 5  ;;  %v6162_v4 = vsel %vm5798_vm2, %v6054_v47, %v7958_v16  ;;  %v6174_v47 = vld [vmem:[#allocation2] sm:$0xff]   ;;  %v142_v49 = vrot.slane %v140_v2, 4  ;;  %v162_v16 = vrot.slane %v160_v21, 4  ;;  %4771 = vmatpush3.bf16.msra.mxu1 %v5486_v24 }
  0x6b   :  { %4792 = vmatprep.subr.bf16.mxu1 %v6174_v47  ;;  %v161_v19 = vsel %vm6178_vm5, %v152_v57, %v160_v21  ;;  %v6236_v21 = vshrl.u32 %v5966_v13, 16  ;;  %v7967_v57 = vcombine.low %v5997_v43, %v6017_v10 }
  0x6c   :  { %4903 = vmatpush3.bf16.msra.mxu0 %v5462_v14  ;;  %v190_v29 = vor.u32 %v189_v60, %v186_v55  ;;  %v7959_v14 = vshrl.u32 %v6026_v20, 16  ;;  %v205_v55 = vrot.slane %v7859_v22, 5  ;;  %v208_v60 = vrot.slane %v7862_v63, 6  ;;  %v5465_v20 = vld [vmem:[#allocation2 + $0x120] sm:$0xff]  }
  0x6d   :  { %4904 = vmatprep.subr.bf16.mxu0 %v5463_v58  ;;  %v217_v22 = vrot.slane %v6168_v54, 6  ;;  %v171_v7 = vsel %vm6178_vm5, %v162_v16, %v170_v25 }
  0x6e   :  { %v196_v35 = vrot.slane %v7959_v14, 5  ;;  %v7963_v14 = vrot.slane %v6032_v26, 5  ;;  %v192_v63 = vrot.slane %v190_v29, 4 }
  0x6f   :  { %4885 = vmatmul.mubr.bf16.gmra.mrb[4].mxu0 %v4278_v27  ;;  %v151_v27 = vsel %vm6178_vm5, %v142_v49, %v150_v50 }
  0x70   :  { %4905 = vmatpush3.bf16.msra.mxu0 %v5463_v58  ;;  %4888 = vmatprep.mubr.bf16.mxu0 %v4279_v0  ;;  %v6193_v9 = vsel %vm5798_vm2, %v6058_v48, %v7963_v14  ;;  %v200_v24 = vor.u32 %v199_v61, %v196_v35  ;;  %v6198_v0 = vshrl.u32 %v5903_v52, 16  ;;  %v6201_v58 = vshll.u32 %v5903_v52, 16 }
  0x71   :  { %4906 = vmatprep.subr.bf16.mxu0 %v5464_v39  ;;  %v121_v48 = vsel %vm6178_vm5, %v112_v62, %v6124_v30  ;;  %v6212_v14 = vshrl.u32 %v5959_v11, 16  ;;  %v6215_v35 = vshll.u32 %v5959_v11, 16  ;;  %v131_v52 = vsel %vm6178_vm5, %v122_v45, %v130_v38  ;;  %v5466_v38 = vld [vmem:[#allocation2 + $0x128] sm:$0xff]  }
  0x72   :  { %v141_v61 = vsel %vm6178_vm5, %v132_v8, %v140_v2  ;;  %v181_v11 = vsel %vm6178_vm5, %v172_v33, %v180_v40  ;;  %v209_v30 = vor.u32 %v208_v60, %v205_v55  ;;  %v6229_v62 = vor.u32 %v217_v22, %v214_v42 }
  0x73   :  { %v191_v45 = vsel %vm6178_vm5, %v182_v34, %v190_v29  ;;  %v201_v50 = vsel %vm6178_vm5, %v192_v63, %v200_v24  ;;  %v6239_v2 = vshll.u32 %v5966_v13, 16  ;;  %v224_v25 = vrot.slane %v6198_v0, 5  ;;  %v5467_v29 = vld [vmem:[#allocation2 + $0x130] sm:$0xff]  }
  0x74   :  { %4907 = vmatpush3.bf16.msra.mxu0 %v5464_v39  ;;  %v227_v39 = vrot.slane %v6201_v58, 6  ;;  %v234_v42 = vrot.slane %v6212_v14, 5  ;;  %v237_v22 = vrot.slane %v6215_v35, 6  ;;  %v7964_v40 = vcombine.low %v5988_v32, %v5993_v41 }
  0x75   :  { %4908 = vmatprep.subr.bf16.mxu0 %v5465_v20  ;;  %v6250_v8 = vcombine.low %v111_v3, %v121_v48  ;;  %v6252_v13 = vcombine.low %v131_v52, %v141_v61  ;;  %v6254_v49 = vcombine.low %v151_v27, %v161_v19  ;;  %v6259_v16 = vcombine.low %v171_v7, %v181_v11  ;;  %v5468_v27 = vld [vmem:[#allocation2 + $0x138] sm:$0xff]  }
  0x76   :  { %v6261_v33 = vcombine.low %v191_v45, %v201_v50  ;;  %v6263_v32 = vrot.slane %v209_v30, 4  ;;  %v220_v41 = vrot.slane %v6229_v62, 4  ;;  %v244_v34 = vrot.slane %v6236_v21, 5 }
  0x77   :  { %4889 = vmatmul.mubr.bf16.gmra.mrb[8].mxu0 %v7964_v40  ;;  %7965 = vst [vmem:[#allocation33_spill] sm:$0xff] %v6252_v13  ;;  %7966 = vst [vmem:[#allocation34_spill] sm:$0xff] %v6254_v49  ;;  %v247_v55 = vrot.slane %v6239_v2, 6  ;;  %v6269_v60 = vshrl.u32 %v6002_v44, 16  ;;  %v228_v43 = vor.u32 %v227_v39, %v224_v25  ;;  %v238_v10 = vor.u32 %v237_v22, %v234_v42 }
  0x78   :  { %4909 = vmatpush3.bf16.msra.mxu0 %v5465_v20  ;;  %4892 = vmatprep.mubr.bf16.mxu0 %v7967_v57  ;;  %7968 = vst [vmem:[#allocation35_spill] sm:$0xff] %v6259_v16  ;;  %7969 = vst [vmem:[#allocation36_spill] sm:$0xff] %v6261_v33  ;;  %v6272_v20 = vshll.u32 %v6002_v44, 16  ;;  %v330_v24 = vshrl.u32 %v5805_v5, 16  ;;  %v333_v3 = vshll.u32 %v5805_v5, 16  ;;  %v7970_v48 = vshll.u32 %v5810_v6, 16 }
  0x79   :  { %4910 = vmatprep.subr.bf16.mxu0 %v5466_v38  ;;  %v7971_v61 = vshrl.u32 %v5810_v6, 16  ;;  %v6281_v7 = vshrl.u32 %v6011_v1, 16  ;;  %v343_v44 = vrot.slane %v6040_v31, 5  ;;  %v345_v11 = vrot.slane %v6037_v28, 4 }
  0x7a   :  { %v338_v52 = vrot.slane %v7970_v48, 5  ;;  %v348_v30 = vrot.slane %v6062_v23, 5  ;;  %v332_v45 = vrot.slane %v330_v24, 4  ;;  %v335_v50 = vrot.slane %v333_v3, 5 }
  0x7b   :  { %v340_v19 = vrot.slane %v7971_v61, 4  ;;  %7972 = vst [vmem:[#allocation37_spill] sm:$0xff] %v6281_v7  ;;  %v230_v25 = vrot.slane %v228_v43, 4  ;;  %v346_v42 = vor.u32 %v345_v11, %v343_v44  ;;  %v350_v22 = vrot.slane %v6049_v46, 4  ;;  %v7989_v46 = vld [vmem:[#allocation13_spill] sm:$0xff] }
  0x7c   :  { %4911 = vmatpush3.bf16.msra.mxu0 %v5466_v38  ;;  %v254_v38 = vrot.slane %v6269_v60, 5  ;;  %v7975_v40 = vcombine.low %v6021_v12, %v6099_v18  ;;  %v6303_v57 = vsel %vm6178_vm5, %v220_v41, %v228_v43  ;;  %v257_v24 = vrot.slane %v6272_v20, 6 }
  0x7d   :  { %4912 = vmatprep.subr.bf16.mxu0 %v5467_v29  ;;  %v341_v6 = vor.u32 %v340_v19, %v338_v52  ;;  %v336_v3 = vor.u32 %v335_v50, %v332_v45  ;;  %v7976_v61 = vcombine.low %v6162_v4, %v5970_v15  ;;  %v6309_v19 = vld [vmem:[#allocation2 + $0x140] sm:$0xff]   ;;  %v240_v11 = vrot.slane %v238_v10, 4 }
  0x7e   :  { %v347_v5 = vrot.slane %v346_v42, 4  ;;  %v351_v63 = vor.u32 %v350_v22, %v348_v30  ;;  %v353_v12 = vrot.slane %v6079_v36, 5  ;;  %v264_v41 = vrot.slane %v6281_v7, 5 }
  0x7f   :  { %4893 = vmatmul.mubr.bf16.gmra.mrb[12].mxu0 %v7975_v40  ;;  %v342_v48 = vrot.slane %v341_v6, 4  ;;  %v6312_v40 = vor.u32 %v247_v55, %v244_v34  ;;  %v337_v43 = vrot.slane %v336_v3, 4  ;;  %v239_v50 = vsel %vm6178_vm5, %v230_v25, %v238_v10  ;;  %v7978_v3 = vld [vmem:[#allocation21_spill] sm:$0xff] }
  0x80   :  { %4896 = vmatprep.mubr.bf16.mxu0 %v7976_v61  ;;  %4913 = vmatpush3.bf16.msra.mxu0 %v5467_v29  ;;  %v6320_v29 = vshll.u32 %v6011_v1, 16  ;;  %v349_v6 = vsel %vm6293_vm8, %v347_v5, %v348_v30  ;;  %v352_v42 = vrot.slane %v351_v63, 4  ;;  %v6324_v22 = vor.u32 %v257_v24, %v254_v38  ;;  %v7980_v30 = vld [vmem:[#allocation24_spill] sm:$0xff]  ;;  %v7981_v24 = vld [vmem:[#allocation23_spill] sm:$0xff] }
  0x81   :  { %4914 = vmatprep.subr.bf16.mxu0 %v5468_v27  ;;  %v344_v45 = vsel %vm6293_vm8, %v342_v48, %v343_v44  ;;  %v6327_v34 = vshrl.u32 %v5908_v53, 16  ;;  %v339_v55 = vsel %vm6293_vm8, %v337_v43, %v338_v52  ;;  %v355_v44 = vrot.slane %v7978_v3, 4  ;;  %v7982_v61 = vld [vmem:[#allocation12_spill] sm:$0xff]  ;;  %v7983_v43 = vld [vmem:[#allocation26_spill] sm:$0xff] }
  0x82   :  { %7977 = vst [vmem:[#allocation38_spill] sm:$0xff] %v6320_v29  ;;  %v6333_v10 = vshll.u32 %v5908_v53, 16  ;;  %v4219_v1 = vcombine.low %v339_v55, %v344_v45  ;;  %v354_v25 = vsel %vm6293_vm8, %v352_v42, %v353_v12  ;;  %v358_v63 = vrot.slane %v7980_v30, 5  ;;  %v7984_v42 = vld [vmem:[#allocation25_spill] sm:$0xff]  ;;  %v7985_v30 = vld [vmem:[#allocation28_spill] sm:$0xff] }
  0x83   :  { %v249_v5 = vsel %vm6178_vm5, %v240_v11, %v6312_v40  ;;  %v4220_v38 = vcombine.low %v349_v6, %v354_v25  ;;  %v356_v52 = vor.u32 %v355_v44, %v353_v12  ;;  %v360_v48 = vrot.slane %v7981_v24, 4  ;;  %v7987_v44 = vld [vmem:[#allocation27_spill] sm:$0xff] }
  0x84   :  { %4915 = vmatpush3.bf16.msra.mxu0 %v5468_v27  ;;  %7979 = vst [vmem:[#allocation39_spill] sm:$0xff] %v6333_v10  ;;  %v5492_v27 = vld [vmem:[#allocation2 + $0x8] sm:$0xff]   ;;  %v6344_v53 = vshrl.u32 %v7982_v61, 16  ;;  %4772 = vmatprep.mubr.bf16.mxu1 %v4219_v1  ;;  %v363_v45 = vrot.slane %v7983_v43, 5  ;;  %v365_v55 = vrot.slane %v7984_v42, 4  ;;  %v368_v36 = vrot.slane %v7985_v30, 5 }
  0x85   :  { %4936 = vmatprep.subr.bf16.mxu0 %v6309_v19  ;;  %v7986_v3 = vcombine.low %v5976_v17, %v6193_v9  ;;  %4773 = vmatmul.mubr.bf16.vlgmr.msra.gmra.mrb[0].mxu1 %v4220_v38  ;;  %v357_v12 = vrot.slane %v356_v52, 4  ;;  %v361_v6 = vor.u32 %v360_v48, %v358_v63  ;;  %v370_v25 = vrot.slane %v7987_v44, 4  ;;  %v5493_v9 = vld [vmem:[#allocation2 + $0x10] sm:$0xff]   ;;  %v7988_v48 = vld [vmem:[#allocation30_spill] sm:$0xff] }
  0x86   :  { %v267_v43 = vrot.slane %v6320_v29, 6  ;;  %v274_v42 = vrot.slane %v6327_v34, 5  ;;  %v366_v30 = vor.u32 %v365_v55, %v363_v45  ;;  %4793 = vmatpush3.bf16.msra.mxu1 %v6174_v47  ;;  %v373_v11 = vrot.slane %v7988_v48, 5  ;;  %v5470_v55 = vld [vmem:[#allocation2 + $0x148] sm:$0xff]  }
  0x87   :  { %4897 = vmatmul.mubr.bf16.gmra.mrb[16].mxu0 %v7986_v3  ;;  %v359_v3 = vsel %vm6293_vm8, %v357_v12, %v358_v63  ;;  %v362_v38 = vrot.slane %v361_v6, 4  ;;  %v371_v52 = vor.u32 %v370_v25, %v368_v36  ;;  %4794 = vmatprep.subr.bf16.mxu1 %v5492_v27  ;;  %v277_v44 = vrot.slane %v6333_v10, 6 }
  0x88   :  { %4916 = vmatprep.mubr.bf16.mxu0 %v6250_v8  ;;  %v6365_v24 = vshll.u32 %v7982_v61, 16  ;;  %v367_v23 = vrot.slane %v366_v30, 4  ;;  %v6369_v31 = vshll.u32 %v7989_v46, 16  ;;  %v7990_v6 = vsel %vm6178_vm5, %v6263_v32, %v6229_v62  ;;  %v7992_v32 = vld [vmem:[#allocation32_spill] sm:$0xff] }
  0x89   :  { %v364_v63 = vsel %vm6293_vm8, %v362_v38, %v363_v45  ;;  %v372_v12 = vrot.slane %v371_v52, 4  ;;  %v6379_v25 = vcombine.low %v7990_v6, %v6303_v57  ;;  %v6381_v61 = vcombine.low %v239_v50, %v249_v5  ;;  %v7991_v38 = vld [vmem:[#allocation29_spill] sm:$0xff]  ;;  %v7993_v50 = vld [vmem:[#allocation31_spill] sm:$0xff] }
  0x8a   :  { %v4221_v30 = vcombine.low %v359_v3, %v364_v63  ;;  %v369_v1 = vsel %vm6293_vm8, %v367_v23, %v368_v36  ;;  %4795 = vmatpush3.bf16.msra.mxu1 %v5492_v27  ;;  %v268_v47 = vor.u32 %v267_v43, %v264_v41  ;;  %v375_v52 = vrot.slane %v7991_v38, 4  ;;  %v7994_v41 = vld [vmem:[#allocation14_spill] sm:$0xff]  ;;  %v5495_v3 = vld [vmem:[#allocation2 + $0x18] sm:$0xff]  }
  0x8b   :  { %v374_v45 = vsel %vm6293_vm8, %v372_v12, %v373_v11  ;;  %4796 = vmatprep.subr.bf16.mxu1 %v5493_v9  ;;  %v6389_v28 = vor.u32 %v277_v44, %v274_v42  ;;  %v378_v57 = vrot.slane %v7992_v32, 5  ;;  %v380_v5 = vrot.slane %v7993_v50, 4  ;;  %v5471_v42 = vld [vmem:[#allocation2 + $0x150] sm:$0xff]  }
  0x8c   :  { %4776 = vmatprep.mubr.bf16.mxu1 %v4221_v30  ;;  %v4222_v62 = vcombine.low %v369_v1, %v374_v45  ;;  %v270_v23 = vrot.slane %v268_v47, 4  ;;  %v376_v36 = vor.u32 %v375_v52, %v373_v11  ;;  %v386_v27 = vshrl.u32 %v7994_v41, 16 }
  0x8d   :  { %v389_v43 = vshll.u32 %v7994_v41, 16  ;;  %v381_v44 = vor.u32 %v380_v5, %v378_v57  ;;  %v383_v1 = vrot.slane %v6129_v37, 5  ;;  %v7995_v63 = vshll.u32 %v5898_v51, 16 }
  0x8e   :  { %v7996_v6 = vshrl.u32 %v5898_v51, 16  ;;  %4777 = vmatmul.mubr.bf16.gmra.mrb[4].mxu1 %v4222_v62  ;;  %v377_v45 = vrot.slane %v376_v36, 4  ;;  %v388_v52 = vrot.slane %v386_v27, 4  ;;  %v399_v5 = vrot.slane %v6168_v54, 5 }
  0x8f   :  { %4917 = vmatmul.mubr.bf16.vlgmr.msra.gmra.mrb[0].mxu0 %v6252_v13  ;;  %v394_v12 = vrot.slane %v7995_v63, 5  ;;  %v391_v41 = vrot.slane %v389_v43, 5  ;;  %v382_v48 = vrot.slane %v381_v44, 4  ;;  %4797 = vmatpush3.bf16.msra.mxu1 %v5493_v9  ;;  %v5472_v13 = vld [vmem:[#allocation2 + $0x158] sm:$0xff]   ;;  %v7997_v51 = vshrl.u32 %v7989_v46, 16  ;;  %v5499_v63 = vld [vmem:[#allocation2 + $0x28] sm:$0xff]  }
  0x90   :  { %4937 = vmatpush3.bf16.msra.mxu0 %v6309_v19  ;;  %4920 = vmatprep.mubr.bf16.mxu0 %v6254_v49  ;;  %v396_v30 = vrot.slane %v7996_v6, 4  ;;  %v287_v19 = vrot.slane %v6365_v24, 6  ;;  %v379_v11 = vsel %vm6293_vm8, %v377_v45, %v378_v57  ;;  %v7998_v36 = vrot.slane %v6312_v40, 4 }
  0x91   :  { %4938 = vmatprep.subr.bf16.mxu0 %v5470_v55  ;;  %v294_v6 = vrot.slane %v7997_v51, 5  ;;  %v392_v62 = vor.u32 %v391_v41, %v388_v52  ;;  %4798 = vmatprep.subr.bf16.mxu1 %v5495_v3  ;;  %v297_v9 = vrot.slane %v6369_v31, 6  ;;  %v384_v43 = vsel %vm6293_vm8, %v382_v48, %v383_v1  ;;  %v5497_v41 = vld [vmem:[#allocation2 + $0x20] sm:$0xff]  }
  0x92   :  { %v397_v49 = vor.u32 %v396_v30, %v394_v12  ;;  %v6416_v27 = vsel %vm6178_vm5, %v7998_v36, %v6324_v22  ;;  %v7999_v30 = vshrl.u32 %v6032_v26, 16  ;;  %v4223_v40 = vcombine.low %v379_v11, %v384_v43 }
  0x93   :  { %v393_v52 = vrot.slane %v392_v62, 4  ;;  %v8001_v51 = vrot.slane %v6324_v22, 4  ;;  %4799 = vmatpush3.bf16.msra.mxu1 %v5495_v3  ;;  %v401_v48 = vrot.slane %v6165_v59, 4  ;;  %v404_v1 = vrot.slane %v6201_v58, 5  ;;  %v6448_v22 = vld [vmem:[%s7816_s0 + $0x4] sm:$0xf] }
  0x94   :  { %4939 = vmatpush3.bf16.msra.mxu0 %v5470_v55  ;;  %v398_v44 = vrot.slane %v397_v49, 4  ;;  %v6423_v57 = vrot.slane %v7999_v30, 5  ;;  %v8000_v55 = vshll.u32 %v6032_v26, 16  ;;  %v5473_v30 = vld [vmem:[#allocation2 + $0x160] sm:$0xff]   ;;  %v6443_v11 = vsel %vm6178_vm5, %v270_v23, %v6389_v28  ;;  %4780 = vmatprep.mubr.bf16.mxu1 %v4223_v40 }
  0x95   :  { %4940 = vmatprep.subr.bf16.mxu0 %v5471_v42  ;;  %v6433_v36 = vsel %vm6178_vm5, %v8001_v51, %v268_v47  ;;  %v395_v3 = vsel %vm6293_vm8, %v393_v52, %v394_v12  ;;  %v406_v62 = vrot.slane %v6198_v0, 4  ;;  %v8002_v43 = vrot.slane %v6344_v53, 5  ;;  %4800 = vmatprep.subr.bf16.mxu1 %v5497_v41 }
  0x96   :  { %v6427_v45 = vrot.slane %v8000_v55, 6  ;;  %v400_v49 = vsel %vm6293_vm8, %v398_v44, %v399_v5  ;;  %v402_v55 = vor.u32 %v401_v48, %v399_v5  ;;  %v409_v51 = vrot.slane %v6215_v35, 5 }
  0x97   :  { %4921 = vmatmul.mubr.bf16.gmra.mrb[4].mxu0 %v6259_v16  ;;  %v6457_v23 = vor.u32 %v287_v19, %v8002_v43  ;;  %v4224_v44 = vcombine.low %v395_v3, %v400_v49  ;;  %v6460_v47 = vor.u32 %v297_v9, %v294_v6  ;;  %v407_v40 = vor.u32 %v406_v62, %v404_v1  ;;  %v5475_v49 = vld [vmem:[#allocation2 + $0x168] sm:$0xff]   ;;  %v5501_v19 = vld [vmem:[#allocation2 + $0x30] sm:$0xff]  }
  0x98   :  { %4941 = vmatpush3.bf16.msra.mxu0 %v5471_v42  ;;  %4924 = vmatprep.mubr.bf16.mxu0 %v6261_v33  ;;  %v411_v12 = vrot.slane %v6212_v14, 4  ;;  %v414_v52 = vrot.slane %v6239_v2, 5  ;;  %v6467_v42 = vld [vmem:[%s7816_s0 + $0x8] sm:$0xf]  ;;  %v403_v5 = vrot.slane %v402_v55, 4  ;;  %v416_v6 = vrot.slane %v6236_v21, 4 }
  0x99   :  { %4942 = vmatprep.subr.bf16.mxu0 %v5472_v13  ;;  %4781 = vmatmul.mubr.bf16.gmra.mrb[8].mxu1 %v4224_v44  ;;  %v419_v9 = vrot.slane %v6272_v20, 5  ;;  %v408_v48 = vrot.slane %v407_v40, 4  ;;  %v421_v62 = vrot.slane %v6269_v60, 4  ;;  %v424_v43 = vrot.slane %v6320_v29, 5 }
  0x9a   :  { %v412_v3 = vor.u32 %v411_v12, %v409_v51  ;;  %4801 = vmatpush3.bf16.msra.mxu1 %v5497_v41  ;;  %v405_v26 = vsel %vm6293_vm8, %v403_v5, %v404_v1  ;;  %v417_v46 = vor.u32 %v416_v6, %v414_v52  ;;  %v426_v44 = vrot.slane %v6281_v7, 4  ;;  %v5478_v5 = vld [vmem:[#allocation2 + $0x170] sm:$0xff]  }
  0x9b   :  { %4802 = vmatprep.subr.bf16.mxu1 %v5499_v63  ;;  %v429_v55 = vrot.slane %v6333_v10, 5  ;;  %v410_v40 = vsel %vm6293_vm8, %v408_v48, %v409_v51  ;;  %v422_v12 = vor.u32 %v421_v62, %v419_v9  ;;  %v431_v33 = vrot.slane %v6327_v34, 4 }
  0x9c   :  { %4943 = vmatpush3.bf16.msra.mxu0 %v5472_v13  ;;  %v413_v41 = vrot.slane %v412_v3, 4  ;;  %v4225_v29 = vcombine.low %v405_v26, %v410_v40  ;;  %v418_v13 = vrot.slane %v417_v46, 4  ;;  %v427_v16 = vor.u32 %v426_v44, %v424_v43  ;;  %v5502_v44 = vld [vmem:[#allocation2 + $0x38] sm:$0xff]  }
  0x9d   :  { %4944 = vmatprep.subr.bf16.mxu0 %v5473_v30  ;;  %v434_v1 = vrot.slane %v6365_v24, 5  ;;  %v423_v10 = vrot.slane %v422_v12, 4  ;;  %v432_v7 = vor.u32 %v431_v33, %v429_v55  ;;  %v436_v51 = vrot.slane %v6344_v53, 4 }
  0x9e   :  { %v415_v6 = vsel %vm6293_vm8, %v413_v41, %v414_v52  ;;  %4803 = vmatpush3.bf16.msra.mxu1 %v5499_v63  ;;  %v8003_v26 = vrot.slane %v6389_v28, 4  ;;  %v420_v48 = vsel %vm6293_vm8, %v418_v13, %v419_v9  ;;  %v428_v3 = vrot.slane %v427_v16, 4  ;;  %4784 = vmatprep.mubr.bf16.mxu1 %v4225_v29  ;;  %v6538_v13 = vld [vmem:[%s7816_s0 + $0x10] sm:$0xf] }
  0x9f   :  { %4925 = vmatmul.mubr.bf16.gmra.mrb[8].mxu0 %v6379_v25  ;;  %v439_v52 = vrot.slane %v6369_v31, 5  ;;  %v4226_v33 = vcombine.low %v415_v6, %v420_v48  ;;  %v425_v63 = vsel %vm6293_vm8, %v423_v10, %v424_v43  ;;  %v437_v62 = vor.u32 %v436_v51, %v434_v1  ;;  %4804 = vmatprep.subr.bf16.mxu1 %v5501_v19  ;;  %v5480_v43 = vld [vmem:[#allocation2 + $0x178] sm:$0xff]  }
  0xa0   :  { %4945 = vmatpush3.bf16.msra.mxu0 %v5473_v30  ;;  %4928 = vmatprep.mubr.bf16.mxu0 %v6381_v61  ;;  %v289_v46 = vsel %vm6178_vm5, %v8003_v26, %v6457_v23  ;;  %v433_v30 = vrot.slane %v432_v7, 4  ;;  %v430_v28 = vsel %vm6293_vm8, %v428_v3, %v429_v55  ;;  %v6501_v40 = vcombine.low %v6416_v27, %v6433_v36  ;;  %v5482_v26 = vld [vmem:[#allocation2 + $0x180] sm:$0xff]  }
  0xa1   :  { %4946 = vmatprep.subr.bf16.mxu0 %v5475_v49  ;;  %v290_v16 = vrot.slane %v6457_v23, 4  ;;  %4785 = vmatmul.mubr.bf16.gmra.mrb[12].mxu1 %v4226_v33  ;;  %v4227_v9 = vcombine.low %v425_v63, %v430_v28  ;;  %v438_v29 = vrot.slane %v437_v62, 4  ;;  %v6505_v41 = vcombine.low %v6443_v11, %v289_v46  ;;  %v6523_v23 = vld [vmem:[%s7816_s0 + $0xc] sm:$0xf]  ;;  %8008 = vst [vmem:[#allocation29_spill] sm:$0xff] %v6538_v13  ;;  %v5609_v3 = vld [vmem:[#allocation2 + $0x80] sm:$0xff]  }
  0xa2   :  { %v300_v7 = vrot.slane %v6460_v47, 4  ;;  %v308_v10 = vor.u32 %v6427_v45, %v6423_v57  ;;  %v435_v55 = vsel %vm6293_vm8, %v433_v30, %v434_v1  ;;  %4805 = vmatpush3.bf16.msra.mxu1 %v5501_v19  ;;  %v8007_v36 = vrot.slane %v6467_v42, 6  ;;  %v5607_v1 = vld [vmem:[%s7816_s0] sm:$0xf]  ;;  %v6558_v46 = vld [vmem:[%s7816_s0 + $0x18] sm:$0xf] }
  0xa3   :  { %8004 = vst [vmem:[#allocation12_spill] sm:$0xff] %v6505_v41  ;;  %v1659_v57 = vrot.slane %v6523_v23, 6  ;;  %4788 = vmatprep.mubr.bf16.mxu1 %v4227_v9  ;;  %v440_v45 = vsel %vm6293_vm8, %v438_v29, %v439_v52  ;;  %4806 = vmatprep.subr.bf16.mxu1 %v5502_v44  ;;  %v1662_v39 = vrot.slane %v6538_v13, 6  ;;  %8011 = vst [vmem:[#allocation32_spill] sm:$0xff] %v6558_v46  ;;  %v1668_v48 = vrot.slane %v6558_v46, 6 }
  0xa4   :  { %4947 = vmatpush3.bf16.msra.mxu0 %v5475_v49  ;;  %v1658_v11 = vrot.slane %v8007_v36, 4  ;;  %v4228_v19 = vcombine.low %v435_v55, %v440_v45  ;;  %v299_v49 = vsel %vm6178_vm5, %v290_v16, %v6460_v47  ;;  %v309_v12 = vsel %vm6178_vm5, %v300_v7, %v308_v10  ;;  %v6573_v16 = vld [vmem:[%s7816_s0 + $0x1c] sm:$0xf] }
  0xa5   :  { %4948 = vmatprep.subr.bf16.mxu0 %v5478_v5  ;;  %v8009_v6 = vmov %v8007_v36  ;;  %v8010_v47 = vrot.slane %v6448_v22, 10  ;;  %v6561_v52 = vcombine.low %v299_v49, %v309_v12  ;;  %v1661_v63 = vrot.slane %v1659_v57, 4  ;;  %8014 = vst [vmem:[#allocation40_spill] sm:$0xff] %v6573_v16 }
  0xa6   :  { %v6553_v51 = vsel %vm6514_vm11, %v1658_v11, %v1659_v57  ;;  %4807 = vmatpush3.bf16.msra.mxu1 %v5502_v44  ;;  %v1664_v62 = vrot.slane %v1662_v39, 4  ;;  %v1670_v28 = vrot.slane %v1668_v48, 4  ;;  %v1671_v9 = vrot.slane %v6573_v16, 6  ;;  %v6606_v57 = vld [vmem:[%s7816_s0 + $0x28] sm:$0xf] }
  0xa7   :  { %4929 = vmatmul.mubr.bf16.gmra.mrb[12].mxu0 %v6501_v40  ;;  %v1657_v56 = vsel %vm6514_vm11, %v8010_v47, %v8009_v6  ;;  %5224 = vmatprep.subr.bf16.mxu1 %v5609_v3  ;;  %8012 = vst [vmem:[#allocation31_spill] sm:$0xff] %v6561_v52  ;;  %v4238_v29 = vcombine.low %v6467_v42, %v6523_v23  ;;  %8016 = vst [vmem:[#allocation42_spill] sm:$0xff] %v6606_v57  ;;  %v1680_v45 = vrot.slane %v6606_v57, 6 }
  0xa8   :  { %4932 = vmatprep.mubr.bf16.mxu0 %v6505_v41  ;;  %4949 = vmatpush3.bf16.msra.mxu0 %v5478_v5  ;;  %v4237_v5 = vcombine.low %v5607_v1, %v6448_v22  ;;  %v6566_v22 = vld [vmem:[%s7816_s0 + $0x14] sm:$0xf]  ;;  %v4313_v30 = vcombine.low %v1657_v56, %v6553_v51  ;;  %v6581_v7 = vsel %vm6514_vm11, %v1661_v63, %v1662_v39  ;;  %v5484_v39 = vld [vmem:[#allocation2 + $0x188] sm:$0xff]  }
  0xa9   :  { %4950 = vmatprep.subr.bf16.mxu0 %v5480_v43  ;;  %8013 = vst [vmem:[#allocation14_spill] sm:$0xff] %v6566_v22  ;;  %v1665_v33 = vrot.slane %v6566_v22, 6  ;;  %4789 = vmatmul.mubr.bf16.gmra.mrb[16].mxu1 %v4228_v19  ;;  %v4239_v36 = vcombine.low %v6538_v13, %v6566_v22  ;;  %v6601_v11 = vsel %vm6514_vm11, %v1670_v28, %v1671_v9  ;;  %v6612_v19 = vld [vmem:[%s7816_s0 + $0x24] sm:$0xf]  ;;  %v1682_v56 = vrot.slane %v1680_v45, 4  ;;  %v5616_v63 = vld [vmem:[#allocation2 + $0x88] sm:$0xff]  }
  0xaa   :  { %4808 = vmatprep.mubr.bf16.mxu1 %v4237_v5  ;;  %8017 = vst [vmem:[#allocation43_spill] sm:$0xff] %v6612_v19  ;;  %v1677_v49 = vrot.slane %v6612_v19, 6  ;;  %v1673_v5 = vrot.slane %v1671_v9, 4 }
  0xab   :  { %v1667_v44 = vrot.slane %v1665_v33, 4  ;;  %v6585_v10 = vsel %vm6514_vm11, %v1664_v62, %v1665_v33 }
  0xac   :  { %4951 = vmatpush3.bf16.msra.mxu0 %v5480_v43  ;;  %v6590_v43 = vld [vmem:[%s7816_s0 + $0x20] sm:$0xf]  ;;  %v4314_v12 = vcombine.low %v6581_v7, %v6585_v10  ;;  %v1679_v47 = vrot.slane %v1677_v49, 4 }
  0xad   :  { %4972 = vmatprep.subr.bf16.mxu0 %v5482_v26  ;;  %8015 = vst [vmem:[#allocation41_spill] sm:$0xff] %v6590_v43  ;;  %v1674_v55 = vrot.slane %v6590_v43, 6  ;;  %v6597_v42 = vsel %vm6514_vm11, %v1667_v44, %v1668_v48  ;;  %v6622_v48 = vld [vmem:[%s7816_s0 + $0x2c] sm:$0xf]  ;;  %v6638_v44 = vld [vmem:[%s7816_s0 + $0x40] sm:$0xf]  ;;  %v4241_v9 = vcombine.low %v6590_v43, %v6612_v19 }
  0xae   :  { %v4315_v1 = vcombine.low %v6597_v42, %v6601_v11  ;;  %v7882_v33 = vrot.slane %v6622_v48, 6  ;;  %8018 = vst [vmem:[#allocation44_spill] sm:$0xff] %v6638_v44  ;;  %v1687_v28 = vrot.slane %v6638_v44, 6  ;;  %v6675_v43 = vld [vmem:[%s7816_s0 + $0x4c] sm:$0xf] }
  0xaf   :  { %4933 = vmatmul.mubr.bf16.gmra.mrb[16].mxu0 %v6561_v52  ;;  %v1676_v6 = vrot.slane %v1674_v55, 4  ;;  %v6629_v62 = vsel %vm6514_vm11, %v1673_v5, %v1674_v55 }
  0xb0   :  { %4952 = vmatprep.mubr.bf16.mxu0 %v4313_v30  ;;  %v4240_v30 = vcombine.low %v6558_v46, %v6573_v16  ;;  %v6651_v55 = vsel %vm6514_vm11, %v1682_v56, %v7882_v33  ;;  %v5488_v33 = vld [vmem:[#allocation2 + $0x198] sm:$0xff]   ;;  %v5624_v46 = vld [vmem:[%s7816_s0 + $0x38] sm:$0xf] }
  0xb1   :  { %4809 = vmatmul.mubr.bf16.vlgmr.msra.gmra.mrb[0].mxu1 %v4238_v29  ;;  %v6645_v29 = vsel %vm6514_vm11, %v1679_v47, %v1680_v45  ;;  %v5621_v47 = vld [vmem:[%s7816_s0 + $0x3c] sm:$0xf] }
  0xb2   :  { %4812 = vmatprep.mubr.bf16.mxu1 %v4239_v36  ;;  %5232 = vmatpush3.bf16.msra.mxu1 %v5609_v3  ;;  %v6633_v3 = vsel %vm6514_vm11, %v1676_v6, %v1677_v49  ;;  %v6656_v36 = vld [vmem:[%s7816_s0 + $0x48] sm:$0xf]  ;;  %v4317_v6 = vcombine.low %v6645_v29, %v6651_v55  ;;  %v4312_v56 = vrot.slane %v5621_v47, 10 }
  0xb3   :  { %5225 = vmatprep.subr.bf16.mxu1 %v5616_v63  ;;  %8019 = vst [vmem:[#allocation45_spill] sm:$0xff] %v6656_v36  ;;  %v1693_v49 = vrot.slane %v6656_v36, 6  ;;  %v4316_v45 = vcombine.low %v6629_v62, %v6633_v3 }
  0xb4   :  { %v1688_v52 = vsel %vm6514_vm11, %v4312_v56, %v1687_v28 }
  0xb5   :  { %v1695_v19 = vrot.slane %v1693_v49, 4 }
  0xb6   :  { %5233 = vmatpush3.bf16.msra.mxu1 %v5616_v63  ;;  %v1689_v63 = vrot.slane %v1687_v28, 4 }
  0xb7   :  { %4953 = vmatmul.mubr.bf16.vlgmr.msra.gmra.mrb[0].mxu0 %v4314_v12  ;;  %v5619_v12 = vld [vmem:[#allocation2 + $0x90] sm:$0xff]  }
  0xb8   :  { %4973 = vmatpush3.bf16.msra.mxu0 %v5482_v26  ;;  %4956 = vmatprep.mubr.bf16.mxu0 %v4315_v1  ;;  %v5487_v26 = vld [vmem:[#allocation2 + $0x190] sm:$0xff]  }
  0xb9   :  { %4974 = vmatprep.subr.bf16.mxu0 %v5484_v39  ;;  %5226 = vmatprep.subr.bf16.mxu1 %v5619_v12  ;;  %v6664_v1 = vld [vmem:[%s7816_s0 + $0x44] sm:$0xf] }
  0xba   :  { %8020 = vst [vmem:[#allocation46_spill] sm:$0xff] %v6664_v1  ;;  %v1690_v5 = vrot.slane %v6664_v1, 6  ;;  %4813 = vmatmul.mubr.bf16.gmra.mrb[4].mxu1 %v4240_v30  ;;  %v5623_v30 = vld [vmem:[#allocation2 + $0x98] sm:$0xff]   ;;  %v4243_v22 = vcombine.low %v6638_v44, %v6664_v1 }
  0xbb   :  { %4816 = vmatprep.mubr.bf16.mxu1 %v4241_v9  ;;  %5234 = vmatpush3.bf16.msra.mxu1 %v5619_v12  ;;  %v4242_v9 = vcombine.low %v5624_v46, %v5621_v47  ;;  %v6690_v12 = vld [vmem:[%s7816_s0 + $0x50] sm:$0xf] }
  0xbc   :  { %4975 = vmatpush3.bf16.msra.mxu0 %v5484_v39  ;;  %v1692_v57 = vrot.slane %v1690_v5, 4  ;;  %v1696_v39 = vrot.slane %v6675_v43, 6  ;;  %5227 = vmatprep.subr.bf16.mxu1 %v5623_v30  ;;  %v6685_v16 = vsel %vm6514_vm11, %v1689_v63, %v1690_v5  ;;  %v5489_v46 = vld [vmem:[#allocation2 + $0x1a0] sm:$0xff]   ;;  %v6706_v5 = vld [vmem:[%s7816_s0 + $0x58] sm:$0xf] }
  0xbd   :  { %4976 = vmatprep.subr.bf16.mxu0 %v5487_v26  ;;  %v5627_v47 = vld [vmem:[#allocation2 + $0xa0] sm:$0xff]   ;;  %v4318_v56 = vcombine.low %v1688_v52, %v6685_v16  ;;  %v6721_v52 = vld [vmem:[%s7816_s0 + $0x5c] sm:$0xf] }
  0xbe   :  { %v6701_v28 = vsel %vm6514_vm11, %v1695_v19, %v1696_v39  ;;  %v1698_v63 = vrot.slane %v1696_v39, 4  ;;  %v1708_v41 = vrot.slane %v6721_v52, 6 }
  0xbf   :  { %4957 = vmatmul.mubr.bf16.gmra.mrb[4].mxu0 %v4316_v45  ;;  %v1699_v45 = vrot.slane %v6690_v12, 6  ;;  %5235 = vmatpush3.bf16.msra.mxu1 %v5623_v30  ;;  %v5491_v30 = vld [vmem:[#allocation2 + $0x1a8] sm:$0xff]  }
  0xc0   :  { %4977 = vmatpush3.bf16.msra.mxu0 %v5487_v26  ;;  %4960 = vmatprep.mubr.bf16.mxu0 %v4317_v6  ;;  %v6697_v26 = vsel %vm6514_vm11, %v1692_v57, %v1693_v49  ;;  %v1705_v6 = vrot.slane %v6706_v5, 6  ;;  %v6713_v57 = vld [vmem:[%s7816_s0 + $0x54] sm:$0xf] }
  0xc1   :  { %4978 = vmatprep.subr.bf16.mxu0 %v5488_v33  ;;  %5228 = vmatprep.subr.bf16.mxu1 %v5627_v47  ;;  %8021 = vst [vmem:[#allocation47_spill] sm:$0xff] %v6713_v57  ;;  %v1702_v19 = vrot.slane %v6713_v57, 6  ;;  %v4319_v49 = vcombine.low %v6697_v26, %v6701_v28  ;;  %v1701_v44 = vrot.slane %v1699_v45, 4 }
  0xc2   :  { %4817 = vmatmul.mubr.bf16.gmra.mrb[8].mxu1 %v4242_v9  ;;  %v1707_v13 = vrot.slane %v1705_v6, 4  ;;  %v5630_v9 = vld [vmem:[#allocation2 + $0xa8] sm:$0xff]  }
  0xc3   :  { %4820 = vmatprep.mubr.bf16.mxu1 %v4243_v22  ;;  %v1704_v1 = vrot.slane %v1702_v19, 4  ;;  %5236 = vmatpush3.bf16.msra.mxu1 %v5627_v47  ;;  %v6728_v22 = vsel %vm6514_vm11, %v1698_v63, %v1699_v45  ;;  %v6732_v39 = vsel %vm6514_vm11, %v1701_v44, %v1702_v19  ;;  %v6737_v47 = vld [vmem:[%s7816_s0 + $0x60] sm:$0xf] }
  0xc4   :  { %4979 = vmatpush3.bf16.msra.mxu0 %v5488_v33  ;;  %5229 = vmatprep.subr.bf16.mxu1 %v5630_v9  ;;  %v4244_v33 = vcombine.low %v6656_v36, %v6675_v43  ;;  %8022 = vst [vmem:[#allocation48_spill] sm:$0xff] %v6737_v47  ;;  %v4245_v36 = vcombine.low %v6690_v12, %v6713_v57  ;;  %v5632_v19 = vld [vmem:[#allocation2 + $0xb0] sm:$0xff]  }
  0xc5   :  { %4980 = vmatprep.subr.bf16.mxu0 %v5489_v46  ;;  %v6744_v45 = vsel %vm6514_vm11, %v1704_v1, %v1705_v6  ;;  %v6748_v44 = vsel %vm6514_vm11, %v1707_v13, %v1708_v41  ;;  %v6757_v1 = vld [vmem:[%s7816_s0 + $0x64] sm:$0xf]  ;;  %v5496_v6 = vld [vmem:[#allocation2 + $0x1b8] sm:$0xff]  }
  0xc6   :  { %v4321_v63 = vcombine.low %v6744_v45, %v6748_v44  ;;  %v1714_v13 = vrot.slane %v6757_v1, 6 }
  0xc7   :  { %4961 = vmatmul.mubr.bf16.gmra.mrb[8].mxu0 %v4318_v56  ;;  %v1711_v56 = vrot.slane %v6737_v47, 6  ;;  %5237 = vmatpush3.bf16.msra.mxu1 %v5630_v9  ;;  %v1710_v47 = vrot.slane %v1708_v41, 4  ;;  %v5634_v9 = vld [vmem:[#allocation2 + $0xb8] sm:$0xff]   ;;  %v5527_v41 = vld [vmem:[%s7818_s2] sm:$0xff]  }
  0xc8   :  { %4981 = vmatpush3.bf16.msra.mxu0 %v5489_v46  ;;  %4964 = vmatprep.mubr.bf16.mxu0 %v4319_v49  ;;  %v5494_v46 = vld [vmem:[#allocation2 + $0x1b0] sm:$0xff]   ;;  %v4320_v49 = vcombine.low %v6728_v22, %v6732_v39 }
  0xc9   :  { %4982 = vmatprep.subr.bf16.mxu0 %v5491_v30  ;;  %5230 = vmatprep.subr.bf16.mxu1 %v5632_v19  ;;  %v1713_v57 = vrot.slane %v1711_v56, 4 }
  0xca   :  { %4821 = vmatmul.mubr.bf16.gmra.mrb[12].mxu1 %v4244_v33  ;;  %v6767_v33 = vsel %vm6514_vm11, %v1710_v47, %v1711_v56  ;;  %v4331_v47 = vcombine.low %v6553_v51, %v6581_v7  ;;  %v5500_v56 = vld [vmem:[#allocation2 + $0x1c8] sm:$0xff]   ;;  %v5528_v7 = vld [vmem:[%s7818_s2 + $0x8] sm:$0xff]  }
  0xcb   :  { %4824 = vmatprep.mubr.bf16.mxu1 %v4245_v36  ;;  %5238 = vmatpush3.bf16.msra.mxu1 %v5632_v19  ;;  %v6773_v36 = vsel %vm6514_vm11, %v1713_v57, %v1714_v13  ;;  %v4265_v19 = vcombine.low %v6099_v18, %v6162_v4  ;;  %v6784_v18 = vld [vmem:[%s7816_s0 + $0x30] sm:$0xf]  ;;  %v4332_v4 = vcombine.low %v6585_v10, %v6597_v42  ;;  %v5503_v10 = vld [vmem:[#allocation2 + $0x1d0] sm:$0xff]  }
  0xcc   :  { %4983 = vmatpush3.bf16.msra.mxu0 %v5491_v30  ;;  %5231 = vmatprep.subr.bf16.mxu1 %v5634_v9  ;;  %v4246_v30 = vcombine.low %v6706_v5, %v6721_v52  ;;  %v4333_v57 = vcombine.low %v6601_v11, %v6629_v62  ;;  %v1957_v51 = vrot.slane %v6784_v18, 6  ;;  %v5529_v11 = vld [vmem:[%s7818_s2 + $0x10] sm:$0xff]   ;;  %v4334_v62 = vcombine.low %v6633_v3, %v6645_v29  ;;  %v5531_v3 = vld [vmem:[%s7818_s2 + $0x20] sm:$0xff]  }
  0xcd   :  { %4984 = vmatprep.subr.bf16.mxu0 %v5494_v46  ;;  %v4336_v29 = vcombine.low %v6685_v16, %v6697_v26  ;;  %v5532_v16 = vld [vmem:[%s7818_s2 + $0x28] sm:$0xff]   ;;  %v8029_v26 = vld [vmem:[#allocation21_spill] sm:$0xff] }
  0xcf   :  { %4965 = vmatmul.mubr.bf16.gmra.mrb[12].mxu0 %v4320_v49  ;;  %v5498_v49 = vld [vmem:[#allocation2 + $0x1c0] sm:$0xff]   ;;  %5239 = vmatpush3.bf16.msra.mxu1 %v5634_v9  ;;  %v8024_v9 = vcombine.low %v5970_v15, %v5976_v17  ;;  %v5506_v17 = vld [vmem:[#allocation2 + $0x1d8] sm:$0xff]  }
  0xd0   :  { %4968 = vmatprep.mubr.bf16.mxu0 %v4321_v63  ;;  %4985 = vmatpush3.bf16.msra.mxu0 %v5494_v46  ;;  %v4322_v46 = vcombine.low %v6767_v33, %v6773_v36  ;;  %v8023_v63 = vrot.slane %v6622_v48, 6 }
  0xd1   :  { %4986 = vmatprep.subr.bf16.mxu0 %v5496_v6  ;;  %5080 = vmatprep.subr.bf16.mxu1 %v5527_v41 }
  0xd2   :  { %4825 = vmatmul.mubr.bf16.gmra.mrb[16].mxu1 %v4246_v30  ;;  %v5530_v30 = vld [vmem:[%s7818_s2 + $0x18] sm:$0xff]  }
  0xd3   :  { %4860 = vmatprep.mubr.bf16.mxu1 %v4265_v19  ;;  %v8025_v19 = vld [vmem:[#allocation17_spill] sm:$0xff] }
  0xd4   :  { %4987 = vmatpush3.bf16.msra.mxu0 %v5496_v6  ;;  %v1956_v6 = vrot.slane %v8023_v63, 4 }
  0xd5   :  { %5008 = vmatprep.subr.bf16.mxu0 %v5498_v49 }
  0xd6   :  { %v1958_v42 = vsel %vm6514_vm11, %v1956_v6, %v1957_v51  ;;  %v5510_v6 = vld [vmem:[#allocation2 + $0x1e8] sm:$0xff]  }
  0xd7   :  { %4969 = vmatmul.mubr.bf16.gmra.mrb[16].mxu0 %v4322_v46  ;;  %v4335_v15 = vcombine.low %v6651_v55, %v1958_v42  ;;  %v4337_v55 = vcombine.low %v6701_v28, %v6728_v22  ;;  %v8026_v46 = vld [vmem:[#allocation18_spill] sm:$0xff]  ;;  %v2194_v28 = vrot.slane %v8029_v26, 6  ;;  %v4338_v42 = vcombine.low %v6732_v39, %v6744_v45  ;;  %v8031_v39 = vld [vmem:[#allocation23_spill] sm:$0xff] }
  0xd8   :  { %4988 = vmatprep.mubr.bf16.mxu0 %v4331_v47  ;;  %v2186_v47 = vrot.slane %v8026_v46, 7  ;;  %v8030_v22 = vld [vmem:[#allocation22_spill] sm:$0xff]  ;;  %v2199_v45 = vrot.slane %v8031_v39, 6  ;;  %v5514_v46 = vld [vmem:[#allocation2 + $0x1f8] sm:$0xff]  }
  0xd9   :  { %v2195_v51 = vrot.slane %v8030_v22, 7  ;;  %v2214_v22 = vrot.slane %v7991_v38, 6  ;;  %v8039_v39 = vld [vmem:[#allocation30_spill] sm:$0xff]  ;;  %v5535_v38 = vld [vmem:[%s7820_s4] sm:$0xff]  }
  0xde   :  { %4861 = vmatmul.mubr.bf16.vlgmr.msra.gmra.mrb[16].mxu1 %v8024_v9 }
  0xdf   :  { %4989 = vmatmul.mubr.bf16.vlgmr.msra.gmra.mrb[0].mxu0 %v4332_v4  ;;  %5081 = vmatpush3.bf16.msra.mxu1 %v5527_v41  ;;  %v5507_v41 = vld [vmem:[#allocation2 + $0x1e0] sm:$0xff]   ;;  %v8027_v4 = vld [vmem:[#allocation19_spill] sm:$0xff] }
  0xe0   :  { %5009 = vmatpush3.bf16.msra.mxu0 %v5498_v49  ;;  %4992 = vmatprep.mubr.bf16.mxu0 %v4333_v57  ;;  %v2185_v49 = vrot.slane %v8025_v19, 6  ;;  %v2189_v57 = vrot.slane %v8027_v4, 6  ;;  %v8037_v4 = vld [vmem:[#allocation25_spill] sm:$0xff] }
  0xe1   :  { %5010 = vmatprep.subr.bf16.mxu0 %v5500_v56  ;;  %5082 = vmatprep.subr.bf16.mxu1 %v5528_v7 }
  0xe2   :  { %5096 = vmatprep.mubr.bf16.mxu1 %v6250_v8  ;;  %v2187_v9 = vor.u32 %v2186_v47, %v2185_v49 }
  0xe3   :  { %5083 = vmatpush3.bf16.msra.mxu1 %v5528_v7  ;;  %v6830_v7 = vld [vmem:[%s7816_s0 + $0x68] sm:$0xf] }
  0xe4   :  { %5011 = vmatpush3.bf16.msra.mxu0 %v5500_v56  ;;  %5084 = vmatprep.subr.bf16.mxu1 %v5529_v11  ;;  %v8028_v56 = vld [vmem:[#allocation20_spill] sm:$0xff] }
  0xe5   :  { %5012 = vmatprep.subr.bf16.mxu0 %v5503_v10  ;;  %v2190_v63 = vrot.slane %v8028_v56, 7  ;;  %v8038_v56 = vld [vmem:[#allocation26_spill] sm:$0xff] }
  0xe7   :  { %4993 = vmatmul.mubr.bf16.gmra.mrb[4].mxu0 %v4334_v62  ;;  %5085 = vmatpush3.bf16.msra.mxu1 %v5529_v11  ;;  %v5513_v11 = vld [vmem:[#allocation2 + $0x1f0] sm:$0xff]   ;;  %v4339_v62 = vcombine.low %v6748_v44, %v6767_v33 }
  0xe8   :  { %5013 = vmatpush3.bf16.msra.mxu0 %v5503_v10  ;;  %4996 = vmatprep.mubr.bf16.mxu0 %v4335_v15  ;;  %v2191_v10 = vor.u32 %v2190_v63, %v2189_v57  ;;  %v1959_v15 = vrot.slane %v1714_v13, 4  ;;  %v8033_v33 = vld [vmem:[#allocation27_spill] sm:$0xff]  ;;  %v8034_v13 = vld [vmem:[#allocation28_spill] sm:$0xff]  ;;  %v2204_v57 = vrot.slane %v8037_v4, 6  ;;  %v2205_v63 = vrot.slane %v8038_v56, 7 }
  0xe9   :  { %5014 = vmatprep.subr.bf16.mxu0 %v5506_v17  ;;  %5086 = vmatprep.subr.bf16.mxu1 %v5530_v30  ;;  %v2209_v19 = vrot.slane %v8033_v33, 6  ;;  %v2210_v49 = vrot.slane %v8034_v13, 7  ;;  %v8043_v4 = vld [vmem:[#allocation11_spill] sm:$0xff] }
  0xea   :  { %v2193_v44 = vrot.slane %v2191_v10, 4  ;;  %v2206_v33 = vor.u32 %v2205_v63, %v2204_v57  ;;  %v8044_v57 = vshrl.u32 %v8043_v4, 16  ;;  %v2225_v63 = vrot.slane %v6129_v37, 7 }
  0xeb   :  { %5087 = vmatpush3.bf16.msra.mxu1 %v5530_v30  ;;  %v1960_v30 = vrot.slane %v6830_v7, 6  ;;  %v2244_v37 = vrot.slane %v6168_v54, 7 }
  0xec   :  { %5015 = vmatpush3.bf16.msra.mxu0 %v5506_v17  ;;  %5088 = vmatprep.subr.bf16.mxu1 %v5531_v3  ;;  %v5533_v17 = vld [vmem:[%s7818_s2 + $0x30] sm:$0xff]   ;;  %v2224_v56 = vrot.slane %v8044_v57, 6 }
  0xed   :  { %5016 = vmatprep.subr.bf16.mxu0 %v5507_v41  ;;  %v1961_v26 = vsel %vm6514_vm11, %v1959_v15, %v1960_v30  ;;  %v2208_v15 = vrot.slane %v2206_v33, 4  ;;  %v8049_v57 = vld [vmem:[#allocation37_spill] sm:$0xff] }
  0xee   :  { %v4340_v27 = vcombine.low %v6773_v36, %v1961_v26 }
  0xef   :  { %4997 = vmatmul.mubr.bf16.gmra.mrb[8].mxu0 %v4336_v29  ;;  %5089 = vmatpush3.bf16.msra.mxu1 %v5531_v3  ;;  %v8032_v29 = vld [vmem:[#allocation24_spill] sm:$0xff] }
  0xf0   :  { %5017 = vmatpush3.bf16.msra.mxu0 %v5507_v41  ;;  %5000 = vmatprep.mubr.bf16.mxu0 %v4337_v55  ;;  %v2196_v41 = vor.u32 %v2195_v51, %v2194_v28  ;;  %v2200_v3 = vrot.slane %v8032_v29, 7  ;;  %v2188_v55 = vrot.slane %v2187_v9, 4  ;;  %v2211_v9 = vor.u32 %v2210_v49, %v2209_v19 }
  0xf1   :  { %5018 = vmatprep.subr.bf16.mxu0 %v5510_v6  ;;  %5090 = vmatprep.subr.bf16.mxu1 %v5532_v16  ;;  %v2215_v29 = vrot.slane %v8039_v39, 7  ;;  %v2235_v49 = vshrl.u32 %v6784_v18, 16 }
  0xf2   :  { %v2201_v28 = vor.u32 %v2200_v3, %v2199_v45  ;;  %v2192_v51 = vsel %vm6847_vm14, %v2188_v55, %v2191_v10  ;;  %v2213_v30 = vrot.slane %v2211_v9, 4  ;;  %v2219_v3 = vrot.slane %v7993_v50, 6 }
  0xf3   :  { %5091 = vmatpush3.bf16.msra.mxu1 %v5532_v16  ;;  %v2197_v16 = vsel %vm6847_vm14, %v2193_v44, %v2196_v41  ;;  %v2216_v45 = vor.u32 %v2215_v29, %v2214_v22  ;;  %v2220_v55 = vrot.slane %v7992_v32, 7  ;;  %v8045_v22 = vld [vmem:[#allocation33_spill] sm:$0xff]  ;;  %v8046_v29 = vld [vmem:[#allocation34_spill] sm:$0xff] }
  0xf4   :  { %5019 = vmatpush3.bf16.msra.mxu0 %v5510_v6  ;;  %5092 = vmatprep.subr.bf16.mxu1 %v5533_v17  ;;  %v5534_v6 = vld [vmem:[%s7818_s2 + $0x38] sm:$0xff]   ;;  %v2203_v10 = vrot.slane %v2201_v28, 4 }
  0xf5   :  { %5020 = vmatprep.subr.bf16.mxu0 %v5513_v11  ;;  %v2221_v26 = vor.u32 %v2220_v55, %v2219_v3  ;;  %v2257_v3 = vrot.slane %v6236_v21, 6  ;;  %v2258_v55 = vrot.slane %v6239_v2, 7 }
  0xf6   :  { %v2207_v50 = vsel %vm6847_vm14, %v2203_v10, %v2206_v33  ;;  %v2247_v10 = vrot.slane %v6198_v0, 6 }
  0xf7   :  { %5001 = vmatmul.mubr.bf16.gmra.mrb[12].mxu0 %v4338_v42  ;;  %v5517_v42 = vld [vmem:[#allocation2 + $0x200] sm:$0xff]   ;;  %5093 = vmatpush3.bf16.msra.mxu1 %v5533_v17  ;;  %v8040_v17 = vld [vmem:[#allocation15_spill] sm:$0xff]  ;;  %v2259_v2 = vor.u32 %v2258_v55, %v2257_v3 }
  0xf8   :  { %5004 = vmatprep.mubr.bf16.mxu0 %v4339_v62  ;;  %5021 = vmatpush3.bf16.msra.mxu0 %v5513_v11  ;;  %v2198_v11 = vrot.slane %v2196_v41, 4  ;;  %v4349_v62 = vcombine.low %v2192_v51, %v2197_v16  ;;  %v8041_v44 = vshrl.u32 %v8040_v17, 16  ;;  %v8042_v19 = vshll.u32 %v8040_v17, 16  ;;  %v8052_v55 = vld [vmem:[#allocation13_spill] sm:$0xff] }
  0xf9   :  { %5022 = vmatprep.subr.bf16.mxu0 %v5514_v46  ;;  %5094 = vmatprep.subr.bf16.mxu1 %v5534_v6  ;;  %v2238_v41 = vshll.u32 %v6784_v18, 16  ;;  %v2217_v51 = vsel %vm6847_vm14, %v2213_v30, %v2216_v45 }
  0xfa   :  { %v2229_v36 = vrot.slane %v8041_v44, 6  ;;  %v2230_v13 = vrot.slane %v8042_v19, 7  ;;  %v2202_v32 = vsel %vm6847_vm14, %v2198_v11, %v2201_v28  ;;  %v2237_v28 = vrot.slane %v2235_v49, 6 }
  0xfb   :  { %5095 = vmatpush3.bf16.msra.mxu1 %v5534_v6  ;;  %v2212_v6 = vsel %vm6847_vm14, %v2208_v15, %v2211_v9  ;;  %v2240_v39 = vrot.slane %v2238_v41, 7  ;;  %v4350_v33 = vcombine.low %v2202_v32, %v2207_v50  ;;  %v5537_v9 = vld [vmem:[%s7820_s4 + $0x10] sm:$0xff]   ;;  %v2218_v11 = vrot.slane %v2216_v45, 4 }
  0xfc   :  { %5023 = vmatpush3.bf16.msra.mxu0 %v5514_v46  ;;  %5116 = vmatprep.subr.bf16.mxu1 %v5535_v38  ;;  %v5536_v46 = vld [vmem:[%s7820_s4 + $0x8] sm:$0xff]   ;;  %v2231_v16 = vor.u32 %v2230_v13, %v2229_v36  ;;  %v2248_v15 = vrot.slane %v6201_v58, 7  ;;  %v4351_v30 = vcombine.low %v2212_v6, %v2217_v51  ;;  %v2252_v19 = vrot.slane %v6212_v14, 6  ;;  %v5538_v14 = vld [vmem:[%s7820_s4 + $0x18] sm:$0xff]  }
  0xfd   :  { %5044 = vmatprep.subr.bf16.mxu0 %v5517_v42  ;;  %v2241_v44 = vor.u32 %v2240_v39, %v2237_v28  ;;  %v2253_v45 = vrot.slane %v6215_v35, 7  ;;  %v2222_v0 = vsel %vm6847_vm14, %v2218_v11, %v2221_v26  ;;  %v2262_v13 = vrot.slane %v6269_v60, 6  ;;  %v5521_v35 = vld [vmem:[#allocation2 + $0x210] sm:$0xff]   ;;  %v8048_v60 = vld [vmem:[#allocation36_spill] sm:$0xff] }
  0xfe   :  { %5097 = vmatmul.mubr.bf16.vlgmr.msra.gmra.mrb[20].mxu1 %v8045_v22  ;;  %v2233_v54 = vrot.slane %v2231_v16, 4  ;;  %v2249_v58 = vor.u32 %v2248_v15, %v2247_v10  ;;  %v2263_v49 = vrot.slane %v6272_v20, 7  ;;  %v2261_v28 = vrot.slane %v2259_v2, 4  ;;  %v8051_v15 = vld [vmem:[#allocation39_spill] sm:$0xff] }
  0xff   :  { %5005 = vmatmul.mubr.bf16.gmra.mrb[16].mxu0 %v4340_v27  ;;  %5117 = vmatpush3.bf16.msra.mxu1 %v5535_v38  ;;  %v2243_v27 = vrot.slane %v6165_v59, 6  ;;  %v2223_v38 = vrot.slane %v2221_v26, 4  ;;  %v5519_v59 = vld [vmem:[#allocation2 + $0x208] sm:$0xff]   ;;  %v2254_v50 = vor.u32 %v2253_v45, %v2252_v19  ;;  %v5539_v26 = vld [vmem:[%s7820_s4 + $0x20] sm:$0xff]   ;;  %v2272_v10 = vrot.slane %v6327_v34, 6  ;;  %v5540_v34 = vld [vmem:[%s7820_s4 + $0x28] sm:$0xff]  }
 0x100   :  { %5024 = vmatprep.mubr.bf16.mxu0 %v4349_v62  ;;  %5100 = vmatprep.mubr.bf16.mxu1 %v8046_v29  ;;  %v2226_v62 = vor.u32 %v2225_v63, %v2224_v56  ;;  %v2251_v4 = vrot.slane %v2249_v58, 4  ;;  %v2267_v56 = vrot.slane %v8049_v57, 6  ;;  %v8050_v63 = vld [vmem:[#allocation38_spill] sm:$0xff]  ;;  %v2264_v39 = vor.u32 %v2263_v49, %v2262_v13 }
 0x101   :  { %5118 = vmatprep.subr.bf16.mxu1 %v5536_v46  ;;  %v2245_v36 = vor.u32 %v2244_v37, %v2243_v27  ;;  %v2268_v6 = vrot.slane %v8050_v63, 7  ;;  %v2277_v27 = vrot.slane %v6344_v53, 6  ;;  %v2278_v37 = vrot.slane %v6365_v24, 7 }
 0x102   :  { %v2228_v17 = vrot.slane %v2226_v62, 4  ;;  %v2227_v21 = vsel %vm6847_vm14, %v2223_v38, %v2226_v62  ;;  %v2255_v11 = vsel %vm6847_vm14, %v2251_v4, %v2254_v50  ;;  %v2265_v24 = vsel %vm6847_vm14, %v2261_v28, %v2264_v39  ;;  %v5523_v38 = vld [vmem:[#allocation2 + $0x220] sm:$0xff]   ;;  %v5542_v28 = vld [vmem:[%s7820_s4 + $0x38] sm:$0xff]  }
 0x103   :  { %5119 = vmatpush3.bf16.msra.mxu1 %v5536_v46  ;;  %v8047_v46 = vld [vmem:[#allocation35_spill] sm:$0xff]  ;;  %v2246_v32 = vrot.slane %v2245_v36, 4  ;;  %v4352_v20 = vcombine.low %v2222_v0, %v2227_v21  ;;  %v2269_v62 = vor.u32 %v2268_v6, %v2267_v56  ;;  %v2279_v3 = vor.u32 %v2278_v37, %v2277_v27 }
 0x104   :  { %5120 = vmatprep.subr.bf16.mxu1 %v5537_v9  ;;  %v2232_v41 = vsel %vm6847_vm14, %v2228_v17, %v2231_v16  ;;  %v2256_v16 = vrot.slane %v2254_v50, 4  ;;  %v2266_v19 = vrot.slane %v2264_v39, 4  ;;  %v2293_v49 = vshrl.u32 %v6830_v7, 16  ;;  %v5525_v6 = vld [vmem:[#allocation2 + $0x230] sm:$0xff]   ;;  %v8057_v39 = vld [vmem:[#allocation12_spill] sm:$0xff] }
 0x105   :  { %v2271_v45 = vrot.slane %v2269_v62, 4 }
 0x106   :  { %5101 = vmatmul.mubr.bf16.gmra.mrb[24].mxu1 %v8047_v46  ;;  %v2260_v53 = vsel %vm6847_vm14, %v2256_v16, %v2259_v2  ;;  %v2270_v50 = vsel %vm6847_vm14, %v2266_v19, %v2269_v62  ;;  %v2295_v56 = vrot.slane %v2293_v49, 6  ;;  %v2544_v16 = vrot.slane %v6523_v23, 7  ;;  %v5526_v23 = vld [vmem:[#allocation2 + $0x238] sm:$0xff]   ;;  %v5543_v19 = vld [vmem:[%s7819_s3] sm:$0xff]   ;;  %v8065_v49 = vld [vmem:[#allocation41_spill] sm:$0xff] }
 0x107   :  { %5025 = vmatmul.mubr.bf16.vlgmr.msra.gmra.mrb[0].mxu0 %v4350_v33  ;;  %5121 = vmatpush3.bf16.msra.mxu1 %v5537_v9  ;;  %v5522_v33 = vld [vmem:[#allocation2 + $0x218] sm:$0xff]   ;;  %v2250_v9 = vsel %vm6847_vm14, %v2246_v32, %v2249_v58  ;;  %v4355_v36 = vcombine.low %v2260_v53, %v2265_v24 }
 0x108   :  { %5045 = vmatpush3.bf16.msra.mxu0 %v5517_v42  ;;  %5028 = vmatprep.mubr.bf16.mxu0 %v4351_v30  ;;  %v2242_v42 = vsel %vm6847_vm14, %v2233_v54, %v2241_v44  ;;  %v2273_v30 = vrot.slane %v8051_v15, 7  ;;  %v2283_v54 = vrot.slane %v6369_v31, 7  ;;  %v4354_v44 = vcombine.low %v2250_v9, %v2255_v11  ;;  %v8054_v58 = vld [vmem:[#allocation16_spill] sm:$0xff] }
 0x109   :  { %5046 = vmatprep.subr.bf16.mxu0 %v5519_v59  ;;  %5104 = vmatprep.mubr.bf16.mxu1 %v8048_v60  ;;  %v4353_v51 = vcombine.low %v2232_v41, %v2242_v42  ;;  %v8055_v21 = vshrl.u32 %v8054_v58, 16  ;;  %v8056_v31 = vshll.u32 %v8054_v58, 16  ;;  %v2281_v42 = vrot.slane %v2279_v3, 4  ;;  %v5635_v62 = vld [vmem:[%s7816_s0 + $0x8] sm:$0xf] }
 0x10a   :  { %5122 = vmatprep.subr.bf16.mxu1 %v5538_v14  ;;  %v2274_v0 = vor.u32 %v2273_v30, %v2272_v10  ;;  %v4367_v10 = vrot.slane %v5635_v62, 11  ;;  %v2546_v15 = vrot.slane %v2544_v16, 4  ;;  %v8058_v30 = vld [vmem:[#allocation29_spill] sm:$0xff] }
 0x10b   :  { %5123 = vmatpush3.bf16.msra.mxu1 %v5538_v14  ;;  %v2287_v2 = vrot.slane %v8055_v21, 6  ;;  %v2288_v13 = vrot.slane %v8056_v31, 7  ;;  %v2296_v14 = vshll.u32 %v6830_v7, 16  ;;  %v2547_v53 = vrot.slane %v8058_v30, 7 }
 0x10c   :  { %5047 = vmatpush3.bf16.msra.mxu0 %v5519_v59  ;;  %5124 = vmatprep.subr.bf16.mxu1 %v5539_v26  ;;  %v8053_v59 = vshrl.u32 %v8052_v55, 16  ;;  %v2276_v41 = vrot.slane %v2274_v0, 4  ;;  %v2275_v4 = vsel %vm6847_vm14, %v2271_v45, %v2274_v0  ;;  %v8061_v55 = vld [vmem:[#allocation14_spill] sm:$0xff]  ;;  %v8064_v45 = vld [vmem:[#allocation32_spill] sm:$0xff] }
 0x10d   :  { %5048 = vmatprep.subr.bf16.mxu0 %v5521_v35  ;;  %v2289_v57 = vor.u32 %v2288_v13, %v2287_v2  ;;  %v2298_v63 = vrot.slane %v2296_v14, 7  ;;  %v2553_v0 = vrot.slane %v8064_v45, 7  ;;  %v2549_v58 = vrot.slane %v2547_v53, 4 }
 0x10e   :  { %v2282_v17 = vrot.slane %v8053_v59, 6  ;;  %5105 = vmatmul.mubr.bf16.gmra.mrb[28].mxu1 %v6379_v25  ;;  %v2550_v59 = vrot.slane %v8061_v55, 7  ;;  %v2559_v14 = vrot.slane %v8065_v49, 7  ;;  %v2590_v45 = vrot.slane %v6706_v5, 7 }
 0x10f   :  { %5029 = vmatmul.mubr.bf16.gmra.mrb[4].mxu0 %v4352_v20  ;;  %5108 = vmatprep.mubr.bf16.mxu1 %v6381_v61  ;;  %v5541_v20 = vld [vmem:[%s7820_s4 + $0x30] sm:$0xff]   ;;  %v2291_v9 = vrot.slane %v2289_v57, 4  ;;  %v2299_v11 = vor.u32 %v2298_v63, %v2295_v56  ;;  %v2555_v31 = vrot.slane %v2553_v0, 4  ;;  %v2599_v49 = vrot.slane %v6757_v1, 7 }
 0x110   :  { %5049 = vmatpush3.bf16.msra.mxu0 %v5521_v35  ;;  %5032 = vmatprep.mubr.bf16.mxu0 %v4353_v51  ;;  %v5524_v35 = vld [vmem:[#allocation2 + $0x228] sm:$0xff]   ;;  %v2284_v32 = vor.u32 %v2283_v54, %v2282_v17  ;;  %v2545_v17 = vsel %vm6971_vm1, %v4367_v10, %v2544_v16  ;;  %v2548_v54 = vsel %vm6971_vm1, %v2546_v15, %v2547_v53  ;;  %v2552_v2 = vrot.slane %v2550_v59, 4  ;;  %v8070_v15 = vld [vmem:[#allocation44_spill] sm:$0xff] }
 0x111   :  { %5050 = vmatprep.subr.bf16.mxu0 %v5522_v33  ;;  %5125 = vmatpush3.bf16.msra.mxu1 %v5539_v26  ;;  %v2280_v26 = vsel %vm6847_vm14, %v2276_v41, %v2279_v3  ;;  %v2300_v3 = vsel %vm6847_vm14, %v2291_v9, %v2299_v11  ;;  %v4369_v21 = vcombine.low %v2545_v17, %v2548_v54  ;;  %v8066_v41 = vld [vmem:[#allocation43_spill] sm:$0xff]  ;;  %v2581_v9 = vrot.slane %v6675_v43, 7 }
 0x112   :  { %5126 = vmatprep.subr.bf16.mxu1 %v5540_v34  ;;  %v2285_v51 = vsel %vm6847_vm14, %v2281_v42, %v2284_v32  ;;  %v2286_v37 = vrot.slane %v2284_v32, 4  ;;  %v2562_v42 = vrot.slane %v8066_v41, 7  ;;  %v4368_v30 = vrot.slane %v8070_v15, 11  ;;  %v8071_v17 = vld [vmem:[#allocation47_spill] sm:$0xff] }
 0x113   :  { %v4357_v27 = vcombine.low %v2280_v26, %v2285_v51  ;;  %v2584_v43 = vrot.slane %v6690_v12, 7  ;;  %v2587_v12 = vrot.slane %v8071_v17, 7 }
 0x114   :  { %5051 = vmatpush3.bf16.msra.mxu0 %v5522_v33  ;;  %v4356_v33 = vcombine.low %v2270_v50, %v2275_v4  ;;  %v2564_v26 = vrot.slane %v2562_v42, 4 }
 0x115   :  { %5052 = vmatprep.subr.bf16.mxu0 %v5523_v38  ;;  %5127 = vmatpush3.bf16.msra.mxu1 %v5540_v34  ;;  %v8062_v34 = vld [vmem:[#allocation40_spill] sm:$0xff] }
 0x116   :  { %5109 = vmatmul.mubr.bf16.gmra.mrb[32].mxu1 %v6501_v40  ;;  %5128 = vmatprep.subr.bf16.mxu1 %v5541_v20 }
 0x117   :  { %5033 = vmatmul.mubr.bf16.gmra.mrb[8].mxu0 %v4354_v44  ;;  %5112 = vmatprep.mubr.bf16.mxu1 %v8057_v39  ;;  %v2556_v44 = vrot.slane %v8062_v34, 7 }
 0x118   :  { %5053 = vmatpush3.bf16.msra.mxu0 %v5523_v38  ;;  %5036 = vmatprep.mubr.bf16.mxu0 %v4355_v36  ;;  %v2290_v38 = vsel %vm6847_vm14, %v2286_v37, %v2289_v57  ;;  %v8063_v36 = vld [vmem:[#allocation31_spill] sm:$0xff]  ;;  %v8067_v57 = vld [vmem:[#allocation42_spill] sm:$0xff] }
 0x119   :  { %5054 = vmatprep.subr.bf16.mxu0 %v5524_v35  ;;  %5129 = vmatpush3.bf16.msra.mxu1 %v5541_v20  ;;  %v4358_v47 = vcombine.low %v2290_v38, %v2300_v3  ;;  %v2558_v13 = vrot.slane %v2556_v44, 4  ;;  %v2557_v32 = vsel %vm6971_vm1, %v2555_v31, %v2556_v44  ;;  %v2568_v20 = vrot.slane %v6622_v48, 7 }
 0x11a   :  { %5130 = vmatprep.subr.bf16.mxu1 %v5542_v28  ;;  %v2565_v56 = vrot.slane %v8067_v57, 7  ;;  %v2583_v3 = vrot.slane %v2581_v9, 4  ;;  %v2593_v44 = vrot.slane %v6721_v52, 7 }
 0x11b   :  { %v2560_v50 = vsel %vm6971_vm1, %v2558_v13, %v2559_v14  ;;  %v2570_v16 = vrot.slane %v2568_v20, 4  ;;  %v8072_v13 = vld [vmem:[#allocation48_spill] sm:$0xff] }
 0x11c   :  { %5055 = vmatpush3.bf16.msra.mxu0 %v5524_v35  ;;  %v2551_v35 = vsel %vm6971_vm1, %v2549_v58, %v2550_v59  ;;  %v4371_v63 = vcombine.low %v2557_v32, %v2560_v50  ;;  %v2567_v51 = vrot.slane %v2565_v56, 4  ;;  %v2585_v34 = vsel %vm6971_vm1, %v2583_v3, %v2584_v43 }
 0x11d   :  { %5056 = vmatprep.subr.bf16.mxu0 %v5525_v6  ;;  %5131 = vmatpush3.bf16.msra.mxu1 %v5542_v28  ;;  %v2571_v28 = vrot.slane %v6784_v18, 7  ;;  %v5544_v18 = vld [vmem:[%s7819_s3 + $0x8] sm:$0xff]   ;;  %v2586_v58 = vrot.slane %v2584_v43, 4  ;;  %v2595_v31 = vrot.slane %v2593_v44, 4  ;;  %v2596_v52 = vrot.slane %v8072_v13, 7 }
 0x11e   :  { %5113 = vmatmul.mubr.bf16.gmra.mrb[36].mxu1 %v8063_v36  ;;  %5152 = vmatprep.subr.bf16.mxu1 %v5543_v19  ;;  %v2601_v32 = vrot.slane %v2599_v49, 4  ;;  %v2602_v50 = vrot.slane %v6830_v7, 7 }
 0x11f   :  { %5037 = vmatmul.mubr.bf16.gmra.mrb[12].mxu0 %v4356_v33  ;;  %5132 = vmatprep.mubr.bf16.mxu1 %v6250_v8  ;;  %v2554_v8 = vsel %vm6971_vm1, %v2552_v2, %v2553_v0  ;;  %v8068_v33 = vld [vmem:[#allocation46_spill] sm:$0xff]  ;;  %v2572_v37 = vsel %vm6971_vm1, %v2570_v16, %v2571_v28  ;;  %v2592_v2 = vrot.slane %v2590_v45, 4  ;;  %v2588_v5 = vsel %vm6971_vm1, %v2586_v58, %v2587_v12 }
 0x120   :  { %5040 = vmatprep.mubr.bf16.mxu0 %v4357_v27  ;;  %5057 = vmatpush3.bf16.msra.mxu0 %v5525_v6  ;;  %v4370_v4 = vcombine.low %v2551_v35, %v2554_v8  ;;  %v2561_v6 = vrot.slane %v2559_v14, 4  ;;  %v2569_v27 = vsel %vm6971_vm1, %v2567_v51, %v2568_v20  ;;  %v2597_v35 = vsel %vm6971_vm1, %v2595_v31, %v2596_v52 }
 0x121   :  { %5058 = vmatprep.subr.bf16.mxu0 %v5526_v23  ;;  %v4373_v10 = vcombine.low %v2569_v27, %v2572_v37  ;;  %v2594_v14 = vsel %vm6971_vm1, %v2592_v2, %v2593_v44  ;;  %v2603_v20 = vsel %vm6971_vm1, %v2601_v32, %v2602_v50  ;;  %v5551_v37 = vld [vmem:[#allocation5] sm:$0xff]  }
 0x122   :  { %v2563_v48 = vsel %vm6971_vm1, %v2561_v6, %v2562_v42  ;;  %v4377_v41 = vcombine.low %v2594_v14, %v2597_v35  ;;  %v2598_v42 = vrot.slane %v2596_v52, 4 }
 0x124   :  { %5059 = vmatpush3.bf16.msra.mxu0 %v5526_v23  ;;  %v8069_v23 = vld [vmem:[#allocation45_spill] sm:$0xff]  ;;  %v2600_v1 = vsel %vm6971_vm1, %v2598_v42, %v2599_v49 }
 0x125   :  { %v2578_v62 = vrot.slane %v8069_v23, 7 }
 0x126   :  { %5133 = vmatmul.mubr.bf16.vlgmr.msra.gmra.mrb[40].mxu1 %v8045_v22  ;;  %v2566_v22 = vsel %vm6971_vm1, %v2564_v26, %v2565_v56 }
 0x127   :  { %5041 = vmatmul.mubr.bf16.gmra.mrb[16].mxu0 %v4358_v47  ;;  %5153 = vmatpush3.bf16.msra.mxu1 %v5543_v19  ;;  %v4372_v11 = vcombine.low %v2563_v48, %v2566_v22  ;;  %v2580_v38 = vrot.slane %v2578_v62, 4  ;;  %v5547_v19 = vld [vmem:[%s7819_s3 + $0x20] sm:$0xff]  }
 0x128   :  { %5060 = vmatprep.mubr.bf16.mxu0 %v4369_v21  ;;  %5136 = vmatprep.mubr.bf16.mxu1 %v8046_v29  ;;  %v2575_v29 = vrot.slane %v8068_v33, 7  ;;  %v2589_v21 = vrot.slane %v2587_v12, 4 }
 0x129   :  { %5154 = vmatprep.subr.bf16.mxu1 %v5544_v18  ;;  %v2582_v54 = vsel %vm6971_vm1, %v2580_v38, %v2581_v9 }
 0x12a   :  { %v2577_v53 = vrot.slane %v2575_v29, 4  ;;  %v2576_v55 = vsel %vm6971_vm1, %v4368_v30, %v2575_v29  ;;  %v4375_v0 = vcombine.low %v2582_v54, %v2585_v34 }
 0x12b   :  { %5155 = vmatpush3.bf16.msra.mxu1 %v5544_v18 }
 0x12c   :  { %v2579_v59 = vsel %vm6971_vm1, %v2577_v53, %v2578_v62 }
 0x12d   :  { %v4374_v47 = vcombine.low %v2576_v55, %v2579_v59 }
 0x12e   :  { %5137 = vmatmul.mubr.bf16.gmra.mrb[44].mxu1 %v8047_v46  ;;  %v5545_v46 = vld [vmem:[%s7819_s3 + $0x10] sm:$0xff]  }
 0x12f   :  { %5061 = vmatmul.mubr.bf16.vlgmr.msra.gmra.mrb[0].mxu0 %v4370_v4  ;;  %5140 = vmatprep.mubr.bf16.mxu1 %v8048_v60  ;;  %v5546_v60 = vld [vmem:[%s7819_s3 + $0x18] sm:$0xff]  }
 0x130   :  { %5064 = vmatprep.mubr.bf16.mxu0 %v4371_v63  ;;  %5156 = vmatprep.subr.bf16.mxu1 %v5545_v46  ;;  %v5550_v63 = vld [vmem:[%s7819_s3 + $0x38] sm:$0xff]  }
 0x131   :  { %5157 = vmatpush3.bf16.msra.mxu1 %v5545_v46 }
 0x132   :  { %5158 = vmatprep.subr.bf16.mxu1 %v5546_v60 }
 0x135   :  { %5159 = vmatpush3.bf16.msra.mxu1 %v5546_v60 }
 0x136   :  { %5141 = vmatmul.mubr.bf16.gmra.mrb[48].mxu1 %v6379_v25  ;;  %5160 = vmatprep.subr.bf16.mxu1 %v5547_v19  ;;  %v5548_v25 = vld [vmem:[%s7819_s3 + $0x28] sm:$0xff]  }
 0x137   :  { %5065 = vmatmul.mubr.bf16.gmra.mrb[4].mxu0 %v4372_v11  ;;  %5144 = vmatprep.mubr.bf16.mxu1 %v6381_v61  ;;  %v2591_v61 = vsel %vm6971_vm1, %v2589_v21, %v2590_v45  ;;  %v7142_v21 = vld [vmem:[%s7822_s6] ss:$0 sm:$0xff] }
 0x138   :  { %5068 = vmatprep.mubr.bf16.mxu0 %v4373_v10  ;;  %v4376_v8 = vcombine.low %v2588_v5, %v2591_v61 }
 0x139   :  { %5161 = vmatpush3.bf16.msra.mxu1 %v5547_v19 }
 0x13a   :  { %5162 = vmatprep.subr.bf16.mxu1 %v5548_v25 }
 0x13d   :  { %5163 = vmatpush3.bf16.msra.mxu1 %v5548_v25 }
 0x13e   :  { %5145 = vmatmul.mubr.bf16.gmra.mrb[52].mxu1 %v6501_v40  ;;  %v4378_v40 = vcombine.low %v2600_v1, %v2603_v20 }
 0x13f   :  { %5069 = vmatmul.mubr.bf16.gmra.mrb[8].mxu0 %v4374_v47  ;;  %5148 = vmatprep.mubr.bf16.mxu1 %v8057_v39  ;;  %v5549_v39 = vld [vmem:[%s7819_s3 + $0x30] sm:$0xff]  }
 0x140   :  { %5072 = vmatprep.mubr.bf16.mxu0 %v4375_v0  ;;  %5164 = vmatprep.subr.bf16.mxu1 %v5549_v39 }
 0x141   :  { %5165 = vmatpush3.bf16.msra.mxu1 %v5549_v39 }
 0x142   :  { %5166 = vmatprep.subr.bf16.mxu1 %v5550_v63 }
 0x145   :  { %5167 = vmatpush3.bf16.msra.mxu1 %v5550_v63  ;;  %v5552_v63 = vld [vmem:[#allocation5 + $0x8] sm:$0xff]  }
 0x146   :  { %5149 = vmatmul.mubr.bf16.gmra.mrb[56].mxu1 %v8063_v36  ;;  %5188 = vmatprep.subr.bf16.mxu1 %v5551_v37 }
 0x147   :  { %5073 = vmatmul.mubr.bf16.gmra.mrb[12].mxu0 %v4376_v8 }
 0x148   :  { %5076 = vmatprep.mubr.bf16.mxu0 %v4377_v41 }
 0x14f   :  { %5077 = vmatmul.mubr.bf16.gmra.mrb[16].mxu0 %v4378_v40 }
 0x184   :  { %v4810_v4 = vpop.f32.mrb[0].mxu1 }
 0x185   :  { %v801_v57 = vpop.f32.mrb[1].mxu1 }
 0x186   :  { %v4811_v7 = vpop.f32.mrb[2].mxu1 }
 0x187   :  { %v804_v56 = vpop.f32.mrb[3].mxu1 }
 0x18d   :  { %v4814_v24 = vpop.f32.mrb[4].mxu1 }
 0x18e   :  { %v817_v36 = vpop.f32.mrb[5].mxu1 }
 0x18f   :  { %v4815_v6 = vpop.f32.mrb[6].mxu1 }
 0x190   :  { %v7073_v26 = vpop.f32.mrb[7].mxu1 }
 0x195   :  { %v7075_v51 = vpop.f32.mrb[8].mxu1 }
 0x196   :  { %v7077_v16 = vpop.f32.mrb[9].mxu1 }
 0x197   :  { %v7079_v28 = vpop.f32.mrb[10].mxu1 }
 0x198   :  { %v7081_v48 = vpop.f32.mrb[11].mxu1 }
 0x19d   :  { %v7083_v22 = vpop.f32.mrb[12].mxu1 }
 0x19e   :  { %v7085_v33 = vpop.f32.mrb[13].mxu1 }
 0x19f   :  { %v7087_v29 = vpop.f32.mrb[14].mxu1 }
 0x1a0   :  { %v7089_v27 = vpop.f32.mrb[15].mxu1 }
 0x1b1   :  { %v7091_v9 = vpop.f32.mrb[16].mxu1 }
 0x1b2   :  { %v7093_v18 = vpop.f32.mrb[17].mxu1 }
 0x1b3   :  { %v7095_v11 = vpop.f32.mrb[18].mxu1 }
 0x1b4   :  { %v7097_v23 = vpop.f32.mrb[19].mxu1 }
 0x1d1   :  { %v7099_v62 = vpop.f32.mrb[20].mxu1 }
 0x1d2   :  { %v7101_v10 = vpop.f32.mrb[21].mxu1 }
 0x1d3   :  { %v7103_v15 = vpop.f32.mrb[22].mxu1 }
 0x1d4   :  { %v7105_v30 = vpop.f32.mrb[23].mxu1 }
 0x1d9   :  { %v7107_v53 = vpop.f32.mrb[24].mxu1 }
 0x1da   :  { %v7109_v38 = vpop.f32.mrb[25].mxu1 }
 0x1db   :  { %v7111_v3 = vpop.f32.mrb[26].mxu1 }
 0x1dc   :  { %v7113_v43 = vpop.f32.mrb[27].mxu1 }
 0x1e1   :  { %v7115_v46 = vpop.f32.mrb[28].mxu1 }
 0x1e2   :  { %8073 = vst [vmem:[#allocation17_spill] sm:$0xff] %v7115_v46  ;;  %v7117_v60 = vpop.f32.mrb[29].mxu1 }
 0x1e3   :  { %v7119_v55 = vpop.f32.mrb[30].mxu1 }
 0x1e4   :  { %8074 = vst [vmem:[#allocation18_spill] sm:$0xff] %v7119_v55  ;;  %v7121_v59 = vpop.f32.mrb[31].mxu1 }
 0x1e9   :  { %v7123_v17 = vpop.f32.mrb[32].mxu1 }
 0x1ea   :  { %8075 = vst [vmem:[#allocation19_spill] sm:$0xff] %v7123_v17  ;;  %v7125_v12 = vpop.f32.mrb[33].mxu1 }
 0x1eb   :  { %8076 = vst [vmem:[#allocation20_spill] sm:$0xff] %v7125_v12  ;;  %v7127_v54 = vpop.f32.mrb[34].mxu1 }
 0x1ec   :  { %8077 = vst [vmem:[#allocation21_spill] sm:$0xff] %v7127_v54  ;;  %v7129_v34 = vpop.f32.mrb[35].mxu1 }
 0x1ed   :  { %8078 = vst [vmem:[#allocation22_spill] sm:$0xff] %v7129_v34 }
 0x1f1   :  { %v7131_v44 = vpop.f32.mrb[36].mxu1 }
 0x1f2   :  { %8079 = vst [vmem:[#allocation23_spill] sm:$0xff] %v7131_v44  ;;  %v7133_v19 = vpop.f32.mrb[37].mxu1 }
 0x1f3   :  { %8080 = vst [vmem:[#allocation24_spill] sm:$0xff] %v7133_v19  ;;  %v7135_v47 = vpop.f32.mrb[38].mxu1 }
 0x1f4   :  { %8081 = vst [vmem:[#allocation27_spill] sm:$0xff] %v7135_v47  ;;  %v7137_v45 = vpop.f32.mrb[39].mxu1 }
 0x1f5   :  { %8082 = vst [vmem:[#allocation28_spill] sm:$0xff] %v7137_v45 }
 0x202   :  { %v5062_v0 = vpop.f32.mrb[0].mxu0 }
 0x203   :  { %v5240_v58 = vadd.f32 %v5062_v0, %v4810_v4  ;;  %v2743_v2 = vpop.f32.mrb[1].mxu0 }
 0x204   :  { %v5241_v31 = vadd.f32 %v2743_v2, %v801_v57  ;;  %v5063_v13 = vpop.f32.mrb[2].mxu0 }
 0x205   :  { %v5242_v52 = vadd.f32 %v5063_v13, %v4811_v7  ;;  %v2746_v25 = vpop.f32.mrb[3].mxu0  ;;  %v7148_v49 = vadd.f32 %v5240_v58, %v7142_v21 }
 0x206   :  { %v7145_v5 = vadd.f32 %v5241_v31, %v7142_v21  ;;  %v5243_v61 = vadd.f32 %v2746_v25, %v804_v56  ;;  %v5553_v31 = vld [vmem:[#allocation5 + $0x10] sm:$0xff]  }
 0x207   :  { %v7151_v14 = vadd.f32 %v5242_v52, %v7142_v21  ;;  %v7916_v50 = vmax.f32 %v7148_v49, 0.0 }
 0x208   :  { %v7154_v35 = vadd.f32 %v5243_v61, %v7142_v21  ;;  %v7918_v41 = vmax.f32 %v7145_v5, 0.0 }
 0x209   :  { %v7915_v8 = vmax.f32 %v7151_v14, 0.0 }
 0x20a   :  { %v7917_v42 = vmax.f32 %v7154_v35, 0.0  ;;  %v5066_v32 = vpop.f32.mrb[4].mxu0 }
 0x20b   :  { %v5244_v1 = vadd.f32 %v5066_v32, %v4814_v24  ;;  %v2759_v20 = vpop.f32.mrb[5].mxu0  ;;  %v3074_v57 = vpack.c.bf16 %v7915_v8, %v7916_v50 }
 0x20c   :  { %v5245_v40 = vadd.f32 %v2759_v20, %v817_v36  ;;  %v5067_v39 = vpop.f32.mrb[6].mxu0  ;;  %v3073_v4 = vpack.c.bf16 %v7917_v42, %v7918_v41 }
 0x20d   :  { %v5246_v7 = vadd.f32 %v5067_v39, %v4815_v6  ;;  %v2762_v56 = vpop.f32.mrb[7].mxu0  ;;  %v7173_v36 = vadd.f32 %v5244_v1, %v7142_v21 }
 0x20e   :  { %v7169_v0 = vadd.f32 %v5245_v40, %v7142_v21  ;;  %v5247_v24 = vadd.f32 %v2762_v56, %v7073_v26  ;;  %5168 = vmatprep.mubr.bf16.mxu1 %v3073_v4 }
 0x20f   :  { %8083 = vst [vmem:[#allocation25_spill] sm:$0xff] %v7173_v36  ;;  %v7176_v58 = vadd.f32 %v5246_v7, %v7142_v21  ;;  %5169 = vmatmul.mubr.bf16.vlgmr.msra.gmra.mrb[40].mxu1 %v3074_v57  ;;  %v7912_v25 = vmax.f32 %v7173_v36, 0.0 }
 0x210   :  { %v7179_v2 = vadd.f32 %v5247_v24, %v7142_v21  ;;  %5189 = vmatpush3.bf16.msra.mxu1 %v5551_v37  ;;  %v7914_v13 = vmax.f32 %v7169_v0, 0.0  ;;  %v5555_v24 = vld [vmem:[#allocation5 + $0x20] sm:$0xff]  }
 0x211   :  { %8084 = vst [vmem:[#allocation26_spill] sm:$0xff] %v7176_v58  ;;  %v7911_v6 = vmax.f32 %v7176_v58, 0.0  ;;  %5190 = vmatprep.subr.bf16.mxu1 %v5552_v63 }
 0x212   :  { %v7913_v26 = vmax.f32 %v7179_v2, 0.0  ;;  %v5070_v52 = vpop.f32.mrb[8].mxu0 }
 0x213   :  { %v5248_v61 = vadd.f32 %v5070_v52, %v7075_v51  ;;  %v2775_v32 = vpop.f32.mrb[9].mxu0  ;;  %v3076_v4 = vpack.c.bf16 %v7911_v6, %v7912_v25  ;;  %v5554_v51 = vld [vmem:[#allocation5 + $0x18] sm:$0xff]  }
 0x214   :  { %v5249_v1 = vadd.f32 %v2775_v32, %v7077_v16  ;;  %v5071_v20 = vpop.f32.mrb[10].mxu0  ;;  %v3075_v37 = vpack.c.bf16 %v7913_v26, %v7914_v13  ;;  %5191 = vmatpush3.bf16.msra.mxu1 %v5552_v63 }
 0x215   :  { %v5250_v40 = vadd.f32 %v5071_v20, %v7079_v28  ;;  %v2778_v39 = vpop.f32.mrb[11].mxu0  ;;  %5192 = vmatprep.subr.bf16.mxu1 %v5553_v31  ;;  %v7201_v7 = vadd.f32 %v5248_v61, %v7142_v21 }
 0x216   :  { %v7197_v57 = vadd.f32 %v5249_v1, %v7142_v21  ;;  %v5251_v16 = vadd.f32 %v2778_v39, %v7081_v48  ;;  %5172 = vmatprep.mubr.bf16.mxu1 %v3075_v37 }
 0x217   :  { %8086 = vst [vmem:[#allocation15_spill] sm:$0xff] %v7201_v7  ;;  %v7204_v56 = vadd.f32 %v5250_v40, %v7142_v21  ;;  %5173 = vmatmul.mubr.bf16.gmra.mrb[44].mxu1 %v3076_v4  ;;  %v7900_v61 = vmax.f32 %v7201_v7, 0.0 }
 0x218   :  { %8085 = vst [vmem:[#allocation30_spill] sm:$0xff] %v7197_v57  ;;  %v7207_v28 = vadd.f32 %v5251_v16, %v7142_v21  ;;  %5193 = vmatpush3.bf16.msra.mxu1 %v5553_v31  ;;  %v7910_v52 = vmax.f32 %v7197_v57, 0.0 }
 0x219   :  { %8087 = vst [vmem:[#allocation11_spill] sm:$0xff] %v7204_v56  ;;  %v7899_v63 = vmax.f32 %v7204_v56, 0.0  ;;  %5194 = vmatprep.subr.bf16.mxu1 %v5554_v51 }
 0x21a   :  { %8088 = vst [vmem:[#allocation33_spill] sm:$0xff] %v7207_v28  ;;  %v7901_v48 = vmax.f32 %v7207_v28, 0.0  ;;  %v5074_v32 = vpop.f32.mrb[12].mxu0 }
 0x21b   :  { %v5252_v1 = vadd.f32 %v5074_v32, %v7083_v22  ;;  %v2791_v20 = vpop.f32.mrb[13].mxu0  ;;  %v3078_v16 = vpack.c.bf16 %v7899_v63, %v7900_v61  ;;  %v5556_v22 = vld [vmem:[#allocation5 + $0x28] sm:$0xff]  }
 0x21c   :  { %v5253_v37 = vadd.f32 %v2791_v20, %v7085_v33  ;;  %v5075_v40 = vpop.f32.mrb[14].mxu0  ;;  %v3077_v31 = vpack.c.bf16 %v7901_v48, %v7910_v52  ;;  %5195 = vmatpush3.bf16.msra.mxu1 %v5554_v51 }
 0x21d   :  { %v5254_v39 = vadd.f32 %v5075_v40, %v7087_v29  ;;  %v2794_v4 = vpop.f32.mrb[15].mxu0  ;;  %5196 = vmatprep.subr.bf16.mxu1 %v5555_v24  ;;  %v7229_v20 = vadd.f32 %v5252_v1, %v7142_v21 }
 0x21e   :  { %v7225_v32 = vadd.f32 %v5253_v37, %v7142_v21  ;;  %v5255_v33 = vadd.f32 %v2794_v4, %v7089_v27  ;;  %5176 = vmatprep.mubr.bf16.mxu1 %v3077_v31 }
 0x21f   :  { %8090 = vst [vmem:[#allocation35_spill] sm:$0xff] %v7229_v20  ;;  %v7232_v51 = vadd.f32 %v5254_v39, %v7142_v21  ;;  %5177 = vmatmul.mubr.bf16.gmra.mrb[48].mxu1 %v3078_v16  ;;  %v7907_v31 = vmax.f32 %v7229_v20, 0.0 }
 0x220   :  { %8089 = vst [vmem:[#allocation34_spill] sm:$0xff] %v7225_v32  ;;  %v7235_v29 = vadd.f32 %v5255_v33, %v7142_v21  ;;  %5197 = vmatpush3.bf16.msra.mxu1 %v5555_v24  ;;  %v7909_v37 = vmax.f32 %v7225_v32, 0.0 }
 0x221   :  { %8091 = vst [vmem:[#allocation36_spill] sm:$0xff] %v7232_v51  ;;  %v7902_v40 = vmax.f32 %v7232_v51, 0.0  ;;  %5198 = vmatprep.subr.bf16.mxu1 %v5556_v22 }
 0x222   :  { %8092 = vst [vmem:[#allocation37_spill] sm:$0xff] %v7235_v29  ;;  %v7908_v63 = vmax.f32 %v7235_v29, 0.0  ;;  %v5078_v27 = vpop.f32.mrb[16].mxu0 }
 0x223   :  { %v5256_v1 = vadd.f32 %v5078_v27, %v7091_v9  ;;  %v2807_v4 = vpop.f32.mrb[17].mxu0  ;;  %v3080_v48 = vpack.c.bf16 %v7902_v40, %v7907_v31 }
 0x224   :  { %v5257_v39 = vadd.f32 %v2807_v4, %v7093_v18  ;;  %v5079_v16 = vpop.f32.mrb[18].mxu0  ;;  %v3079_v24 = vpack.c.bf16 %v7908_v63, %v7909_v37  ;;  %5199 = vmatpush3.bf16.msra.mxu1 %v5556_v22 }
 0x225   :  { %v5258_v33 = vadd.f32 %v5079_v16, %v7095_v11  ;;  %v2810_v61 = vpop.f32.mrb[19].mxu0  ;;  %v7257_v27 = vadd.f32 %v5256_v1, %v7142_v21  ;;  %v7280_v1 = vld [vmem:[%s7824_s8] ss:$0 sm:$0xff] }
 0x226   :  { %v7253_v9 = vadd.f32 %v5257_v39, %v7142_v21  ;;  %v5259_v18 = vadd.f32 %v2810_v61, %v7097_v23  ;;  %5180 = vmatprep.mubr.bf16.mxu1 %v3079_v24  ;;  %v5558_v61 = vld [vmem:[#allocation5 + $0x38] sm:$0xff]  }
 0x227   :  { %8094 = vst [vmem:[#allocation39_spill] sm:$0xff] %v7257_v27  ;;  %v7260_v4 = vadd.f32 %v5258_v33, %v7142_v21  ;;  %5181 = vmatmul.mubr.bf16.gmra.mrb[52].mxu1 %v3080_v48  ;;  %v7905_v40 = vmax.f32 %v7257_v27, 0.0 }
 0x228   :  { %8093 = vst [vmem:[#allocation38_spill] sm:$0xff] %v7253_v9  ;;  %v7263_v11 = vadd.f32 %v5259_v18, %v7142_v21  ;;  %v7906_v16 = vmax.f32 %v7253_v9, 0.0  ;;  %v5557_v21 = vld [vmem:[#allocation5 + $0x30] sm:$0xff]  }
 0x229   :  { %8095 = vst [vmem:[#allocation13_spill] sm:$0xff] %v7260_v4  ;;  %v7904_v22 = vmax.f32 %v7260_v4, 0.0  ;;  %5200 = vmatprep.subr.bf16.mxu1 %v5557_v21 }
 0x22a   :  { %8096 = vst [vmem:[#allocation16_spill] sm:$0xff] %v7263_v11  ;;  %v7903_v39 = vmax.f32 %v7263_v11, 0.0  ;;  %5201 = vmatpush3.bf16.msra.mxu1 %v5557_v21 }
 0x22b   :  { %v3082_v48 = vpack.c.bf16 %v7904_v22, %v7905_v40  ;;  %5202 = vmatprep.subr.bf16.mxu1 %v5558_v61 }
 0x22c   :  { %v3081_v23 = vpack.c.bf16 %v7903_v39, %v7906_v16 }
 0x22e   :  { %5184 = vmatprep.mubr.bf16.mxu1 %v3081_v23  ;;  %5203 = vmatpush3.bf16.msra.mxu1 %v5558_v61 }
 0x22f   :  { %5185 = vmatmul.mubr.bf16.gmra.mrb[56].mxu1 %v3082_v48 }
 0x2e2   :  { %v5170_v24 = vpop.f32.mrb[40].mxu1 }
 0x2e3   :  { %v3446_v33 = vadd.f32 %v5170_v24, %v7280_v1  ;;  %v3358_v18 = vpop.f32.mrb[41].mxu1 }
 0x2e4   :  { %v3444_v39 = vadd.f32 %v7280_v1, %v3358_v18  ;;  %v5171_v22 = vpop.f32.mrb[42].mxu1 }
 0x2e5   :  { %v3447_v23 = vadd.f32 %v5171_v22, %v7280_v1  ;;  %v3361_v48 = vpop.f32.mrb[43].mxu1  ;;  %v3466_v40 = vmax.f32 %v3446_v33, 0.0 }
 0x2e6   :  { %v3445_v21 = vadd.f32 %v7280_v1, %v3361_v48  ;;  %v3464_v61 = vmax.f32 %v3444_v39, 0.0 }
 0x2e7   :  { %v3467_v16 = vmax.f32 %v3447_v23, 0.0 }
 0x2e8   :  { %v3465_v31 = vmax.f32 %v3445_v21, 0.0 }
 0x2e9   :  { %v3485_v63 = vpack.c.bf16 %v3467_v16, %v3466_v40 }
 0x2ea   :  { %v3484_v37 = vpack.c.bf16 %v3465_v31, %v3464_v61  ;;  %v5174_v52 = vpop.f32.mrb[44].mxu1 }
 0x2eb   :  { %v3450_v6 = vadd.f32 %v5174_v52, %v7280_v1  ;;  %v3374_v25 = vpop.f32.mrb[45].mxu1 }
 0x2ec   :  { %v3448_v24 = vadd.f32 %v7280_v1, %v3374_v25  ;;  %v5175_v26 = vpop.f32.mrb[46].mxu1  ;;  %5204 = vmatprep.mubr.bf16.mxu1 %v3484_v37 }
 0x2ed   :  { %v3451_v18 = vadd.f32 %v5175_v26, %v7280_v1  ;;  %v3377_v22 = vpop.f32.mrb[47].mxu1  ;;  %5205 = vmatmul.mubr.bf16.vlgmr.msra.gmra.mrb[60].mxu1 %v3485_v63  ;;  %v3470_v33 = vmax.f32 %v3450_v6, 0.0 }
 0x2ee   :  { %v3449_v48 = vadd.f32 %v7280_v1, %v3377_v22  ;;  %v3468_v39 = vmax.f32 %v3448_v24, 0.0 }
 0x2ef   :  { %v3471_v23 = vmax.f32 %v3451_v18, 0.0 }
 0x2f0   :  { %v3469_v21 = vmax.f32 %v3449_v48, 0.0 }
 0x2f1   :  { %v3487_v40 = vpack.c.bf16 %v3471_v23, %v3470_v33 }
 0x2f2   :  { %v3486_v31 = vpack.c.bf16 %v3469_v21, %v3468_v39  ;;  %v5178_v16 = vpop.f32.mrb[48].mxu1 }
 0x2f3   :  { %v3454_v52 = vadd.f32 %v5178_v16, %v7280_v1  ;;  %v3390_v61 = vpop.f32.mrb[49].mxu1 }
 0x2f4   :  { %v3452_v25 = vadd.f32 %v7280_v1, %v3390_v61  ;;  %v5179_v13 = vpop.f32.mrb[50].mxu1  ;;  %5208 = vmatprep.mubr.bf16.mxu1 %v3486_v31 }
 0x2f5   :  { %v3455_v26 = vadd.f32 %v5179_v13, %v7280_v1  ;;  %v3393_v37 = vpop.f32.mrb[51].mxu1  ;;  %5209 = vmatmul.mubr.bf16.gmra.mrb[64].mxu1 %v3487_v40  ;;  %v3474_v6 = vmax.f32 %v3454_v52, 0.0 }
 0x2f6   :  { %v3453_v63 = vadd.f32 %v7280_v1, %v3393_v37  ;;  %v3472_v24 = vmax.f32 %v3452_v25, 0.0 }
 0x2f7   :  { %v3475_v18 = vmax.f32 %v3455_v26, 0.0 }
 0x2f8   :  { %v3473_v22 = vmax.f32 %v3453_v63, 0.0 }
 0x2f9   :  { %v3489_v48 = vpack.c.bf16 %v3475_v18, %v3474_v6 }
 0x2fa   :  { %v3488_v33 = vpack.c.bf16 %v3473_v22, %v3472_v24  ;;  %v5182_v23 = vpop.f32.mrb[52].mxu1 }
 0x2fb   :  { %v3458_v39 = vadd.f32 %v5182_v23, %v7280_v1  ;;  %v3406_v21 = vpop.f32.mrb[53].mxu1 }
 0x2fc   :  { %v3456_v16 = vadd.f32 %v7280_v1, %v3406_v21  ;;  %v5183_v61 = vpop.f32.mrb[54].mxu1  ;;  %5212 = vmatprep.mubr.bf16.mxu1 %v3488_v33 }
 0x2fd   :  { %v3459_v13 = vadd.f32 %v5183_v61, %v7280_v1  ;;  %v3409_v31 = vpop.f32.mrb[55].mxu1  ;;  %5213 = vmatmul.mubr.bf16.gmra.mrb[68].mxu1 %v3489_v48  ;;  %v3478_v52 = vmax.f32 %v3458_v39, 0.0 }
 0x2fe   :  { %v3457_v40 = vadd.f32 %v7280_v1, %v3409_v31  ;;  %v3476_v25 = vmax.f32 %v3456_v16, 0.0 }
 0x2ff   :  { %v3479_v26 = vmax.f32 %v3459_v13, 0.0 }
 0x300   :  { %v3477_v37 = vmax.f32 %v3457_v40, 0.0 }
 0x301   :  { %v3491_v63 = vpack.c.bf16 %v3479_v26, %v3478_v52  ;;  %v3678_v26 = vlaneseq }
 0x302   :  { %v3490_v6 = vpack.c.bf16 %v3477_v37, %v3476_v25  ;;  %v5186_v18 = vpop.f32.mrb[56].mxu1 }
 0x303   :  { %v3462_v24 = vadd.f32 %v5186_v18, %v7280_v1  ;;  %v3422_v22 = vpop.f32.mrb[57].mxu1  ;;  %v3679_v25 = vshrl.u32 %v3678_v26, 7 }
 0x304   :  { %v3460_v23 = vadd.f32 %v7280_v1, %v3422_v22  ;;  %v5187_v21 = vpop.f32.mrb[58].mxu1  ;;  %5216 = vmatprep.mubr.bf16.mxu1 %v3490_v6 }
 0x305   :  { %v3463_v33 = vadd.f32 %v5187_v21, %v7280_v1  ;;  %v3425_v61 = vpop.f32.mrb[59].mxu1  ;;  %5217 = vmatmul.mubr.bf16.gmra.mrb[72].mxu1 %v3491_v63  ;;  %v3482_v39 = vmax.f32 %v3462_v24, 0.0  ;;  %v3681_v37 = vadd.s32 16, %v3679_v25  ;;  %v3682_v18 = vadd.s32 24, %v3679_v25 }
 0x306   :  { %v3461_v48 = vadd.f32 %v7280_v1, %v3425_v61  ;;  %v3480_v16 = vmax.f32 %v3460_v23, 0.0  ;;  %v3680_v22 = vadd.s32 8, %v3679_v25  ;;  %v7332_v9 = vadd.s32 72, %v3679_v25 }
 0x307   :  { %v3483_v13 = vmax.f32 %v3463_v33, 0.0  ;;  %v7302_v6 = vmul.u32.u64.low 3435973837, %v3681_v37  ;;  %v7303_v8 = vmul.u32.u64.high 3435973837, %v3681_v37, %v7302_v6 }
 0x308   :  { %v3481_v31 = vmax.f32 %v3461_v48, 0.0  ;;  %v7305_v21 = vmul.u32.u64.low 3435973837, %v3679_v25  ;;  %v7306_v63 = vmul.u32.u64.high 3435973837, %v3679_v25, %v7305_v21  ;;  %v3686_v6 = vadd.s32 56, %v3679_v25 }
 0x309   :  { %v3493_v40 = vpack.c.bf16 %v3483_v13, %v3482_v39  ;;  %v7308_v1 = vmul.u32.u64.low 3435973837, %v3682_v18  ;;  %v7309_v24 = vmul.u32.u64.high 3435973837, %v3682_v18, %v7308_v1  ;;  %v3717_v61 = vshrl.u32 %v7303_v8, 3 }
 0x30a   :  { %v3492_v52 = vpack.c.bf16 %v3481_v31, %v3480_v16  ;;  %v7311_v23 = vmul.u32.u64.low 3435973837, %v3680_v22  ;;  %v7312_v33 = vmul.u32.u64.high 3435973837, %v3680_v22, %v7311_v23  ;;  %v3695_v48 = vshrl.u32 %v7306_v63, 3 }
 0x30b   :  { %v3685_v39 = vadd.s32 48, %v3679_v25  ;;  %v3683_v13 = vadd.s32 32, %v3679_v25  ;;  %v3728_v16 = vshrl.u32 %v7309_v24, 3 }
 0x30c   :  { %5220 = vmatprep.mubr.bf16.mxu1 %v3492_v52  ;;  %v3706_v31 = vshrl.u32 %v7312_v33, 3  ;;  %v3718_v52 = vmul.u32 10, %v3717_v61  ;;  %v3696_v26 = vmul.u32 10, %v3695_v48  ;;  %v7330_v33 = vadd.s32 64, %v3679_v25 }
 0x30d   :  { %5221 = vmatmul.mubr.bf16.gmra.mrb[76].mxu1 %v3493_v40  ;;  %v3684_v40 = vadd.s32 40, %v3679_v25  ;;  %v7318_v21 = vmul.u32.u64.low 3435973837, %v3685_v39  ;;  %v7319_v50 = vmul.u32.u64.high 3435973837, %v3685_v39, %v7318_v21  ;;  %v3729_v23 = vmul.u32 10, %v3728_v16 }
 0x30e   :  { %v7321_v1 = vmul.u32.u64.low 3435973837, %v3683_v13  ;;  %v7322_v42 = vmul.u32.u64.high 3435973837, %v3683_v13, %v7321_v1  ;;  %v3707_v8 = vmul.u32 10, %v3706_v31  ;;  %v3719_v4 = vsub.s32 %v3681_v37, %v3718_v52 }
 0x30f   :  { %v7324_v41 = vmul.u32.u64.low 3435973837, %v3684_v40  ;;  %v7325_v63 = vmul.u32.u64.high 3435973837, %v3684_v40, %v7324_v41  ;;  %v3697_v27 = vsub.s32 %v3679_v25, %v3696_v26  ;;  %v3730_v61 = vsub.s32 %v3682_v18, %v3729_v23 }
 0x310   :  { %v7327_v24 = vmul.u32.u64.low 3435973837, %v3686_v6  ;;  %v7328_v11 = vmul.u32.u64.high 3435973837, %v3686_v6, %v7327_v24  ;;  %v3708_v48 = vsub.s32 %v3680_v22, %v3707_v8  ;;  %vm3801_vm2 = vcmp.ne.s32.totalorder %v3719_v4, 0 }
 0x311   :  { %vm3811_vm3 = vcmp.lt.s32.totalorder %v3719_v4, 0  ;;  %vm3799_vm4 = vcmp.ne.s32.totalorder %v3697_v27, 0  ;;  %vm3809_vm5 = vcmp.lt.s32.totalorder %v3697_v27, 0  ;;  %v3761_v16 = vshrl.u32 %v7319_v50, 3 }
 0x312   :  { %v3739_v31 = vshrl.u32 %v7322_v42, 3  ;;  %v7337_v41 = vmul.u32.u64.low 3435973837, %v7330_v33  ;;  %v7338_v37 = vmul.u32.u64.high 3435973837, %v7330_v33, %v7337_v41  ;;  %vm3802_vm6 = vcmp.ne.s32.totalorder %v3730_v61, 0  ;;  %vm7340_vm9 = vmand %vm3811_vm3, %vm3801_vm2 }
 0x313   :  { %vm3812_vm7 = vcmp.lt.s32.totalorder %v3730_v61, 0  ;;  %vm3800_vm8 = vcmp.ne.s32.totalorder %v3708_v48, 0  ;;  %vm3810_vm10 = vcmp.lt.s32.totalorder %v3708_v48, 0  ;;  %v3750_v25 = vshrl.u32 %v7325_v63, 3  ;;  %vm7349_vm11 = vmand %vm3809_vm5, %vm3799_vm4 }
 0x314   :  { %v7346_v22 = vmul.u32.u64.low 3435973837, %v7332_v9  ;;  %v7347_v52 = vmul.u32.u64.high 3435973837, %v7332_v9, %v7346_v22  ;;  %v3831_v50 = vadd.s32 10, %v3719_v4  ;;  %v3829_v26 = vadd.s32 10, %v3697_v27  ;;  %vm7354_vm12 = vmand %vm3812_vm7, %vm3802_vm6 }
 0x315   :  { %v3832_v21 = vadd.s32 10, %v3730_v61  ;;  %v3772_v1 = vshrl.u32 %v7328_v11, 3  ;;  %v3830_v8 = vadd.s32 10, %v3708_v48  ;;  %v3762_v24 = vmul.u32 10, %v3761_v16  ;;  %vm7359_vm13 = vmand %vm3810_vm10, %vm3800_vm8 }
 0x316   :  { %v3740_v63 = vmul.u32 10, %v3739_v31  ;;  %v3751_v22 = vmul.u32 10, %v3750_v25  ;;  %v3841_v51 = vsel %vm7340_vm9, %v3831_v50, %v3719_v4  ;;  %v3839_v20 = vsel %vm7349_vm11, %v3829_v26, %v3697_v27  ;;  %v7375_v25 = vld [vmem:[%s7825_s9] ss:$0 sm:$0xff] }
 0x317   :  { %v3842_v11 = vsel %vm7354_vm12, %v3832_v21, %v3730_v61  ;;  %v3773_v29 = vmul.u32 10, %v3772_v1  ;;  %v3840_v16 = vsel %vm7359_vm13, %v3830_v8, %v3708_v48  ;;  %v3763_v31 = vsub.s32 %v3685_v39, %v3762_v24  ;;  %v7683_v1 = vld [vmem:[%s7823_s7] ss:$0 sm:$0xff]  ;;  %s5712_s7 = smov [#allocation7]  }
 0x318   :  { %v3741_v32 = vsub.s32 %v3683_v13, %v3740_v63  ;;  %v3783_v56 = vshrl.u32 %v7338_v37, 3  ;;  %vm7377_vm14 = vcmp.lt.s32.totalorder %v3841_v51, 8  ;;  %v3752_v27 = vsub.s32 %v3684_v40, %v3751_v22  ;;  %s4206_s29 = sshll.u32 %s5712_s7, 4  ;;  %s4207_s29 = int_to_ptr.vmem [resolvable:$true] %s4206_s29 }
 0x319   :  { %v3794_v61 = vshrl.u32 %v7347_v52, 3  ;;  %vm7382_vm15 = vcmp.lt.s32.totalorder %v3839_v20, 8  ;;  %vm7386_vm0 = vcmp.lt.s32.totalorder %v3842_v11, 8  ;;  %vm7390_vm1 = vcmp.lt.s32.totalorder %v3840_v16, 8  ;;  %s5680_s30 = scalar_lea.vmem %s4207_s29, 1280  ;;  %p5685_p3 = scmp.lt.s32.totalorder %s4207_s29, %s4207_s29 }
 0x31a   :  { %v3774_v48 = vsub.s32 %v3686_v6, %v3773_v29  ;;  %vm3805_vm2 = vcmp.ne.s32.totalorder %v3763_v31, 0  ;;  %vm3803_vm3 = vcmp.ne.s32.totalorder %v3741_v32, 0  ;;  %vm3813_vm4 = vcmp.lt.s32.totalorder %v3741_v32, 0  ;;  %p5681_p2 = scmp.ne.s32.totalorder %s4207_s29, %s5680_s30  ;;  %p5686_p4 = scmp.lt.s32.totalorder %s5680_s30, %s5680_s30 }
 0x31b   :  { %v3784_v40 = vmul.u32 10, %v3783_v56  ;;  %vm3815_vm5 = vcmp.lt.s32.totalorder %v3763_v31, 0  ;;  %v3835_v52 = vadd.s32 10, %v3763_v31  ;;  %v3833_v50 = vadd.s32 10, %v3741_v32  ;;  %vm7408_vm8 = vmand %vm3813_vm4, %vm3803_vm3 }
 0x31c   :  { %vm3804_vm6 = vcmp.ne.s32.totalorder %v3752_v27, 0  ;;  %vm3814_vm7 = vcmp.lt.s32.totalorder %v3752_v27, 0  ;;  %v3795_v21 = vmul.u32 10, %v3794_v61  ;;  %vm3806_vm9 = vcmp.ne.s32.totalorder %v3774_v48, 0  ;;  %vm7420_vm11 = vmand %vm3815_vm5, %vm3805_vm2  ;;  %p5687_p5 = por %p5686_p4, %p5685_p3 }
 0x31d   :  { %vm3816_vm10 = vcmp.lt.s32.totalorder %v3774_v48, 0  ;;  %v3834_v63 = vadd.s32 10, %v3752_v27  ;;  %v3785_v41 = vsub.s32 %v7330_v33, %v3784_v40  ;;  %v3836_v16 = vadd.s32 10, %v3774_v48  ;;  %vm7430_vm12 = vmand %vm3814_vm7, %vm3804_vm6 }
 0x31e   :  { %vm7439_vm13 = vmand %vm3816_vm10, %vm3806_vm9  ;;  %v3796_v40 = vsub.s32 %v7332_v9, %v3795_v21  ;;  %p5688_p6 = pnand %p5687_p5, %p5681_p2 }
 0x31f   :  { %vm3807_vm2 = vcmp.ne.s32.totalorder %v3785_v41, 0  ;;  %vm3817_vm3 = vcmp.lt.s32.totalorder %v3785_v41, 0 }
 0x320   :  { %vm3808_vm5 = vcmp.ne.s32.totalorder %v3796_v40, 0  ;;  %vm3818_vm6 = vcmp.lt.s32.totalorder %v3796_v40, 0  ;;  %vm7468_vm9 = vmand %vm3817_vm3, %vm3807_vm2 }
 0x3c0   :  { %v5206_v51 = vpop.f32.mrb[60].mxu1 }
 0x3c1   :  { %v7395_v37 = vadd.f32 %v5206_v51, %v7375_v25  ;;  %v3599_v20 = vpop.f32.mrb[61].mxu1 }
 0x3c2   :  { %v7398_v42 = vadd.f32 %v7375_v25, %v3599_v20  ;;  %v5207_v26 = vpop.f32.mrb[62].mxu1  ;;  %v3843_v20 = vsel %vm7408_vm8, %v3833_v50, %v3741_v32  ;;  %v3846_v32 = vsel %vm7439_vm13, %v3836_v16, %v3774_v48  ;;  %v3837_v50 = vadd.s32 10, %v3785_v41 }
 0x3c3   :  { %v3881_v29 = vsel %vm7377_vm14, %v7395_v37, -1e+30  ;;  %v7404_v56 = vadd.f32 %v5207_v26, %v7375_v25  ;;  %v3602_v6 = vpop.f32.mrb[63].mxu1  ;;  %vm7448_vm4 = vcmp.lt.s32.totalorder %v3843_v20, 8  ;;  %v3838_v16 = vadd.s32 10, %v3796_v40 }
 0x3c4   :  { %v3879_v23 = vsel %vm7382_vm15, %v7398_v42, -1e+30  ;;  %v7416_v8 = vadd.f32 %v7375_v25, %v3602_v6  ;;  %v3845_v6 = vsel %vm7420_vm11, %v3835_v52, %v3763_v31  ;;  %vm7481_vm10 = vcmp.lt.s32.totalorder %v3846_v32, 8  ;;  %vm3828_vm11 = vmand %vm3818_vm6, %vm3808_vm5 }
 0x3c5   :  { %v3899_v22 = vmax.f32 %v3879_v23, %v3881_v29  ;;  %v3882_v11 = vsel %vm7386_vm0, %v7404_v56, -1e+30  ;;  %v3844_v23 = vsel %vm7430_vm12, %v3834_v63, %v3752_v27  ;;  %vm7460_vm7 = vcmp.lt.s32.totalorder %v3845_v6, 8 }
 0x3c6   :  { %v3880_v51 = vsel %vm7390_vm1, %v7416_v8, -1e+30  ;;  %vm7464_vm8 = vcmp.lt.s32.totalorder %v3844_v23, 8  ;;  %v3003_v27 = vadd.f32 %v7099_v62, %v7683_v1  ;;  %v3011_v62 = vadd.f32 %v7683_v1, %v7109_v38 }
 0x3c7   :  { %v3900_v26 = vmax.f32 %v3880_v51, %v3882_v11  ;;  %v2998_v51 = vadd.f32 %v7683_v1, %v7105_v30  ;;  %v3027_v30 = vadd.f32 %v7683_v1, %v7117_v60 }
 0x3c8   :  { %v5210_v29 = vpop.f32.mrb[64].mxu1 }
 0x3c9   :  { %v3615_v7 = vpop.f32.mrb[65].mxu1  ;;  %v7455_v9 = vadd.f32 %v5210_v29, %v7375_v25  ;;  %v3847_v29 = vsel %vm7468_vm9, %v3837_v50, %v3785_v41 }
 0x3ca   :  { %v7458_v21 = vadd.f32 %v7375_v25, %v3615_v7  ;;  %v5211_v31 = vpop.f32.mrb[66].mxu1  ;;  %vm7496_vm12 = vcmp.lt.s32.totalorder %v3847_v29, 8 }
 0x3cb   :  { %v3618_v52 = vpop.f32.mrb[67].mxu1  ;;  %v7476_v63 = vadd.f32 %v5211_v31, %v7375_v25  ;;  %v3885_v20 = vsel %vm7460_vm7, %v7455_v9, -1e+30  ;;  %v3848_v31 = vsel %vm3828_vm11, %v3838_v16, %v3796_v40 }
 0x3cc   :  { %v3883_v7 = vsel %vm7448_vm4, %v7458_v21, -1e+30  ;;  %v7479_v11 = vadd.f32 %v7375_v25, %v3618_v52  ;;  %vm7503_vm13 = vcmp.lt.s32.totalorder %v3848_v31, 8 }
 0x3cd   :  { %v3901_v61 = vmax.f32 %v3899_v22, %v3883_v7  ;;  %v3886_v22 = vsel %vm7481_vm10, %v7476_v63, -1e+30  ;;  %v3022_v7 = vadd.f32 %v7111_v3, %v7683_v1 }
 0x3ce   :  { %v3884_v33 = vsel %vm7464_vm8, %v7479_v11, -1e+30 }
 0x3cf   :  { %v3902_v6 = vmax.f32 %v3900_v26, %v3884_v33  ;;  %v3903_v23 = vmax.f32 %v3901_v61, %v3885_v20 }
 0x3d0   :  { %v5214_v32 = vpop.f32.mrb[68].mxu1 }
 0x3d1   :  { %v3631_v52 = vpop.f32.mrb[69].mxu1  ;;  %v3904_v45 = vmax.f32 %v3902_v6, %v3886_v22  ;;  %v7517_v20 = vadd.f32 %v5214_v32, %v7375_v25 }
 0x3d2   :  { %v7501_v47 = vadd.f32 %v7375_v25, %v3631_v52  ;;  %v5215_v19 = vpop.f32.mrb[70].mxu1 }
 0x3d3   :  { %v3634_v48 = vpop.f32.mrb[71].mxu1  ;;  %v7520_v22 = vadd.f32 %v5215_v19, %v7375_v25 }
 0x3d4   :  { %v3887_v26 = vsel %vm7496_vm12, %v7501_v47, -1e+30  ;;  %v7511_v40 = vadd.f32 %v7375_v25, %v3634_v48 }
 0x3d5   :  { %v3905_v50 = vmax.f32 %v3903_v23, %v3887_v26 }
 0x3d6   :  { %v3888_v16 = vsel %vm7503_vm13, %v7511_v40, -1e+30 }
 0x3d7   :  { %v3906_v61 = vmax.f32 %v3904_v45, %v3888_v16  ;;  %v3889_v45 = vsel %vm7382_vm15, %v7517_v20, -1e+30 }
 0x3d8   :  { %v5218_v33 = vpop.f32.mrb[72].mxu1 }
 0x3d9   :  { %v3907_v29 = vmax.f32 %v3905_v50, %v3906_v61  ;;  %v3647_v6 = vpop.f32.mrb[73].mxu1  ;;  %v7523_v31 = vadd.f32 %v5218_v33, %v7375_v25  ;;  %v3890_v33 = vsel %vm7390_vm1, %v7520_v22, -1e+30 }
 0x3da   :  { %v7526_v52 = vadd.f32 %v7375_v25, %v3647_v6  ;;  %v5219_v23 = vpop.f32.mrb[74].mxu1 }
 0x3db   :  { %v3908_v48 = vrot.slane %v3907_v29, 4  ;;  %v3650_v26 = vpop.f32.mrb[75].mxu1  ;;  %v7535_v19 = vadd.f32 %v5219_v23, %v7375_v25  ;;  %v3893_v6 = vsel %vm7448_vm4, %v7523_v31, -1e+30 }
 0x3dc   :  { %v3891_v32 = vsel %vm7377_vm14, %v7526_v52, -1e+30  ;;  %v7538_v50 = vadd.f32 %v7375_v25, %v3650_v26 }
 0x3dd   :  { %v3909_v16 = vmax.f32 %v3907_v29, %v3908_v48  ;;  %v3914_v61 = vmax.f32 %v3889_v45, %v3891_v32  ;;  %v3894_v29 = vsel %vm7464_vm8, %v7535_v19, -1e+30 }
 0x3de   :  { %v3892_v44 = vsel %vm7386_vm0, %v7538_v50, -1e+30 }
 0x3df   :  { %v3910_v34 = vrot.slane %v3909_v16, 2  ;;  %v3915_v23 = vmax.f32 %v3890_v33, %v3892_v44  ;;  %v3916_v54 = vmax.f32 %v3914_v61, %v3893_v6 }
 0x3e0   :  { %v5222_v48 = vpop.f32.mrb[76].mxu1 }
 0x3e1   :  { %v3911_v26 = vmax.f32 %v3909_v16, %v3910_v34  ;;  %v3663_v45 = vpop.f32.mrb[77].mxu1  ;;  %v3917_v32 = vmax.f32 %v3915_v23, %v3894_v29  ;;  %v7553_v12 = vadd.f32 %v5222_v48, %v7375_v25 }
 0x3e2   :  { %v7556_v17 = vadd.f32 %v7375_v25, %v3663_v45  ;;  %v5223_v55 = vpop.f32.mrb[78].mxu1 }
 0x3e3   :  { %v3912_v46 = vrot.slane %v3911_v26, 1  ;;  %v3666_v28 = vpop.f32.mrb[79].mxu1  ;;  %v3897_v16 = vsel %vm7496_vm12, %v7553_v12, -1e+30  ;;  %v7568_v6 = vadd.f32 %v5223_v55, %v7375_v25 }
 0x3e4   :  { %v3895_v44 = vsel %vm7460_vm7, %v7556_v17, -1e+30  ;;  %v7562_v61 = vadd.f32 %v7375_v25, %v3666_v28 }
 0x3e5   :  { %v3913_v33 = vmax.f32 %v3911_v26, %v3912_v46  ;;  %v3918_v34 = vmax.f32 %v3916_v54, %v3895_v44 }
 0x3e6   :  { %v3896_v23 = vsel %vm7481_vm10, %v7562_v61, -1e+30 }
 0x3e7   :  { %v3929_v29 = vsub.f32 %v7398_v42, %v3913_v33  ;;  %v3930_v48 = vsub.f32 %v7416_v8, %v3913_v33  ;;  %v3931_v28 = vsub.f32 %v7395_v37, %v3913_v33  ;;  %v3932_v46 = vsub.f32 %v7404_v56, %v3913_v33 }
 0x3e8   :  { %v3933_v54 = vsub.f32 %v7458_v21, %v3913_v33  ;;  %v3934_v26 = vsub.f32 %v7479_v11, %v3913_v33  ;;  %v3935_v45 = vsub.f32 %v7455_v9, %v3913_v33  ;;  %v3936_v55 = vsub.f32 %v7476_v63, %v3913_v33 }
 0x3e9   :  { %v3937_v25 = vsub.f32 %v7501_v47, %v3913_v33  ;;  %v3938_v44 = vsub.f32 %v7511_v40, %v3913_v33  ;;  %v3949_v57 = vmul.f32 1.442695, %v3929_v29  ;;  %v3951_v42 = vmul.f32 1.442695, %v3930_v48 }
 0x3ea   :  { %v3953_v58 = vmul.f32 1.442695, %v3931_v28  ;;  %v3955_v8 = vmul.f32 1.442695, %v3932_v46  ;;  %v3920_v36 = vmax.f32 %v3918_v34, %v3897_v16  ;;  %v3957_v37 = vmul.f32 1.442695, %v3933_v54 }
 0x3eb   :  { %5559 = vpow2.f32 %v3949_v57  ;;  %v3919_v56 = vmax.f32 %v3917_v32, %v3896_v23  ;;  %v3959_v21 = vmul.f32 1.442695, %v3934_v26  ;;  %v3898_v9 = vsel %vm7503_vm13, %v7568_v6, -1e+30 }
 0x3ec   :  { %5561 = vpow2.f32 %v3951_v42  ;;  %v3961_v63 = vmul.f32 1.442695, %v3935_v45  ;;  %v3963_v40 = vmul.f32 1.442695, %v3936_v55  ;;  %v3965_v34 = vmul.f32 1.442695, %v3937_v25 }
 0x3ed   :  { %5563 = vpow2.f32 %v3953_v58  ;;  %v3921_v47 = vmax.f32 %v3919_v56, %v3898_v9  ;;  %v3967_v58 = vmul.f32 1.442695, %v3938_v44 }
 0x3ee   :  { %5565 = vpow2.f32 %v3955_v8 }
 0x3ef   :  { %5567 = vpow2.f32 %v3957_v37  ;;  %v3922_v11 = vmax.f32 %v3920_v36, %v3921_v47 }
 0x3f0   :  { %5569 = vpow2.f32 %v3959_v21 }
 0x3f1   :  { %5571 = vpow2.f32 %v3961_v63  ;;  %v3923_v33 = vrot.slane %v3922_v11, 4 }
 0x3f2   :  { %5573 = vpow2.f32 %v3963_v40 }
 0x3f3   :  { %v3924_v57 = vmax.f32 %v3922_v11, %v3923_v33  ;;  %5575 = vpow2.f32 %v3965_v34 }
 0x3f4   :  { %5577 = vpow2.f32 %v3967_v58 }
 0x3f5   :  { %v5560_v16 = vpop.eup %5559  ;;  %v3925_v23 = vrot.slane %v3924_v57, 2 }
 0x3f6   :  { %v5562_v29 = vpop.eup %5561  ;;  %v7588_v32 = vsel %vm7382_vm15, %v5560_v16, 0.0 }
 0x3f7   :  { %v5564_v48 = vpop.eup %5563  ;;  %v7592_v28 = vsel %vm7390_vm1, %v5562_v29, 0.0  ;;  %v3926_v54 = vmax.f32 %v3924_v57, %v3925_v23 }
 0x3f8   :  { %v5566_v36 = vpop.eup %5565  ;;  %v4009_v46 = vadd.f32 %v7592_v28, %v7588_v32  ;;  %v7598_v26 = vsel %vm7377_vm14, %v5564_v48, 0.0 }
 0x3f9   :  { %v5568_v45 = vpop.eup %5567  ;;  %v3927_v25 = vrot.slane %v3926_v54, 1  ;;  %v7603_v42 = vsel %vm7386_vm0, %v5566_v36, 0.0 }
 0x3fa   :  { %v4010_v55 = vadd.f32 %v4009_v46, %v7598_v26  ;;  %v5570_v44 = vpop.eup %5569  ;;  %v7608_v21 = vsel %vm7448_vm4, %v5568_v45, 0.0 }
 0x3fb   :  { %v5572_v8 = vpop.eup %5571  ;;  %v3928_v56 = vmax.f32 %v3926_v54, %v3927_v25  ;;  %v7612_v9 = vsel %vm7464_vm8, %v5570_v44, 0.0 }
 0x3fc   :  { %v4011_v37 = vadd.f32 %v4010_v55, %v7603_v42  ;;  %v7619_v40 = vsel %vm7460_vm7, %v5572_v8, 0.0  ;;  %v5574_v16 = vpop.eup %5573 }
 0x3fd   :  { %v3939_v47 = vsub.f32 %v7517_v20, %v3928_v56  ;;  %v3940_v11 = vsub.f32 %v7520_v22, %v3928_v56  ;;  %v3941_v33 = vsub.f32 %v7526_v52, %v3928_v56  ;;  %v3942_v34 = vsub.f32 %v7538_v50, %v3928_v56  ;;  %v5576_v52 = vpop.eup %5575 }
 0x3fe   :  { %v4012_v63 = vadd.f32 %v4011_v37, %v7608_v21  ;;  %v3943_v57 = vsub.f32 %v7523_v31, %v3928_v56  ;;  %v3944_v58 = vsub.f32 %v7535_v19, %v3928_v56  ;;  %v3945_v23 = vsub.f32 %v7556_v17, %v3928_v56  ;;  %v5578_v19 = vpop.eup %5577 }
 0x3ff   :  { %v3946_v20 = vsub.f32 %v7562_v61, %v3928_v56  ;;  %v3947_v22 = vsub.f32 %v7553_v12, %v3928_v56  ;;  %v3948_v48 = vsub.f32 %v7568_v6, %v3928_v56  ;;  %v3969_v36 = vmul.f32 1.442695, %v3939_v47 }
 0x400   :  { %v4013_v29 = vadd.f32 %v4012_v63, %v7612_v9  ;;  %v3971_v46 = vmul.f32 1.442695, %v3940_v11  ;;  %v3973_v54 = vmul.f32 1.442695, %v3941_v33  ;;  %v3975_v31 = vmul.f32 1.442695, %v3942_v34 }
 0x401   :  { %v7633_v45 = vsel %vm7481_vm10, %v5574_v16, 0.0  ;;  %5579 = vpow2.f32 %v3969_v36  ;;  %v3977_v61 = vmul.f32 1.442695, %v3943_v57  ;;  %v7638_v12 = vsel %vm7496_vm12, %v5576_v52, 0.0 }
 0x402   :  { %v4014_v50 = vadd.f32 %v4013_v29, %v7619_v40  ;;  %5581 = vpow2.f32 %v3971_v46  ;;  %v3979_v55 = vmul.f32 1.442695, %v3944_v58  ;;  %v7643_v25 = vsel %vm7503_vm13, %v5578_v19, 0.0 }
 0x403   :  { %5583 = vpow2.f32 %v3973_v54  ;;  %v3981_v8 = vmul.f32 1.442695, %v3945_v23  ;;  %v3983_v56 = vmul.f32 1.442695, %v3946_v20  ;;  %v3985_v47 = vmul.f32 1.442695, %v3947_v22 }
 0x404   :  { %v4015_v17 = vadd.f32 %v4014_v50, %v7633_v45  ;;  %5585 = vpow2.f32 %v3975_v31  ;;  %v3987_v57 = vmul.f32 1.442695, %v3948_v48 }
 0x405   :  { %5587 = vpow2.f32 %v3977_v61 }
 0x406   :  { %v4016_v6 = vadd.f32 %v4015_v17, %v7638_v12  ;;  %5589 = vpow2.f32 %v3979_v55 }
 0x407   :  { %5591 = vpow2.f32 %v3981_v8 }
 0x408   :  { %v4017_v44 = vadd.f32 %v4016_v6, %v7643_v25  ;;  %5593 = vpow2.f32 %v3983_v56 }
 0x409   :  { %5595 = vpow2.f32 %v3985_v47  ;;  %v3006_v47 = vadd.f32 %v7103_v15, %v7683_v1  ;;  %v3014_v15 = vadd.f32 %v7683_v1, %v7113_v43 }
 0x40a   :  { %v4018_v37 = vrot.slane %v4017_v44, 4  ;;  %5597 = vpow2.f32 %v3987_v57 }
 0x40b   :  { %v5580_v11 = vpop.eup %5579 }
 0x40c   :  { %v4019_v63 = vadd.f32 %v4018_v37, %v4017_v44  ;;  %v5582_v33 = vpop.eup %5581  ;;  %v7648_v16 = vsel %vm7382_vm15, %v5580_v11, 0.0 }
 0x40d   :  { %v5584_v29 = vpop.eup %5583  ;;  %v7652_v58 = vsel %vm7390_vm1, %v5582_v33, 0.0  ;;  %v3019_v33 = vadd.f32 %v7107_v53, %v7683_v1  ;;  %v3030_v53 = vadd.f32 %v7683_v1, %v7121_v59 }
 0x40e   :  { %v4020_v34 = vrot.slane %v4019_v63, 2  ;;  %v5586_v23 = vpop.eup %5585  ;;  %v4024_v20 = vadd.f32 %v7652_v58, %v7648_v16  ;;  %v7658_v22 = vsel %vm7377_vm14, %v5584_v29, 0.0 }
 0x40f   :  { %v5588_v48 = vpop.eup %5587  ;;  %v7663_v13 = vsel %vm7386_vm0, %v5586_v23, 0.0 }
 0x410   :  { %v4021_v36 = vadd.f32 %v4020_v34, %v4019_v63  ;;  %v4025_v18 = vadd.f32 %v4024_v20, %v7658_v22  ;;  %v5590_v52 = vpop.eup %5589  ;;  %v7668_v31 = vsel %vm7448_vm4, %v5588_v48, 0.0  ;;  %v2995_v63 = vadd.f32 %v7683_v1, %v7101_v10 }
 0x411   :  { %v5592_v4 = vpop.eup %5591  ;;  %v7673_v17 = vsel %vm7464_vm8, %v5590_v52, 0.0 }
 0x412   :  { %v4022_v46 = vrot.slane %v4021_v36, 1  ;;  %v4026_v54 = vadd.f32 %v4025_v18, %v7663_v13  ;;  %v5594_v61 = vpop.eup %5593  ;;  %v7678_v6 = vsel %vm7460_vm7, %v5592_v4, 0.0 }
 0x413   :  { %v5596_v55 = vpop.eup %5595  ;;  %v7688_v24 = vsel %vm7481_vm10, %v5594_v61, 0.0  ;;  %v8139_v61 = vmax.f32 %v7169_v0, 0.0 }
 0x414   :  { %v4023_v50 = vadd.f32 %v4022_v46, %v4021_v36  ;;  %v4027_v19 = vadd.f32 %v4026_v54, %v7668_v31  ;;  %v5598_v8 = vpop.eup %5597  ;;  %v7695_v56 = vsel %vm7496_vm12, %v5596_v55, 0.0  ;;  %v8140_v55 = vmax.f32 %v7179_v2, 0.0 }
 0x415   :  { %v7712_v10 = vsel %vm7503_vm13, %v5598_v8, 0.0  ;;  %v8141_v8 = vld [vmem:[#allocation25_spill] sm:$0xff] }
 0x416   :  { %5599 = vrcp.f32 %v4023_v50  ;;  %v4028_v39 = vadd.f32 %v4027_v19, %v7673_v17 }
 0x418   :  { %v4029_v44 = vadd.f32 %v4028_v39, %v7678_v6 }
 0x41a   :  { %v4030_v37 = vadd.f32 %v4029_v44, %v7688_v24 }
 0x41c   :  { %v4031_v11 = vadd.f32 %v4030_v37, %v7695_v56  ;;  %v8142_v37 = vmax.f32 %v8141_v8, 0.0 }
 0x41e   :  { %v4032_v57 = vadd.f32 %v4031_v11, %v7712_v10 }
 0x420   :  { %v5600_v34 = vpop.eup %5599 }
 0x421   :  { %v4041_v38 = vmul.f32 %v5600_v34, %v7588_v32  ;;  %v4042_v3 = vmul.f32 %v5600_v34, %v7592_v28  ;;  %v4043_v41 = vmul.f32 %v5600_v34, %v7598_v26  ;;  %v4044_v29 = vmul.f32 %v5600_v34, %v7603_v42 }
 0x422   :  { %v4045_v23 = vmul.f32 %v5600_v34, %v7608_v21  ;;  %v4046_v43 = vmul.f32 %v5600_v34, %v7612_v9  ;;  %v4047_v36 = vmul.f32 %v5600_v34, %v7619_v40  ;;  %v4048_v60 = vmul.f32 %v5600_v34, %v7633_v45 }
 0x423   :  { %v4049_v59 = vmul.f32 %v5600_v34, %v7638_v12  ;;  %v4050_v20 = vmul.f32 %v5600_v34, %v7643_v25  ;;  %v4061_v48 = vmul.f32 %v4041_v38, %v2995_v63  ;;  %v4062_v32 = vmul.f32 %v4042_v3, %v2998_v51 }
 0x424   :  { %v4063_v46 = vmul.f32 %v4043_v41, %v3003_v27  ;;  %v4064_v28 = vmul.f32 %v4044_v29, %v3006_v47  ;;  %v4065_v18 = vmul.f32 %v4045_v23, %v3011_v62  ;;  %v4066_v26 = vmul.f32 %v4046_v43, %v3014_v15  ;;  %v8149_v29 = vld [vmem:[#allocation17_spill] sm:$0xff]  ;;  %v8150_v43 = vld [vmem:[#allocation18_spill] sm:$0xff] }
 0x425   :  { %v4067_v52 = vmul.f32 %v4047_v36, %v3019_v33  ;;  %v4068_v42 = vmul.f32 %v4048_v60, %v3022_v7  ;;  %v4069_v50 = vmul.f32 %v4049_v59, %v3027_v30  ;;  %v4070_v21 = vmul.f32 %v4050_v20, %v3030_v53  ;;  %v8151_v60 = vld [vmem:[#allocation19_spill] sm:$0xff]  ;;  %v8152_v20 = vld [vmem:[#allocation20_spill] sm:$0xff] }
 0x426   :  { %v8135_v9 = vmax.f32 %v7145_v5, 0.0  ;;  %v8136_v40 = vmax.f32 %v7154_v35, 0.0  ;;  %v8137_v12 = vmax.f32 %v7148_v49, 0.0  ;;  %v8138_v25 = vmax.f32 %v7151_v14, 0.0  ;;  %v8143_v5 = vld [vmem:[#allocation26_spill] sm:$0xff]  ;;  %v8147_v49 = vld [vmem:[#allocation33_spill] sm:$0xff] }
 0x427   :  { %v4085_v39 = vadd.f32 %v4065_v18, %v8139_v61  ;;  %v4086_v44 = vadd.f32 %v4066_v26, %v8140_v55  ;;  %v4087_v27 = vadd.f32 %v4067_v52, %v8142_v37  ;;  %v8144_v63 = vmax.f32 %v8143_v5, 0.0  ;;  %v8145_v35 = vld [vmem:[#allocation30_spill] sm:$0xff]  ;;  %v8155_v26 = vld [vmem:[#allocation23_spill] sm:$0xff] }
 0x428   :  { %v4081_v54 = vadd.f32 %v4061_v48, %v8135_v9  ;;  %v4082_v45 = vadd.f32 %v4062_v32, %v8136_v40  ;;  %v4083_v4 = vadd.f32 %v4063_v46, %v8137_v12  ;;  %v4084_v19 = vadd.f32 %v4064_v28, %v8138_v25  ;;  %v8154_v46 = vld [vmem:[#allocation22_spill] sm:$0xff] }
 0x429   :  { %v4088_v47 = vadd.f32 %v4068_v42, %v8144_v63  ;;  %v8146_v51 = vmax.f32 %v8145_v35, 0.0  ;;  %v8148_v33 = vmax.f32 %v8147_v49, 0.0  ;;  %v4476_v34 = vpack.c.bf16 %v4086_v44, %v4085_v39  ;;  %v8156_v42 = vld [vmem:[#allocation24_spill] sm:$0xff] }
 0x42a   :  { %v4466_v14 = vpack.c.bf16 %v4082_v45, %v4081_v54  ;;  %v4471_v7 = vpack.c.bf16 %v4084_v19, %v4083_v4  ;;  %v4033_v15 = vrot.slane %v4032_v57, 4  ;;  %v3035_v23 = vadd.f32 %v8149_v29, %v7683_v1  ;;  %v8158_v54 = vld [vmem:[#allocation28_spill] sm:$0xff] }
 0x42b   :  { %v4089_v11 = vadd.f32 %v4069_v50, %v8146_v51  ;;  %v4090_v62 = vadd.f32 %v4070_v21, %v8148_v33  ;;  %v4481_v0 = vpack.c.bf16 %v4088_v47, %v4087_v27  ;;  %4514 = vst [vmem:[#allocation7 + $0x10] sm:$0xff] %v4476_v34   ;;  %v3038_v36 = vadd.f32 %v8150_v43, %v7683_v1  ;;  %v8157_v21 = vld [vmem:[#allocation27_spill] sm:$0xff] }
 0x42c   :  { %4513 = vst [vmem:[#allocation7 + $0x8] sm:$0xff] %v4471_v7   ;;  %4467 = vst [vmem:[#allocation7] sm:$0xff] %v4466_v14   ;;  %v4034_v30 = vadd.f32 %v4033_v15, %v4032_v57  ;;  %v3051_v59 = vadd.f32 %v8151_v60, %v7683_v1  ;;  %v3043_v48 = vadd.f32 %v7683_v1, %v8152_v20  ;;  %v8153_v57 = vld [vmem:[#allocation21_spill] sm:$0xff]  ;;  %v8159_v47 = vld [vmem:[#allocation15_spill] sm:$0xff] }
 0x42d   :  { %v4486_v2 = vpack.c.bf16 %v4090_v62, %v4089_v11  ;;  %4515 = vst [vmem:[#allocation7 + $0x18] sm:$0xff] %v4481_v0   ;;  %v3054_v32 = vadd.f32 %v8153_v57, %v7683_v1  ;;  %v3046_v28 = vadd.f32 %v7683_v1, %v8154_v46  ;;  %v3067_v52 = vadd.f32 %v8155_v26, %v7683_v1  ;;  %v8163_v11 = vld [vmem:[#allocation34_spill] sm:$0xff]  ;;  %v8167_v14 = vld [vmem:[#allocation35_spill] sm:$0xff]  ;;  %v8169_v0 = vld [vmem:[#allocation36_spill] sm:$0xff] }
 0x42e   :  { %v4035_v53 = vrot.slane %v4034_v30, 2  ;;  %v3059_v50 = vadd.f32 %v7683_v1, %v8156_v42  ;;  %v3070_v9 = vadd.f32 %v8157_v21, %v7683_v1  ;;  %v3062_v40 = vadd.f32 %v7683_v1, %v8158_v54  ;;  %v8177_v60 = vld [vmem:[#allocation13_spill] sm:$0xff] }
 0x42f   :  { %4516 = vst [vmem:[#allocation7 + $0x20] sm:$0xff] %v4486_v2   ;;  %v8168_v7 = vmax.f32 %v8167_v14, 0.0  ;;  %v8170_v15 = vmax.f32 %v8169_v0, 0.0 }
 0x430   :  { %v4036_v38 = vadd.f32 %v4035_v53, %v4034_v30  ;;  %v8171_v30 = vld [vmem:[#allocation38_spill] sm:$0xff] }
 0x431   :  { %v8172_v53 = vmax.f32 %v8171_v30, 0.0 }
 0x432   :  { %v4037_v3 = vrot.slane %v4036_v38, 1 }
 0x434   :  { %v4038_v41 = vadd.f32 %v4037_v3, %v4036_v38  ;;  %v8173_v3 = vld [vmem:[#allocation16_spill] sm:$0xff] }
 0x436   :  { %5601 = vrcp.f32 %v4038_v41  ;;  %v8174_v41 = vmax.f32 %v8173_v3, 0.0 }
 0x440   :  { %v5602_v18 = vpop.eup %5601 }
 0x441   :  { %v4051_v45 = vmul.f32 %v5602_v18, %v7648_v16  ;;  %v4052_v12 = vmul.f32 %v5602_v18, %v7652_v58  ;;  %v4053_v4 = vmul.f32 %v5602_v18, %v7658_v22  ;;  %v4054_v25 = vmul.f32 %v5602_v18, %v7663_v13 }
 0x442   :  { %v4055_v19 = vmul.f32 %v5602_v18, %v7668_v31  ;;  %v4056_v61 = vmul.f32 %v5602_v18, %v7673_v17  ;;  %v4057_v39 = vmul.f32 %v5602_v18, %v7678_v6  ;;  %v4058_v55 = vmul.f32 %v5602_v18, %v7688_v24  ;;  %v8161_v6 = vld [vmem:[#allocation11_spill] sm:$0xff] }
 0x443   :  { %v4059_v44 = vmul.f32 %v5602_v18, %v7695_v56  ;;  %v4060_v1 = vmul.f32 %v5602_v18, %v7712_v10  ;;  %v4071_v8 = vmul.f32 %v4051_v45, %v3035_v23  ;;  %v4072_v16 = vmul.f32 %v4052_v12, %v3038_v36  ;;  %v8165_v10 = vld [vmem:[#allocation37_spill] sm:$0xff]  ;;  %v8175_v23 = vld [vmem:[#allocation39_spill] sm:$0xff] }
 0x444   :  { %v4073_v37 = vmul.f32 %v4053_v4, %v3043_v48  ;;  %v4074_v58 = vmul.f32 %v4054_v25, %v3046_v28  ;;  %v4075_v27 = vmul.f32 %v4055_v19, %v3051_v59  ;;  %v4076_v22 = vmul.f32 %v4056_v61, %v3054_v32 }
 0x445   :  { %v4077_v5 = vmul.f32 %v4057_v39, %v3059_v50  ;;  %v4078_v13 = vmul.f32 %v4058_v55, %v3062_v40  ;;  %v4079_v63 = vmul.f32 %v4059_v44, %v3067_v52  ;;  %v4080_v31 = vmul.f32 %v4060_v1, %v3070_v9 }
 0x446   :  { %v8160_v17 = vmax.f32 %v8159_v47, 0.0  ;;  %v8162_v51 = vmax.f32 %v8161_v6, 0.0  ;;  %v8164_v56 = vmax.f32 %v8163_v11, 0.0  ;;  %v8166_v33 = vmax.f32 %v8165_v10, 0.0 }
 0x447   :  { %v4095_v34 = vadd.f32 %v4075_v27, %v8168_v7  ;;  %v4096_v2 = vadd.f32 %v4076_v22, %v8170_v15  ;;  %v4097_v38 = vadd.f32 %v4077_v5, %v8172_v53  ;;  %v4098_v29 = vadd.f32 %v4078_v13, %v8174_v41 }
 0x448   :  { %v4091_v35 = vadd.f32 %v4071_v8, %v8160_v17  ;;  %v4092_v24 = vadd.f32 %v4072_v16, %v8162_v51  ;;  %v4093_v49 = vadd.f32 %v4073_v37, %v8164_v56  ;;  %v4094_v62 = vadd.f32 %v4074_v58, %v8166_v33 }
 0x449   :  { %v8176_v43 = vmax.f32 %v8175_v23, 0.0  ;;  %v8178_v59 = vmax.f32 %v8177_v60, 0.0  ;;  %v4501_v32 = vpack.c.bf16 %v4096_v2, %v4095_v34  ;;  %v4506_v46 = vpack.c.bf16 %v4098_v29, %v4097_v38 }
 0x44a   :  { %v4491_v48 = vpack.c.bf16 %v4092_v24, %v4091_v35  ;;  %v4496_v57 = vpack.c.bf16 %v4094_v62, %v4093_v49 }
 0x44b   :  { %v4099_v36 = vadd.f32 %v4079_v63, %v8176_v43  ;;  %v4100_v20 = vadd.f32 %v4080_v31, %v8178_v59  ;;  %4519 = vst [vmem:[#allocation7 + $0x38] sm:$0xff] %v4501_v32   ;;  %4520 = vst [vmem:[#allocation7 + $0x40] sm:$0xff] %v4506_v46  }
 0x44c   :  { %4518 = vst [vmem:[#allocation7 + $0x30] sm:$0xff] %v4496_v57   ;;  %4517 = vst [vmem:[#allocation7 + $0x28] sm:$0xff] %v4491_v48  }
 0x44d   :  { %v4511_v28 = vpack.c.bf16 %v4100_v20, %v4099_v36 }
 0x44f   :  { %4521 = vst [vmem:[#allocation7 + $0x48] sm:$0xff] %v4511_v28  }
 0x450   :  { %5691 = shalt.err (!%p5688_p6)
}
 0x451   :  { %s5692_s4 = scalar_lea.hbm %s7826_s10, 1280 }
 0x452   :  { %p5693_p7 = scmp.ne.s32.totalorder %s7826_s10, %s5692_s4  ;;  %p5696_p8 = scmp.lt.u32.totalorder %s5692_s4, %s7826_s10 }
 0x454   :  { %p5698_p9 = pnand %p5696_p8, %p5693_p7 }
 0x456   :  { %5701 = shalt.err (!%p5698_p9)
}
 0x457   :  { %4212 = dma.vmem_to_hbm [thread:$0]  %s4207_s29, 1280, %s7826_s10, [#allocation4], %s5709_s23, %s5709_s23, %s5710_s24  }
 0x458   :  { %5706 = dma.done.wait [#allocation4], 1280  }
 0x459   :  { %5707 = vsyncadd [#allocation4], 4294966016 }
 0x45a   :  { %4216 = vsyncpa [#allocation3], 1 }
 0x45b   :  { %4217 = vsyncpa [#allocation6], 1 }
 0x45c   :  { %4218 = vsyncpa [#allocation4], 1 }

</bundles_post_ra>
